<compile_context>
chip_gen: v6e
topology: v6e:2x2x1
jax: 0.10.0
libtpu: 0.0.40
codegen_flags: <defaults>
</compile_context>

<pallas_src>
import math

import jax
import jax.numpy as jnp
from jax.experimental import pallas as pl
from jax.experimental.pallas import tpu as pltpu

LATENT_FEATURES = 100           # matches `latent_features = 100` in VAE_100.py
LATENT_PAD = 128                # lane-aligned latent width used inside the kernel
INPUT_SHAPE = (4, 16, 16)       # (C, H, W) -> observation_features = 1024


# ----------------------------- Pallas kernel ------------------------------ #

def _dense(h_bf16, w_ref, b_ref, relu=True):
    """bf16 x bf16 MXU matmul with f32 accumulation; bias/ReLU in f32."""
    y = jnp.dot(h_bf16, w_ref[...], preferred_element_type=jnp.float32) + b_ref[...]
    if relu:
        y = jnp.maximum(y, 0.0)
    return y


def vae_kernel(x_ref, eps_ref,
               we1, be1, we2, be2, we3, be3, we4, be4,
               wd1, bd1, wd2, bd2, wd3, bd3, wd4, bd4,
               px_ref, lat_ref):
    # TODO(synk): nn.Dropout(0.2) layers are stochastic in train mode; they are
    # treated here as eval-mode identity (the only deterministic semantics).
    x = x_ref[...].astype(jnp.bfloat16)                       # f32 -> bf16 on-chip

    # ---- encoder: obs -> 512 -> 256 -> 128 ----
    h = _dense(x, we1, be1).astype(jnp.bfloat16)
    h = _dense(h, we2, be2).astype(jnp.bfloat16)
    h = _dense(h, we3, be3).astype(jnp.bfloat16)

    # fused head Linear(128 -> 2*128 padded): [mu | log_sigma], aligned split
    y4 = _dense(h, we4, be4, relu=False)                      # f32 (TB, 256)
    mu = y4[:, :LATENT_PAD]
    log_sigma = y4[:, LATENT_PAD:]

    # ---- reparameterization: z = mu + exp(log_sigma) * eps (pad lanes: eps=0,
    # weight/bias pad = 0 => mu=0, sigma=1, z=0, harmless downstream) ----
    z = mu + jnp.exp(log_sigma) * eps_ref[...]                # f32

    # ---- decoder: 128 -> 128 -> 256 -> 512 -> obs ----
    g = _dense(z.astype(jnp.bfloat16), wd1, bd1).astype(jnp.bfloat16)
    g = _dense(g, wd2, bd2).astype(jnp.bfloat16)
    g = _dense(g, wd3, bd3).astype(jnp.bfloat16)
    g = _dense(g, wd4, bd4, relu=False)                       # f32 (TB, obs)

    px_ref[...] = g.astype(px_ref.dtype)
    # two lane-aligned (128-multiple) stores; no concatenate temporary
    lat_ref[:, :2 * LATENT_PAD] = y4                          # [mu | log_sigma]
    lat_ref[:, 2 * LATENT_PAD:] = z                           # [z]


# ------------------------------ parameters --------------------------------- #

def init_linear(key, fan_in, fan_out):
    """Deterministic init mimicking nn.Linear defaults (uniform +-1/sqrt(fan_in))."""
    kw, kb = jax.random.split(key)
    bound = 1.0 / math.sqrt(fan_in)
    w = jax.random.uniform(kw, (fan_in, fan_out), jnp.float32, -bound, bound)
    b = jax.random.uniform(kb, (1, fan_out), jnp.float32, -bound, bound)
    return w, b


def init_vae_params(key, obs_features, latent):
    """f32, torch-layout-equivalent parameters (weights stored (in, out))."""
    keys = jax.random.split(key, 8)
    we1, be1 = init_linear(keys[0], obs_features, 512)
    we2, be2 = init_linear(keys[1], 512, 256)
    we3, be3 = init_linear(keys[2], 256, 128)
    we4, be4 = init_linear(keys[3], 128, 2 * latent)
    wd1, bd1 = init_linear(keys[4], latent, 128)
    wd2, bd2 = init_linear(keys[5], 128, 256)
    wd3, bd3 = init_linear(keys[6], 256, 512)
    wd4, bd4 = init_linear(keys[7], 512, obs_features)
    return (we1, be1, we2, be2, we3, be3, we4, be4,
            wd1, bd1, wd2, bd2, wd3, bd3, wd4, bd4)


def pack_params(params, latent=LATENT_FEATURES, lpad=LATENT_PAD):
    """Pad latent 100->128 (head + first decoder layer), keep the mu/log_sigma
    head fused, cast weights to bf16 (biases stay f32: they add into the f32
    MXU accumulators)."""
    # TODO(synk): optional v7x-only fp8 path for we1/wd4 (per-tensor-scaled fp8
    # MXU inputs) not implemented; bf16 is the portable precision here.
    (we1, be1, we2, be2, we3, be3, we4, be4,
     wd1, bd1, wd2, bd2, wd3, bd3, wd4, bd4) = params

    we4_p = jnp.zeros((we4.shape[0], 2 * lpad), jnp.float32)
    we4_p = we4_p.at[:, :latent].set(we4[:, :latent])
    we4_p = we4_p.at[:, lpad:lpad + latent].set(we4[:, latent:])
    be4_p = jnp.zeros((1, 2 * lpad), jnp.float32)
    be4_p = be4_p.at[:, :latent].set(be4[:, :latent])
    be4_p = be4_p.at[:, lpad:lpad + latent].set(be4[:, latent:])
    wd1_p = jnp.zeros((lpad, wd1.shape[1]), jnp.float32).at[:latent].set(wd1)

    bf = lambda w: w.astype(jnp.bfloat16)
    return (bf(we1), be1, bf(we2), be2, bf(we3), be3, bf(we4_p), be4_p,
            bf(wd1_p), bd1, bf(wd2), bd2, bf(wd3), bd3, bf(wd4), bd4)


# -------------------------------- wrapper ---------------------------------- #

def _tb_cap():
    """Per-generation cap on the batch tile."""
    try:
        kind = jax.devices()[0].device_kind.lower()
    except Exception:
        return 256
    # v7x: 64 MiB VMEM + 2 TCs/chip -> prefer more, smaller grid steps.
    # v5e/v6e: 128 MiB VMEM, 1 TC -> larger tiles amortize per-step overhead.
    return 256 if "v7" in kind else 512


def _pick_tb(B, cap):
    """Batch tile: single full-batch block for tiny B; otherwise >= 2 grid
    steps (v7x has 2 TensorCores), rows a multiple of 16, capped per chip."""
    if B < 32:
        return B                       # block == full array dim (always legal)
    tb = -(-B // 2)                    # aim for at least 2 grid steps
    tb = -(-tb // 16) * 16             # round up to a bf16 sublane tile
    return min(tb, cap)


def vae_forward(x, packed_params, eps, px_dtype=jnp.float32):
    """Equivalent of VariationalAutoencoder.forward (eval-mode dropout).

    Returns the distribution parameters:
      px: LogNormal(loc=px_loc, scale=1.0)
      qz: N(mu, exp(log_sigma));  pz: N(0, I);  z: reparameterized sample.
    """
    B = x.shape[0]
    obs = int(math.prod(x.shape[1:]))
    latent = eps.shape[-1]

    TB = _pick_tb(B, _tb_cap())
    grid = (pl.cdiv(B, TB),)           # ragged last block handled by Pallas

    # x enters the kernel in native f32: no host-side pad/cast pass.
    x_flat = x.reshape(B, obs)
    # eps padded 100 -> 128 (pad lanes exactly zero so z pad lanes are zero).
    eps_p = jnp.zeros((B, LATENT_PAD), jnp.float32)
    eps_p = eps_p.at[:, :latent].set(eps.astype(jnp.float32))

    def rows(n_cols):                  # batch-tiled activation/output spec
        return pl.BlockSpec((TB, n_cols), lambda i: (i, 0))

    def resident(shape):               # weights: constant index_map, 1 buffer
        n = len(shape)
        return pl.BlockSpec(shape, lambda i, _n=n: (0,) * _n,
                            pipeline_mode=pl.Buffered(1))

    weight_bytes = sum(int(p.size) * p.dtype.itemsize for p in packed_params)
    macs_per_row = (obs * 512 + 512 * 256 + 256 * 128 + 128 * 2 * LATENT_PAD
                    + LATENT_PAD * 128 + 128 * 256 + 256 * 512 + 512 * obs)
    cost = pl.CostEstimate(
        flops=int(2 * B * macs_per_row),
        transcendentals=int(B * LATENT_PAD),
        bytes_accessed=int(B * (obs * 4                      # x in (f32)
                                + obs * jnp.dtype(px_dtype).itemsize
                                + LATENT_PAD * 4             # eps
                                + 3 * LATENT_PAD * 4)        # mu|log_sigma|z
                           + weight_bytes),
    )

    ins = (x_flat, eps_p) + tuple(packed_params)
    in_specs = ([rows(obs), rows(LATENT_PAD)]
                + [resident(p.shape) for p in packed_params])
    out_specs = (rows(obs), rows(3 * LATENT_PAD))

    px_flat, lat = pl.pallas_call(
        vae_kernel,
        grid=grid,
        out_shape=(
            jax.ShapeDtypeStruct((B, obs), px_dtype),
            jax.ShapeDtypeStruct((B, 3 * LATENT_PAD), jnp.float32),
        ),
        in_specs=in_specs,
        out_specs=out_specs,
        compiler_params=pltpu.CompilerParams(
            dimension_semantics=("parallel",),
            vmem_limit_bytes=(40 << 20) if TB >= 512 else (24 << 20),
        ),
        cost_estimate=cost,
    )(*ins)

    mu = lat[:, :latent]
    log_sigma = lat[:, LATENT_PAD:LATENT_PAD + latent]
    z = lat[:, 2 * LATENT_PAD:2 * LATENT_PAD + latent]

    px_loc = px_flat.reshape((B,) + tuple(x.shape[1:]))        # view(-1, *input_shape)
    pz_mu = jnp.zeros((B, latent), jnp.float32)                # prior_params.chunk(2)
    pz_log_sigma = jnp.zeros((B, latent), jnp.float32)

    return {
        "px_loc": px_loc, "px_scale": jnp.float32(1.0),
        "qz_mu": mu, "qz_log_sigma": log_sigma,
        "pz_mu": pz_mu, "pz_log_sigma": pz_log_sigma,
        "z": z,
    }


# --------------------------- pure-JAX reference ---------------------------- #

def vae_forward_ref(x, params, eps, compute_dtype=jnp.float32):
    (we1, be1, we2, be2, we3, be3, we4, be4,
     wd1, bd1, wd2, bd2, wd3, bd3, wd4, bd4) = params
    latent = eps.shape[-1]
    B = x.shape[0]

    def dense(h, w, b, relu=True):
        y = jnp.dot(h.astype(compute_dtype), w.astype(compute_dtype),
                    preferred_element_type=jnp.float32) + b
        return jnp.maximum(y, 0.0) if relu else y

    h = x.reshape(B, -1).astype(jnp.float32)
    h = dense(h, we1, be1)
    h = dense(h, we2, be2)
    h = dense(h, we3, be3)
    y4 = dense(h, we4, be4, relu=False)
    mu, log_sigma = y4[:, :latent], y4[:, latent:]
    z = mu + jnp.exp(log_sigma) * eps
    g = dense(z, wd1, bd1)
    g = dense(g, wd2, bd2)
    g = dense(g, wd3, bd3)
    g = dense(g, wd4, bd4, relu=False)
    return g.reshape(x.shape), mu, log_sigma, z


# ---------------------------------- main ----------------------------------- #

if __name__ == "__main__":
    key = jax.random.PRNGKey(0)
    k_x, k_eps, k_params = jax.random.split(key, 3)

    B = 2
    x = jax.random.uniform(k_x, (B,) + INPUT_SHAPE, jnp.float32)         # NCHW
    eps = jax.random.normal(k_eps, (B, LATENT_FEATURES), jnp.float32)    # N(0, I)

    obs_features = int(math.prod(INPUT_SHAPE))
    params = init_vae_params(k_params, obs_features, LATENT_FEATURES)
    packed = pack_params(params)

    out = jax.jit(vae_forward)(x, packed, eps)
    jax.block_until_ready(out)

    # 1) tight check vs a reference emulating the same bf16-in / f32-acc math
    px_b, mu_b, ls_b, z_b = vae_forward_ref(x, params, eps,
                                            compute_dtype=jnp.bfloat16)
    assert jnp.allclose(out["px_loc"], px_b, atol=1e-2, rtol=1e-2)
    assert jnp.allclose(out["qz_mu"], mu_b, atol=1e-2, rtol=1e-2)
    assert jnp.allclose(out["qz_log_sigma"], ls_b, atol=1e-2, rtol=1e-2)
    assert jnp.allclose(out["z"], z_b, atol=1e-2, rtol=1e-2)

    # 2) loose check vs the full-f32 reference (bf16 weights are an intentional
    #    precision trade per the perf review)
    px_f, mu_f, ls_f, z_f = vae_forward_ref(x, params, eps,
                                            compute_dtype=jnp.float32)
    assert jnp.allclose(out["px_loc"], px_f, atol=1e-1, rtol=1e-1)
    assert jnp.allclose(out["qz_mu"], mu_f, atol=1e-1, rtol=1e-1)
    assert jnp.allclose(out["qz_log_sigma"], ls_f, atol=1e-1, rtol=1e-1)
    assert jnp.allclose(out["z"], z_f, atol=1e-1, rtol=1e-1)

    print("KERNEL_OK")
</pallas_src>

<mosaic_0001>
module attributes {stable_mosaic.version = 11 : i64} {
  func.func @vae_kernel(%arg0: i32, %arg1: memref<2x1024xf32, #tpu.memory_space<vmem>>, %arg2: memref<2x128xf32, #tpu.memory_space<vmem>>, %arg3: memref<1024x512xbf16, #tpu.memory_space<vmem>>, %arg4: memref<1x512xf32, #tpu.memory_space<vmem>>, %arg5: memref<512x256xbf16, #tpu.memory_space<vmem>>, %arg6: memref<1x256xf32, #tpu.memory_space<vmem>>, %arg7: memref<256x128xbf16, #tpu.memory_space<vmem>>, %arg8: memref<1x128xf32, #tpu.memory_space<vmem>>, %arg9: memref<128x256xbf16, #tpu.memory_space<vmem>>, %arg10: memref<1x256xf32, #tpu.memory_space<vmem>>, %arg11: memref<128x128xbf16, #tpu.memory_space<vmem>>, %arg12: memref<1x128xf32, #tpu.memory_space<vmem>>, %arg13: memref<128x256xbf16, #tpu.memory_space<vmem>>, %arg14: memref<1x256xf32, #tpu.memory_space<vmem>>, %arg15: memref<256x512xbf16, #tpu.memory_space<vmem>>, %arg16: memref<1x512xf32, #tpu.memory_space<vmem>>, %arg17: memref<512x1024xbf16, #tpu.memory_space<vmem>>, %arg18: memref<1x1024xf32, #tpu.memory_space<vmem>>, %arg19: memref<2x1024xf32, #tpu.memory_space<vmem>>, %arg20: memref<2x384xf32, #tpu.memory_space<vmem>>) attributes {dimension_semantics = [#tpu.dimension_semantics<parallel>], iteration_bounds = array<i64: 1>, scalar_prefetch = 0 : i64, scratch_operands = 0 : i64, tpu.core_type = #tpu.core_type<tc>, window_params = [{transform_indices = @transform_0, window_bounds = array<i64: 2, 1024>}, {transform_indices = @transform_1, window_bounds = array<i64: 2, 128>}, {pipeline_mode = #tpu.pipeline_mode<synchronous>, transform_indices = @transform_2, window_bounds = array<i64: 1024, 512>}, {pipeline_mode = #tpu.pipeline_mode<synchronous>, transform_indices = @transform_3, window_bounds = array<i64: 1, 512>}, {pipeline_mode = #tpu.pipeline_mode<synchronous>, transform_indices = @transform_4, window_bounds = array<i64: 512, 256>}, {pipeline_mode = #tpu.pipeline_mode<synchronous>, transform_indices = @transform_5, window_bounds = array<i64: 1, 256>}, {pipeline_mode = #tpu.pipeline_mode<synchronous>, transform_indices = @transform_6, window_bounds = array<i64: 256, 128>}, {pipeline_mode = #tpu.pipeline_mode<synchronous>, transform_indices = @transform_7, window_bounds = array<i64: 1, 128>}, {pipeline_mode = #tpu.pipeline_mode<synchronous>, transform_indices = @transform_8, window_bounds = array<i64: 128, 256>}, {pipeline_mode = #tpu.pipeline_mode<synchronous>, transform_indices = @transform_9, window_bounds = array<i64: 1, 256>}, {pipeline_mode = #tpu.pipeline_mode<synchronous>, transform_indices = @transform_10, window_bounds = array<i64: 128, 128>}, {pipeline_mode = #tpu.pipeline_mode<synchronous>, transform_indices = @transform_11, window_bounds = array<i64: 1, 128>}, {pipeline_mode = #tpu.pipeline_mode<synchronous>, transform_indices = @transform_12, window_bounds = array<i64: 128, 256>}, {pipeline_mode = #tpu.pipeline_mode<synchronous>, transform_indices = @transform_13, window_bounds = array<i64: 1, 256>}, {pipeline_mode = #tpu.pipeline_mode<synchronous>, transform_indices = @transform_14, window_bounds = array<i64: 256, 512>}, {pipeline_mode = #tpu.pipeline_mode<synchronous>, transform_indices = @transform_15, window_bounds = array<i64: 1, 512>}, {pipeline_mode = #tpu.pipeline_mode<synchronous>, transform_indices = @transform_16, window_bounds = array<i64: 512, 1024>}, {pipeline_mode = #tpu.pipeline_mode<synchronous>, transform_indices = @transform_17, window_bounds = array<i64: 1, 1024>}, {transform_indices = @transform_18, window_bounds = array<i64: 2, 1024>}, {transform_indices = @transform_19, window_bounds = array<i64: 2, 384>}]} {
    %c0 = arith.constant 0 : index
    %c0_0 = arith.constant 0 : index
    %0 = vector.load %arg1[%c0, %c0_0] : memref<2x1024xf32, #tpu.memory_space<vmem>>, vector<2x1024xf32>
    %1 = arith.truncf %0 : vector<2x1024xf32> to vector<2x1024xbf16>
    %c0_1 = arith.constant 0 : index
    %c0_2 = arith.constant 0 : index
    %2 = vector.load %arg3[%c0_1, %c0_2] : memref<1024x512xbf16, #tpu.memory_space<vmem>>, vector<1024x512xbf16>
    %cst = arith.constant dense<0.000000e+00> : vector<2x512xf32>
    %3 = tpu.matmul %1, %2, %cst {dimension_numbers = #tpu.dot_dimension_numbers<[1], [0], [0], [1], [0, 0, 1, 1], [], []>} : vector<2x1024xbf16>, vector<1024x512xbf16>, vector<2x512xf32> -> vector<2x512xf32>
    %c0_3 = arith.constant 0 : index
    %c0_4 = arith.constant 0 : index
    %4 = vector.load %arg4[%c0_3, %c0_4] : memref<1x512xf32, #tpu.memory_space<vmem>>, vector<1x512xf32>
    %5 = vector.broadcast %4 : vector<1x512xf32> to vector<2x512xf32>
    %6 = arith.addf %3, %5 : vector<2x512xf32>
    %cst_5 = arith.constant 0.000000e+00 : f32
    %7 = vector.broadcast %cst_5 : f32 to vector<2x512xf32>
    %8 = arith.maximumf %6, %7 : vector<2x512xf32>
    %9 = arith.truncf %8 : vector<2x512xf32> to vector<2x512xbf16>
    %c0_6 = arith.constant 0 : index
    %c0_7 = arith.constant 0 : index
    %10 = vector.load %arg5[%c0_6, %c0_7] : memref<512x256xbf16, #tpu.memory_space<vmem>>, vector<512x256xbf16>
    %cst_8 = arith.constant dense<0.000000e+00> : vector<2x256xf32>
    %11 = tpu.matmul %9, %10, %cst_8 {dimension_numbers = #tpu.dot_dimension_numbers<[1], [0], [0], [1], [0, 0, 1, 1], [], []>} : vector<2x512xbf16>, vector<512x256xbf16>, vector<2x256xf32> -> vector<2x256xf32>
    %c0_9 = arith.constant 0 : index
    %c0_10 = arith.constant 0 : index
    %12 = vector.load %arg6[%c0_9, %c0_10] : memref<1x256xf32, #tpu.memory_space<vmem>>, vector<1x256xf32>
    %13 = vector.broadcast %12 : vector<1x256xf32> to vector<2x256xf32>
    %14 = arith.addf %11, %13 : vector<2x256xf32>
    %cst_11 = arith.constant 0.000000e+00 : f32
    %15 = vector.broadcast %cst_11 : f32 to vector<2x256xf32>
    %16 = arith.maximumf %14, %15 : vector<2x256xf32>
    %17 = arith.truncf %16 : vector<2x256xf32> to vector<2x256xbf16>
    %c0_12 = arith.constant 0 : index
    %c0_13 = arith.constant 0 : index
    %18 = vector.load %arg7[%c0_12, %c0_13] : memref<256x128xbf16, #tpu.memory_space<vmem>>, vector<256x128xbf16>
    %cst_14 = arith.constant dense<0.000000e+00> : vector<2x128xf32>
    %19 = tpu.matmul %17, %18, %cst_14 {dimension_numbers = #tpu.dot_dimension_numbers<[1], [0], [0], [1], [0, 0, 1, 1], [], []>} : vector<2x256xbf16>, vector<256x128xbf16>, vector<2x128xf32> -> vector<2x128xf32>
    %c0_15 = arith.constant 0 : index
    %c0_16 = arith.constant 0 : index
    %20 = vector.load %arg8[%c0_15, %c0_16] : memref<1x128xf32, #tpu.memory_space<vmem>>, vector<1x128xf32>
    %21 = vector.broadcast %20 : vector<1x128xf32> to vector<2x128xf32>
    %22 = arith.addf %19, %21 : vector<2x128xf32>
    %cst_17 = arith.constant 0.000000e+00 : f32
    %23 = vector.broadcast %cst_17 : f32 to vector<2x128xf32>
    %24 = arith.maximumf %22, %23 : vector<2x128xf32>
    %25 = arith.truncf %24 : vector<2x128xf32> to vector<2x128xbf16>
    %c0_18 = arith.constant 0 : index
    %c0_19 = arith.constant 0 : index
    %26 = vector.load %arg9[%c0_18, %c0_19] : memref<128x256xbf16, #tpu.memory_space<vmem>>, vector<128x256xbf16>
    %cst_20 = arith.constant dense<0.000000e+00> : vector<2x256xf32>
    %27 = tpu.matmul %25, %26, %cst_20 {dimension_numbers = #tpu.dot_dimension_numbers<[1], [0], [0], [1], [0, 0, 1, 1], [], []>} : vector<2x128xbf16>, vector<128x256xbf16>, vector<2x256xf32> -> vector<2x256xf32>
    %c0_21 = arith.constant 0 : index
    %c0_22 = arith.constant 0 : index
    %28 = vector.load %arg10[%c0_21, %c0_22] : memref<1x256xf32, #tpu.memory_space<vmem>>, vector<1x256xf32>
    %29 = vector.broadcast %28 : vector<1x256xf32> to vector<2x256xf32>
    %30 = arith.addf %27, %29 : vector<2x256xf32>
    %31 = vector.extract_strided_slice %30 {offsets = [0, 0], sizes = [2, 128], strides = [1, 1]} : vector<2x256xf32> to vector<2x128xf32>
    %32 = vector.extract_strided_slice %30 {offsets = [0, 128], sizes = [2, 128], strides = [1, 1]} : vector<2x256xf32> to vector<2x128xf32>
    %33 = math.exp %32 : vector<2x128xf32>
    %c0_23 = arith.constant 0 : index
    %c0_24 = arith.constant 0 : index
    %34 = vector.load %arg2[%c0_23, %c0_24] : memref<2x128xf32, #tpu.memory_space<vmem>>, vector<2x128xf32>
    %35 = arith.mulf %33, %34 : vector<2x128xf32>
    %36 = arith.addf %31, %35 : vector<2x128xf32>
    %37 = arith.truncf %36 : vector<2x128xf32> to vector<2x128xbf16>
    %c0_25 = arith.constant 0 : index
    %c0_26 = arith.constant 0 : index
    %38 = vector.load %arg11[%c0_25, %c0_26] : memref<128x128xbf16, #tpu.memory_space<vmem>>, vector<128x128xbf16>
    %cst_27 = arith.constant dense<0.000000e+00> : vector<2x128xf32>
    %39 = tpu.matmul %37, %38, %cst_27 {dimension_numbers = #tpu.dot_dimension_numbers<[1], [0], [0], [1], [0, 0, 1, 1], [], []>} : vector<2x128xbf16>, vector<128x128xbf16>, vector<2x128xf32> -> vector<2x128xf32>
    %c0_28 = arith.constant 0 : index
    %c0_29 = arith.constant 0 : index
    %40 = vector.load %arg12[%c0_28, %c0_29] : memref<1x128xf32, #tpu.memory_space<vmem>>, vector<1x128xf32>
    %41 = vector.broadcast %40 : vector<1x128xf32> to vector<2x128xf32>
    %42 = arith.addf %39, %41 : vector<2x128xf32>
    %cst_30 = arith.constant 0.000000e+00 : f32
    %43 = vector.broadcast %cst_30 : f32 to vector<2x128xf32>
    %44 = arith.maximumf %42, %43 : vector<2x128xf32>
    %45 = arith.truncf %44 : vector<2x128xf32> to vector<2x128xbf16>
    %c0_31 = arith.constant 0 : index
    %c0_32 = arith.constant 0 : index
    %46 = vector.load %arg13[%c0_31, %c0_32] : memref<128x256xbf16, #tpu.memory_space<vmem>>, vector<128x256xbf16>
    %cst_33 = arith.constant dense<0.000000e+00> : vector<2x256xf32>
    %47 = tpu.matmul %45, %46, %cst_33 {dimension_numbers = #tpu.dot_dimension_numbers<[1], [0], [0], [1], [0, 0, 1, 1], [], []>} : vector<2x128xbf16>, vector<128x256xbf16>, vector<2x256xf32> -> vector<2x256xf32>
    %c0_34 = arith.constant 0 : index
    %c0_35 = arith.constant 0 : index
    %48 = vector.load %arg14[%c0_34, %c0_35] : memref<1x256xf32, #tpu.memory_space<vmem>>, vector<1x256xf32>
    %49 = vector.broadcast %48 : vector<1x256xf32> to vector<2x256xf32>
    %50 = arith.addf %47, %49 : vector<2x256xf32>
    %cst_36 = arith.constant 0.000000e+00 : f32
    %51 = vector.broadcast %cst_36 : f32 to vector<2x256xf32>
    %52 = arith.maximumf %50, %51 : vector<2x256xf32>
    %53 = arith.truncf %52 : vector<2x256xf32> to vector<2x256xbf16>
    %c0_37 = arith.constant 0 : index
    %c0_38 = arith.constant 0 : index
    %54 = vector.load %arg15[%c0_37, %c0_38] : memref<256x512xbf16, #tpu.memory_space<vmem>>, vector<256x512xbf16>
    %cst_39 = arith.constant dense<0.000000e+00> : vector<2x512xf32>
    %55 = tpu.matmul %53, %54, %cst_39 {dimension_numbers = #tpu.dot_dimension_numbers<[1], [0], [0], [1], [0, 0, 1, 1], [], []>} : vector<2x256xbf16>, vector<256x512xbf16>, vector<2x512xf32> -> vector<2x512xf32>
    %c0_40 = arith.constant 0 : index
    %c0_41 = arith.constant 0 : index
    %56 = vector.load %arg16[%c0_40, %c0_41] : memref<1x512xf32, #tpu.memory_space<vmem>>, vector<1x512xf32>
    %57 = vector.broadcast %56 : vector<1x512xf32> to vector<2x512xf32>
    %58 = arith.addf %55, %57 : vector<2x512xf32>
    %cst_42 = arith.constant 0.000000e+00 : f32
    %59 = vector.broadcast %cst_42 : f32 to vector<2x512xf32>
    %60 = arith.maximumf %58, %59 : vector<2x512xf32>
    %61 = arith.truncf %60 : vector<2x512xf32> to vector<2x512xbf16>
    %c0_43 = arith.constant 0 : index
    %c0_44 = arith.constant 0 : index
    %62 = vector.load %arg17[%c0_43, %c0_44] : memref<512x1024xbf16, #tpu.memory_space<vmem>>, vector<512x1024xbf16>
    %cst_45 = arith.constant dense<0.000000e+00> : vector<2x1024xf32>
    %63 = tpu.matmul %61, %62, %cst_45 {dimension_numbers = #tpu.dot_dimension_numbers<[1], [0], [0], [1], [0, 0, 1, 1], [], []>} : vector<2x512xbf16>, vector<512x1024xbf16>, vector<2x1024xf32> -> vector<2x1024xf32>
    %c0_46 = arith.constant 0 : index
    %c0_47 = arith.constant 0 : index
    %64 = vector.load %arg18[%c0_46, %c0_47] : memref<1x1024xf32, #tpu.memory_space<vmem>>, vector<1x1024xf32>
    %65 = vector.broadcast %64 : vector<1x1024xf32> to vector<2x1024xf32>
    %66 = arith.addf %63, %65 : vector<2x1024xf32>
    %c0_48 = arith.constant 0 : index
    %c0_49 = arith.constant 0 : index
    %67 = vector.load %arg19[%c0_48, %c0_49] : memref<2x1024xf32, #tpu.memory_space<vmem>>, vector<2x1024xf32>
    tpu.vector_store %arg19[%c0_48, %c0_49], %66 {strides = array<i32>} : memref<2x1024xf32, #tpu.memory_space<vmem>>, vector<2x1024xf32>,
    %c0_50 = arith.constant 0 : index
    %c0_51 = arith.constant 0 : index
    %68 = vector.load %arg20[%c0_50, %c0_51] : memref<2x384xf32, #tpu.memory_space<vmem>>, vector<2x256xf32>
    tpu.vector_store %arg20[%c0_50, %c0_51], %30 {strides = array<i32>} : memref<2x384xf32, #tpu.memory_space<vmem>>, vector<2x256xf32>,
    %c0_52 = arith.constant 0 : index
    %c256 = arith.constant 256 : index
    %69 = vector.load %arg20[%c0_52, %c256] : memref<2x384xf32, #tpu.memory_space<vmem>>, vector<2x128xf32>
    tpu.vector_store %arg20[%c0_52, %c256], %36 {strides = array<i32>} : memref<2x384xf32, #tpu.memory_space<vmem>>, vector<2x128xf32>,
    return
  }
  func.func @transform_0(%arg0: i32) -> (i32, i32) {
    %c0_i32 = arith.constant 0 : i32
    %c0_i32_0 = arith.constant 0 : i32
    return %arg0, %c0_i32 : i32, i32
  }
  func.func @transform_1(%arg0: i32) -> (i32, i32) {
    %c0_i32 = arith.constant 0 : i32
    %c0_i32_0 = arith.constant 0 : i32
    return %arg0, %c0_i32 : i32, i32
  }
  func.func @transform_2(%arg0: i32) -> (i32, i32) {
    %c0_i32 = arith.constant 0 : i32
    %c0_i32_0 = arith.constant 0 : i32
    %c0_i32_1 = arith.constant 0 : i32
    return %c0_i32, %c0_i32_0 : i32, i32
  }
  func.func @transform_3(%arg0: i32) -> (i32, i32) {
    %c0_i32 = arith.constant 0 : i32
    %c0_i32_0 = arith.constant 0 : i32
    %c0_i32_1 = arith.constant 0 : i32
    return %c0_i32, %c0_i32_0 : i32, i32
  }
  func.func @transform_4(%arg0: i32) -> (i32, i32) {
    %c0_i32 = arith.constant 0 : i32
    %c0_i32_0 = arith.constant 0 : i32
    %c0_i32_1 = arith.constant 0 : i32
    return %c0_i32, %c0_i32_0 : i32, i32
  }
  func.func @transform_5(%arg0: i32) -> (i32, i32) {
    %c0_i32 = arith.constant 0 : i32
    %c0_i32_0 = arith.constant 0 : i32
    %c0_i32_1 = arith.constant 0 : i32
    return %c0_i32, %c0_i32_0 : i32, i32
  }
  func.func @transform_6(%arg0: i32) -> (i32, i32) {
    %c0_i32 = arith.constant 0 : i32
    %c0_i32_0 = arith.constant 0 : i32
    %c0_i32_1 = arith.constant 0 : i32
    return %c0_i32, %c0_i32_0 : i32, i32
  }
  func.func @transform_7(%arg0: i32) -> (i32, i32) {
    %c0_i32 = arith.constant 0 : i32
    %c0_i32_0 = arith.constant 0 : i32
    %c0_i32_1 = arith.constant 0 : i32
    return %c0_i32, %c0_i32_0 : i32, i32
  }
  func.func @transform_8(%arg0: i32) -> (i32, i32) {
    %c0_i32 = arith.constant 0 : i32
    %c0_i32_0 = arith.constant 0 : i32
    %c0_i32_1 = arith.constant 0 : i32
    return %c0_i32, %c0_i32_0 : i32, i32
  }
  func.func @transform_9(%arg0: i32) -> (i32, i32) {
    %c0_i32 = arith.constant 0 : i32
    %c0_i32_0 = arith.constant 0 : i32
    %c0_i32_1 = arith.constant 0 : i32
    return %c0_i32, %c0_i32_0 : i32, i32
  }
  func.func @transform_10(%arg0: i32) -> (i32, i32) {
    %c0_i32 = arith.constant 0 : i32
    %c0_i32_0 = arith.constant 0 : i32
    %c0_i32_1 = arith.constant 0 : i32
    return %c0_i32, %c0_i32_0 : i32, i32
  }
  func.func @transform_11(%arg0: i32) -> (i32, i32) {
    %c0_i32 = arith.constant 0 : i32
    %c0_i32_0 = arith.constant 0 : i32
    %c0_i32_1 = arith.constant 0 : i32
    return %c0_i32, %c0_i32_0 : i32, i32
  }
  func.func @transform_12(%arg0: i32) -> (i32, i32) {
    %c0_i32 = arith.constant 0 : i32
    %c0_i32_0 = arith.constant 0 : i32
    %c0_i32_1 = arith.constant 0 : i32
    return %c0_i32, %c0_i32_0 : i32, i32
  }
  func.func @transform_13(%arg0: i32) -> (i32, i32) {
    %c0_i32 = arith.constant 0 : i32
    %c0_i32_0 = arith.constant 0 : i32
    %c0_i32_1 = arith.constant 0 : i32
    return %c0_i32, %c0_i32_0 : i32, i32
  }
  func.func @transform_14(%arg0: i32) -> (i32, i32) {
    %c0_i32 = arith.constant 0 : i32
    %c0_i32_0 = arith.constant 0 : i32
    %c0_i32_1 = arith.constant 0 : i32
    return %c0_i32, %c0_i32_0 : i32, i32
  }
  func.func @transform_15(%arg0: i32) -> (i32, i32) {
    %c0_i32 = arith.constant 0 : i32
    %c0_i32_0 = arith.constant 0 : i32
    %c0_i32_1 = arith.constant 0 : i32
    return %c0_i32, %c0_i32_0 : i32, i32
  }
  func.func @transform_16(%arg0: i32) -> (i32, i32) {
    %c0_i32 = arith.constant 0 : i32
    %c0_i32_0 = arith.constant 0 : i32
    %c0_i32_1 = arith.constant 0 : i32
    return %c0_i32, %c0_i32_0 : i32, i32
  }
  func.func @transform_17(%arg0: i32) -> (i32, i32) {
    %c0_i32 = arith.constant 0 : i32
    %c0_i32_0 = arith.constant 0 : i32
    %c0_i32_1 = arith.constant 0 : i32
    return %c0_i32, %c0_i32_0 : i32, i32
  }
  func.func @transform_18(%arg0: i32) -> (i32, i32) {
    %c0_i32 = arith.constant 0 : i32
    %c0_i32_0 = arith.constant 0 : i32
    return %arg0, %c0_i32 : i32, i32
  }
  func.func @transform_19(%arg0: i32) -> (i32, i32) {
    %c0_i32 = arith.constant 0 : i32
    %c0_i32_0 = arith.constant 0 : i32
    return %arg0, %c0_i32 : i32, i32
  }
}

</mosaic_0001>

<bundles_post_ra>
// kernel: vae_forward.1
= control target key start
LH: loop header
LB: loop body
LE: loop exit
PB: predicated region body
PF: predicated region fallthrough
CT: control target
= control target key end

     0   :  { %s7602_s0 = inlined_call_operand.vmem [shape: f32[2,1024], index: 0, kind: input, shape index: {}]   ;;  %s7603_s1 = inlined_call_operand.vmem [shape: f32[2,128], index: 1, kind: input, shape index: {}]   ;;  %s7604_s2 = inlined_call_operand.hbm [shape: bf16[1024,512], index: 2, kind: input, shape index: {}]   ;;  %s7605_s3 = inlined_call_operand.vmem [shape: f32[1,512], index: 3, kind: input, shape index: {}]   ;;  %s7606_s4 = inlined_call_operand.hbm [shape: bf16[512,256], index: 4, kind: input, shape index: {}]   ;;  %s7607_s5 = inlined_call_operand.vmem [shape: f32[1,256], index: 5, kind: input, shape index: {}]   ;;  %s7608_s6 = inlined_call_operand.vmem [shape: bf16[256,128], index: 6, kind: input, shape index: {}]   ;;  %s7609_s7 = inlined_call_operand.vmem [shape: f32[1,128], index: 7, kind: input, shape index: {}]   ;;  %s7610_s8 = inlined_call_operand.hbm [shape: bf16[128,256], index: 8, kind: input, shape index: {}]   ;;  %s7611_s9 = inlined_call_operand.vmem [shape: f32[1,256], index: 9, kind: input, shape index: {}]   ;;  %s7612_s10 = inlined_call_operand.hbm [shape: bf16[128,128], index: 10, kind: input, shape index: {}]   ;;  %s7613_s11 = inlined_call_operand.vmem [shape: f32[1,128], index: 11, kind: input, shape index: {}]   ;;  %s7614_s12 = inlined_call_operand.hbm [shape: bf16[128,256], index: 12, kind: input, shape index: {}]   ;;  %s7615_s13 = inlined_call_operand.vmem [shape: f32[1,256], index: 13, kind: input, shape index: {}]   ;;  %s7616_s14 = inlined_call_operand.hbm [shape: bf16[256,512], index: 14, kind: input, shape index: {}]   ;;  %s7617_s15 = inlined_call_operand.vmem [shape: f32[1,512], index: 15, kind: input, shape index: {}]   ;;  %s7618_s16 = inlined_call_operand.hbm [shape: bf16[512,1024], index: 16, kind: input, shape index: {}]   ;;  %s7619_s17 = inlined_call_operand.vmem [shape: f32[1,1024], index: 17, kind: input, shape index: {}]   ;;  %s7620_s18 = inlined_call_operand.vmem [shape: f32[2,1024], index: 18, kind: output, shape index: {0}]   ;;  %s7621_s19 = inlined_call_operand.vmem [shape: f32[2,384], index: 19, kind: output, shape index: {1}]  }
   0x1   :  { %7623 = sst [smem:[#allocation17_spill]] %s7602_s0 }
   0x2   :  { %7624 = sst [smem:[#allocation18_spill]] %s7603_s1 }
   0x3   :  { %7625 = sst [smem:[#allocation19_spill]] %s7604_s2 }
   0x4   :  { %7626 = sst [smem:[#allocation20_spill]] %s7605_s3 }
   0x5   :  { %25 = vsyncpa [#allocation3], 0 }
   0x6   :  { %26 = vsyncpa [#allocation5], 0 }
   0x7   :  { %27 = vsyncpa [#allocation8], 0 }
   0x8   :  { %28 = vsyncpa [#allocation11], 0  ;;  %s7227_s0 = smov [#allocation4]  }
   0x9   :  { %s52_s30 = sshll.u32 %s7227_s0, 4  ;;  %s53_s30 = int_to_ptr.vmem [resolvable:$true] %s52_s30 }
   0xa   :  { %s7087_s20 = scalar_lea.vmem %s53_s30, 8192  ;;  %p7092_p1 = scmp.lt.s32.totalorder %s53_s30, %s53_s30 }
   0xb   :  { %p7088_p0 = scmp.ne.s32.totalorder %s53_s30, %s7087_s20  ;;  %p7093_p2 = scmp.lt.s32.totalorder %s7087_s20, %s7087_s20 }
   0xd   :  { %p7094_p3 = por %p7093_p2, %p7092_p1 }
   0xf   :  { %p7095_p4 = pnand %p7094_p3, %p7088_p0 }
  0x11   :  { %7098 = shalt.err (!%p7095_p4)
}
  0x12   :  { %s7228_s21 = smov 128   ;;  %s7229_s1 = smov 8  }
  0x13   :  { %58 = dma.hbm_to_vmem [thread:$0]  %s7606_s4, 8192, %s53_s30, [#allocation5], %s7228_s21, %s7228_s21, %s7229_s1  }
  0x14   :  { %s7230_s23 = smov [#allocation7]  }
  0x15   :  { %s84_s24 = sshll.u32 %s7230_s23, 4  ;;  %s85_s24 = int_to_ptr.vmem [resolvable:$true] %s84_s24 }
  0x16   :  { %s7107_s25 = scalar_lea.vmem %s85_s24, 1024  ;;  %p7112_p6 = scmp.lt.s32.totalorder %s85_s24, %s85_s24 }
  0x17   :  { %p7108_p5 = scmp.ne.s32.totalorder %s85_s24, %s7107_s25  ;;  %p7113_p7 = scmp.lt.s32.totalorder %s7107_s25, %s7107_s25 }
  0x19   :  { %p7114_p8 = por %p7113_p7, %p7112_p6 }
  0x1b   :  { %p7115_p9 = pnand %p7114_p8, %p7108_p5 }
  0x1d   :  { %7118 = shalt.err (!%p7115_p9)
}
  0x1e   :  { %s7231_s3 = smov 64   ;;  %s7232_s26 = smov 4  }
  0x1f   :  { %90 = dma.hbm_to_vmem [thread:$0]  %s7612_s10, 1024, %s85_s24, [#allocation8], %s7231_s3, %s7231_s3, %s7232_s26  }
  0x20   :  { %s7233_s29 = smov [#allocation10]   ;;  %s7234_s20 = smov [#allocation2]  }
  0x21   :  { %s112_s0 = sshll.u32 %s7233_s29, 4  ;;  %s38_s4 = sshll.u32 %s7234_s20, 4  ;;  %s113_s0 = int_to_ptr.vmem [resolvable:$true] %s112_s0  ;;  %s39_s4 = int_to_ptr.vmem [resolvable:$true] %s38_s4 }
  0x22   :  { %s7127_s30 = scalar_lea.vmem %s113_s0, 8192  ;;  %p7132_p11 = scmp.lt.s32.totalorder %s113_s0, %s113_s0 }
  0x23   :  { %p7128_p10 = scmp.ne.s32.totalorder %s113_s0, %s7127_s30  ;;  %p7133_p12 = scmp.lt.s32.totalorder %s7127_s30, %s7127_s30 }
  0x25   :  { %p7134_p13 = por %p7133_p12, %p7132_p11 }
  0x27   :  { %p7135_p0 = pnand %p7134_p13, %p7128_p10 }
  0x29   :  { %7138 = shalt.err (!%p7135_p0)
}
  0x2a   :  { %s7235_s22 = smov 256   ;;  %s7236_s2 = smov 16  }
  0x2b   :  { %118 = dma.hbm_to_vmem [thread:$0]  %s7616_s14, 8192, %s113_s0, [#allocation11], %s7235_s22, %s7235_s22, %s7236_s2  }
  0x2c   :  { %s7147_s10 = scalar_lea.vmem %s39_s4, 32768  ;;  %p7152_p2 = scmp.lt.s32.totalorder %s39_s4, %s39_s4 }
  0x2d   :  { %p7148_p1 = scmp.ne.s32.totalorder %s39_s4, %s7147_s10  ;;  %p7153_p3 = scmp.lt.s32.totalorder %s7147_s10, %s7147_s10 }
  0x2f   :  { %p7154_p4 = por %p7153_p3, %p7152_p2 }
  0x31   :  { %p7155_p5 = pnand %p7154_p4, %p7148_p1 }
  0x33   :  { %7158 = shalt.err (!%p7155_p5)
}
  0x34   :  { %s7627_s26 = sld [smem:[#allocation19_spill]]  ;;  %s7237_s27 = smov [#allocation6]  }
  0x35   :  { %s70_s28 = sshll.u32 %s7237_s27, 4  ;;  %s7238_s29 = smov [#allocation9]   ;;  %s71_s28 = int_to_ptr.vmem [resolvable:$true] %s70_s28 }
  0x36   :  { %s98_s20 = sshll.u32 %s7238_s29, 4  ;;  %s7167_s30 = scalar_lea.vmem %s71_s28, 2048  ;;  %s99_s20 = int_to_ptr.vmem [resolvable:$true] %s98_s20 }
  0x37   :  { %p7168_p6 = scmp.ne.s32.totalorder %s71_s28, %s7167_s30  ;;  %p7172_p7 = scmp.lt.s32.totalorder %s71_s28, %s71_s28 }
  0x38   :  { %p7173_p8 = scmp.lt.s32.totalorder %s7167_s30, %s7167_s30 }
  0x3a   :  { %44 = dma.hbm_to_vmem [thread:$0]  %s7627_s26, 32768, %s39_s4, [#allocation3], %s7235_s22, %s7235_s22, %s7236_s2  }
  0x3b   :  { %p7174_p9 = por %p7173_p8, %p7172_p7 }
  0x3d   :  { %p7175_p10 = pnand %p7174_p9, %p7168_p6 }
  0x3f   :  { %7178 = shalt.err (!%p7175_p10)
}
  0x40   :  { %76 = dma.hbm_to_vmem [thread:$0]  %s7610_s8, 2048, %s71_s28, [#allocation5], %s7228_s21, %s7228_s21, %s7229_s1  }
  0x41   :  { %s7187_s4 = scalar_lea.vmem %s99_s20, 2048  ;;  %p7192_p12 = scmp.lt.s32.totalorder %s99_s20, %s99_s20 }
  0x42   :  { %p7188_p11 = scmp.ne.s32.totalorder %s99_s20, %s7187_s4  ;;  %p7193_p13 = scmp.lt.s32.totalorder %s7187_s4, %s7187_s4 }
  0x44   :  { %p7194_p0 = por %p7193_p13, %p7192_p12 }
  0x46   :  { %p7195_p1 = pnand %p7194_p0, %p7188_p11 }
  0x48   :  { %7198 = shalt.err (!%p7195_p1)
}
  0x49   :  { %104 = dma.hbm_to_vmem [thread:$0]  %s7614_s12, 2048, %s99_s20, [#allocation8], %s7228_s21, %s7228_s21, %s7229_s1  }
  0x4a   :  { %s7239_s23 = smov [#allocation12]  }
  0x4b   :  { %s126_s25 = sshll.u32 %s7239_s23, 4  ;;  %s127_s25 = int_to_ptr.vmem [resolvable:$true] %s126_s25 }
  0x4c   :  { %s7207_s10 = scalar_lea.vmem %s127_s25, 32768  ;;  %p7212_p3 = scmp.lt.s32.totalorder %s127_s25, %s127_s25 }
  0x4d   :  { %p7208_p2 = scmp.ne.s32.totalorder %s127_s25, %s7207_s10  ;;  %p7213_p4 = scmp.lt.s32.totalorder %s7207_s10, %s7207_s10 }
  0x4f   :  { %p7214_p5 = por %p7213_p4, %p7212_p3 }
  0x51   :  { %p7215_p6 = pnand %p7214_p5, %p7208_p2 }
  0x53   :  { %7218 = shalt.err (!%p7215_p6)
}
  0x54   :  { %s7240_s8 = smov 512   ;;  %s7241_s24 = smov 32  }
  0x55   :  { %132 = dma.hbm_to_vmem [thread:$0]  %s7618_s16, 32768, %s127_s25, [#allocation11], %s7240_s8, %s7240_s8, %s7241_s24  }
  0x56   :  { %7219 = dma.done.wait [#allocation3], 32768  }
  0x57   :  { %7220 = vsyncadd [#allocation3], 4294934528 }
  0x58   :  { %7221 = dma.done.wait [#allocation5], 10240  }
  0x59   :  { %7222 = vsyncadd [#allocation5], 4294957056 }
  0x5a   :  { %7223 = dma.done.wait [#allocation8], 3072  }
  0x5b   :  { %7224 = vsyncadd [#allocation8], 4294964224 }
  0x5c   :  { %7225 = dma.done.wait [#allocation11], 40960  }
  0x5d   :  { %7226 = vsyncadd [#allocation11], 4294926336  ;;  %v6427_v0 = vld [vmem:[#allocation2 + $0xe4] ss:$16 sps:$4 sm:$0xff]   ;;  %v6431_v2 = vld [vmem:[#allocation2 + $0xe0] ss:$16 sps:$4 sm:$0xff]   ;;  %v165_v38 = vlaneseq }
  0x5e   :  { %v6429_v1 = vld [vmem:[#allocation2 + $0x2e4] ss:$16 sps:$4 sm:$0xff]   ;;  %1769 = vmatprep.subr.bf16.mxu0 %v6427_v0  ;;  %v6432_v3 = vld [vmem:[#allocation2 + $0x2e0] ss:$16 sps:$4 sm:$0xff]   ;;  %v7242_v36 = vmov 1983009808  }
  0x5f   :  { %1810 = vmatprep.subr.bf16.mxu1 %v6429_v1  ;;  %v6433_v4 = vld [vmem:[#allocation2 + $0xc4] ss:$16 sps:$4 sm:$0xff]   ;;  %1770 = vmatpush1.bf16.msra.mxu0 %v6431_v2  ;;  %v6437_v6 = vld [vmem:[#allocation2 + $0xc0] ss:$16 sps:$4 sm:$0xff]   ;;  %v163_v37 = vunpack.c.l.s4 %v7242_v36  ;;  %v7376_v43 = vshrl.u32 %v165_v38, 7  ;;  %s7628_s21 = sld [smem:[#allocation17_spill]] }
  0x60   :  { %1811 = vmatpush1.bf16.msra.mxu1 %v6432_v3  ;;  %v6435_v5 = vld [vmem:[#allocation2 + $0x2c4] ss:$16 sps:$4 sm:$0xff]   ;;  %1771 = vmatprep.subr.bf16.mxu0 %v6433_v4  ;;  %v6438_v7 = vld [vmem:[#allocation2 + $0x2c0] ss:$16 sps:$4 sm:$0xff]   ;;  %s7629_s20 = sld [smem:[#allocation20_spill]]  ;;  %vm7245_vm0 = vmmov 0  }
  0x61   :  { %1812 = vmatprep.subr.bf16.mxu1 %v6435_v5  ;;  %v6439_v8 = vld [vmem:[#allocation2 + $0xa4] ss:$16 sps:$4 sm:$0xff]   ;;  %v6443_v10 = vld [vmem:[#allocation2 + $0xa0] ss:$16 sps:$4 sm:$0xff]   ;;  %v164_v42 = vunpack.c.0.s8 %v163_v37 }
  0x62   :  { %v6441_v9 = vld [vmem:[#allocation2 + $0x2a4] ss:$16 sps:$4 sm:$0xff]   ;;  %v6444_v11 = vld [vmem:[#allocation2 + $0x2a0] ss:$16 sps:$4 sm:$0xff]  }
  0x63   :  { %1772 = vmatpush1.bf16.msra.mxu0 %v6437_v6  ;;  %v6445_v12 = vld [vmem:[#allocation2 + $0x84] ss:$16 sps:$4 sm:$0xff]   ;;  %v6449_v14 = vld [vmem:[#allocation2 + $0x80] ss:$16 sps:$4 sm:$0xff]   ;;  %v7379_v49 = vsub.s32 %v164_v42, %v7376_v43 }
  0x64   :  { %1813 = vmatpush1.bf16.msra.mxu1 %v6438_v7  ;;  %1773 = vmatprep.subr.bf16.mxu0 %v6439_v8  ;;  %v6447_v13 = vld [vmem:[#allocation2 + $0x284] ss:$16 sps:$4 sm:$0xff]   ;;  %v6450_v15 = vld [vmem:[#allocation2 + $0x280] ss:$16 sps:$4 sm:$0xff]  }
  0x65   :  { %1814 = vmatprep.subr.bf16.mxu1 %v6441_v9  ;;  %v6451_v16 = vld [vmem:[#allocation2 + $0x64] ss:$16 sps:$4 sm:$0xff]   ;;  %v6455_v18 = vld [vmem:[#allocation2 + $0x60] ss:$16 sps:$4 sm:$0xff]   ;;  %v158_v42 = vld [vmem:[%s7628_s21 + $0x8] sm:$0xff] }
  0x66   :  { %v6453_v17 = vld [vmem:[#allocation2 + $0x264] ss:$16 sps:$4 sm:$0xff]   ;;  %v6456_v19 = vld [vmem:[#allocation2 + $0x260] ss:$16 sps:$4 sm:$0xff]  }
  0x67   :  { %1774 = vmatpush1.bf16.msra.mxu0 %v6443_v10  ;;  %v6457_v20 = vld [vmem:[#allocation2 + $0x44] ss:$16 sps:$4 sm:$0xff]   ;;  %v6461_v22 = vld [vmem:[#allocation2 + $0x40] ss:$16 sps:$4 sm:$0xff]  }
  0x68   :  { %1815 = vmatpush1.bf16.msra.mxu1 %v6444_v11  ;;  %1775 = vmatprep.subr.bf16.mxu0 %v6445_v12  ;;  %v6459_v21 = vld [vmem:[#allocation2 + $0x244] ss:$16 sps:$4 sm:$0xff]   ;;  %v6462_v23 = vld [vmem:[#allocation2 + $0x240] ss:$16 sps:$4 sm:$0xff]  }
  0x69   :  { %1816 = vmatprep.subr.bf16.mxu1 %v6447_v13  ;;  %v6463_v24 = vld [vmem:[#allocation2 + $0x24] ss:$16 sps:$4 sm:$0xff]   ;;  %v6467_v26 = vld [vmem:[#allocation2 + $0x20] ss:$16 sps:$4 sm:$0xff]  }
  0x6a   :  { %v6465_v25 = vld [vmem:[#allocation2 + $0x224] ss:$16 sps:$4 sm:$0xff]   ;;  %v6468_v27 = vld [vmem:[#allocation2 + $0x220] ss:$16 sps:$4 sm:$0xff]  }
  0x6b   :  { %1776 = vmatpush1.bf16.msra.mxu0 %v6449_v14  ;;  %v6469_v28 = vld [vmem:[#allocation2 + $0x4] ss:$16 sps:$4 sm:$0xff]   ;;  %v6473_v30 = vld [vmem:[#allocation2] ss:$16 sps:$4 sm:$0xff]  }
  0x6c   :  { %1817 = vmatpush1.bf16.msra.mxu1 %v6450_v15  ;;  %1777 = vmatprep.subr.bf16.mxu0 %v6451_v16  ;;  %v6471_v29 = vld [vmem:[#allocation2 + $0x204] ss:$16 sps:$4 sm:$0xff]   ;;  %v6474_v31 = vld [vmem:[#allocation2 + $0x200] ss:$16 sps:$4 sm:$0xff]  }
  0x6d   :  { %1818 = vmatprep.subr.bf16.mxu1 %v6453_v17  ;;  %v6475_v32 = vld [vmem:[#allocation2 + $0x1e4] ss:$16 sps:$4 sm:$0xff]   ;;  %v6479_v34 = vld [vmem:[#allocation2 + $0x1e0] ss:$16 sps:$4 sm:$0xff]  }
  0x6e   :  { %v6477_v33 = vld [vmem:[#allocation2 + $0x3e4] ss:$16 sps:$4 sm:$0xff]   ;;  %v6480_v35 = vld [vmem:[#allocation2 + $0x3e0] ss:$16 sps:$4 sm:$0xff]  }
  0x6f   :  { %1778 = vmatpush1.bf16.msra.mxu0 %v6455_v18  ;;  %v6481_v39 = vld [vmem:[#allocation2 + $0x1c4] ss:$16 sps:$4 sm:$0xff]   ;;  %v6485_v41 = vld [vmem:[#allocation2 + $0x1c0] ss:$16 sps:$4 sm:$0xff]  }
  0x70   :  { %1819 = vmatpush1.bf16.msra.mxu1 %v6456_v19  ;;  %1779 = vmatprep.subr.bf16.mxu0 %v6457_v20  ;;  %v6483_v40 = vld [vmem:[#allocation2 + $0x3c4] ss:$16 sps:$4 sm:$0xff]   ;;  %v6486_v44 = vld [vmem:[#allocation2 + $0x3c0] ss:$16 sps:$4 sm:$0xff]  }
  0x71   :  { %1820 = vmatprep.subr.bf16.mxu1 %v6459_v21  ;;  %v6487_v45 = vld [vmem:[#allocation2 + $0x1a4] ss:$16 sps:$4 sm:$0xff]   ;;  %v6491_v47 = vld [vmem:[#allocation2 + $0x1a0] ss:$16 sps:$4 sm:$0xff]  }
  0x72   :  { %v6489_v46 = vld [vmem:[#allocation2 + $0x3a4] ss:$16 sps:$4 sm:$0xff]   ;;  %v6492_v48 = vld [vmem:[#allocation2 + $0x3a0] ss:$16 sps:$4 sm:$0xff]  }
  0x73   :  { %1780 = vmatpush1.bf16.msra.mxu0 %v6461_v22  ;;  %v6493_v50 = vld [vmem:[#allocation2 + $0x184] ss:$16 sps:$4 sm:$0xff]   ;;  %v6497_v53 = vld [vmem:[#allocation2 + $0x180] ss:$16 sps:$4 sm:$0xff]  }
  0x74   :  { %1821 = vmatpush1.bf16.msra.mxu1 %v6462_v23  ;;  %1781 = vmatprep.subr.bf16.mxu0 %v6463_v24  ;;  %v6495_v51 = vld [vmem:[#allocation2 + $0x384] ss:$16 sps:$4 sm:$0xff]   ;;  %v6498_v56 = vld [vmem:[#allocation2 + $0x380] ss:$16 sps:$4 sm:$0xff]  }
  0x75   :  { %1822 = vmatprep.subr.bf16.mxu1 %v6465_v25  ;;  %v157_v52 = vld [vmem:[%s7628_s21] sm:$0xff] }
  0x76   :  { %v168_v54 = vrot.slane %v157_v52, %v7379_v49  ;;  %v161_v55 = vcombine.high %v157_v52, %v157_v52  ;;  %v6499_v57 = vld [vmem:[#allocation2 + $0x164] ss:$16 sps:$4 sm:$0xff]   ;;  %v6503_v61 = vld [vmem:[#allocation2 + $0x160] ss:$16 sps:$4 sm:$0xff]  }
  0x77   :  { %1782 = vmatpush1.bf16.msra.mxu0 %v6467_v26  ;;  %v6501_v58 = vld [vmem:[#allocation2 + $0x364] ss:$16 sps:$4 sm:$0xff]   ;;  %v6504_v0 = vld [vmem:[#allocation2 + $0x360] ss:$16 sps:$4 sm:$0xff]  }
  0x78   :  { %1823 = vmatpush1.bf16.msra.mxu1 %v6468_v27  ;;  %1783 = vmatprep.subr.bf16.mxu0 %v6469_v28  ;;  %v176_v59 = vcombine.high %v168_v54, %v168_v54  ;;  %v175_v60 = vrot.slane %v161_v55, %v7379_v49  ;;  %v6505_v1 = vld [vmem:[#allocation2 + $0x144] ss:$16 sps:$4 sm:$0xff]   ;;  %v6509_v4 = vld [vmem:[#allocation2 + $0x140] ss:$16 sps:$4 sm:$0xff]   ;;  %v7392_v16 = vpack.c.bf16 %v168_v54, %v168_v54 }
  0x79   :  { %1824 = vmatprep.subr.bf16.mxu1 %v6471_v29  ;;  %v6507_v2 = vld [vmem:[#allocation2 + $0x344] ss:$16 sps:$4 sm:$0xff]   ;;  %v6510_v5 = vld [vmem:[#allocation2 + $0x340] ss:$16 sps:$4 sm:$0xff]  }
  0x7a   :  { %v7386_v62 = vpack.c.bf16 %v176_v59, %v176_v59  ;;  %v177_v63 = vcombine.high %v175_v60, %v175_v60  ;;  %v6511_v6 = vld [vmem:[#allocation2 + $0x124] ss:$16 sps:$4 sm:$0xff]   ;;  %v6515_v8 = vld [vmem:[#allocation2 + $0x120] ss:$16 sps:$4 sm:$0xff]   ;;  %v7394_v17 = vpack.c.bf16 %v175_v60, %v175_v60 }
  0x7b   :  { %1784 = vmatpush1.bf16.msra.mxu0 %v6473_v30  ;;  %v6513_v7 = vld [vmem:[#allocation2 + $0x324] ss:$16 sps:$4 sm:$0xff]   ;;  %v6516_v9 = vld [vmem:[#allocation2 + $0x320] ss:$16 sps:$4 sm:$0xff]  }
  0x7c   :  { %1825 = vmatpush1.bf16.msra.mxu1 %v6474_v31  ;;  %1785 = vmatprep.subr.bf16.mxu0 %v6475_v32  ;;  %v7388_v3 = vpack.c.bf16 %v177_v63, %v177_v63  ;;  %v6517_v10 = vld [vmem:[#allocation2 + $0x104] ss:$16 sps:$4 sm:$0xff]   ;;  %v6521_v12 = vld [vmem:[#allocation2 + $0x100] ss:$16 sps:$4 sm:$0xff]  }
  0x7d   :  { %1826 = vmatprep.subr.bf16.mxu1 %v6477_v33  ;;  %1801 = vmatprep.mubr.bf16.mxu0 %v7386_v62  ;;  %v6519_v11 = vld [vmem:[#allocation2 + $0x304] ss:$16 sps:$4 sm:$0xff]   ;;  %v6522_v13 = vld [vmem:[#allocation2 + $0x300] ss:$16 sps:$4 sm:$0xff]  }
  0x7e   :  { %1842 = vmatprep.mubr.bf16.mxu1 %v7388_v3  ;;  %v6526_v14 = vld [vmem:[#allocation2 + $0x4e4] ss:$16 sps:$4 sm:$0xff]   ;;  %v6524_v18 = vld [vmem:[#allocation2 + $0x4e0] ss:$16 sps:$4 sm:$0xff]  }
  0x7f   :  { %1786 = vmatpush2.bf16.msra.mxu0 %v6479_v34  ;;  %v6529_v15 = vld [vmem:[#allocation2 + $0x6e4] ss:$16 sps:$4 sm:$0xff]   ;;  %v6527_v19 = vld [vmem:[#allocation2 + $0x6e0] ss:$16 sps:$4 sm:$0xff]  }
  0x80   :  { %1827 = vmatpush2.bf16.msra.mxu1 %v6480_v35  ;;  %1787 = vmatprep.subr.bf16.mxu0 %v6481_v39  ;;  %v6532_v20 = vld [vmem:[#allocation2 + $0x4c4] ss:$16 sps:$4 sm:$0xff]   ;;  %v6530_v22 = vld [vmem:[#allocation2 + $0x4c0] ss:$16 sps:$4 sm:$0xff]  }
  0x81   :  { %1828 = vmatprep.subr.bf16.mxu1 %v6483_v40  ;;  %v6535_v21 = vld [vmem:[#allocation2 + $0x6c4] ss:$16 sps:$4 sm:$0xff]   ;;  %v6533_v23 = vld [vmem:[#allocation2 + $0x6c0] ss:$16 sps:$4 sm:$0xff]  }
  0x82   :  { %v6538_v24 = vld [vmem:[#allocation2 + $0x4a4] ss:$16 sps:$4 sm:$0xff]   ;;  %v6536_v26 = vld [vmem:[#allocation2 + $0x4a0] ss:$16 sps:$4 sm:$0xff]  }
  0x83   :  { %1788 = vmatpush2.bf16.msra.mxu0 %v6485_v41  ;;  %v6541_v25 = vld [vmem:[#allocation2 + $0x6a4] ss:$16 sps:$4 sm:$0xff]   ;;  %v6539_v27 = vld [vmem:[#allocation2 + $0x6a0] ss:$16 sps:$4 sm:$0xff]  }
  0x84   :  { %1829 = vmatpush2.bf16.msra.mxu1 %v6486_v44  ;;  %1789 = vmatprep.subr.bf16.mxu0 %v6487_v45  ;;  %v6544_v28 = vld [vmem:[#allocation2 + $0x484] ss:$16 sps:$4 sm:$0xff]   ;;  %v6542_v30 = vld [vmem:[#allocation2 + $0x480] ss:$16 sps:$4 sm:$0xff]   ;;  %v7402_v44 = vrot.slane %v158_v42, %v7379_v49  ;;  %v178_v45 = vcombine.high %v158_v42, %v158_v42  ;;  %v6633_v42 = vld [vmem:[#allocation2 + $0xa8] ss:$16 sps:$4 sm:$0xff]  }
  0x85   :  { %1830 = vmatprep.subr.bf16.mxu1 %v6489_v46  ;;  %v6547_v29 = vld [vmem:[#allocation2 + $0x684] ss:$16 sps:$4 sm:$0xff]   ;;  %v6545_v31 = vld [vmem:[#allocation2 + $0x680] ss:$16 sps:$4 sm:$0xff]  }
  0x86   :  { %v6550_v32 = vld [vmem:[#allocation2 + $0x464] ss:$16 sps:$4 sm:$0xff]   ;;  %v6548_v34 = vld [vmem:[#allocation2 + $0x460] ss:$16 sps:$4 sm:$0xff]  }
  0x87   :  { %1790 = vmatpush2.bf16.msra.mxu0 %v6491_v47  ;;  %v6553_v33 = vld [vmem:[#allocation2 + $0x664] ss:$16 sps:$4 sm:$0xff]   ;;  %v6551_v35 = vld [vmem:[#allocation2 + $0x660] ss:$16 sps:$4 sm:$0xff]  }
  0x88   :  { %1831 = vmatpush2.bf16.msra.mxu1 %v6492_v48  ;;  %1791 = vmatprep.subr.bf16.mxu0 %v6493_v50  ;;  %v6556_v36 = vld [vmem:[#allocation2 + $0x444] ss:$16 sps:$4 sm:$0xff]   ;;  %v6554_v38 = vld [vmem:[#allocation2 + $0x440] ss:$16 sps:$4 sm:$0xff]   ;;  %v193_v48 = vcombine.high %v7402_v44, %v7402_v44  ;;  %v7407_v50 = vrot.slane %v178_v45, %v7379_v49  ;;  %v6641_v45 = vld [vmem:[#allocation2 + $0x8c] ss:$16 sps:$4 sm:$0xff]  }
  0x89   :  { %1832 = vmatprep.subr.bf16.mxu1 %v6495_v51  ;;  %v6559_v37 = vld [vmem:[#allocation2 + $0x644] ss:$16 sps:$4 sm:$0xff]   ;;  %v6557_v39 = vld [vmem:[#allocation2 + $0x640] ss:$16 sps:$4 sm:$0xff]  }
  0x8a   :  { %v6562_v40 = vld [vmem:[#allocation2 + $0x424] ss:$16 sps:$4 sm:$0xff]   ;;  %v6560_v46 = vld [vmem:[#allocation2 + $0x420] ss:$16 sps:$4 sm:$0xff]   ;;  %v194_v54 = vcombine.high %v7407_v50, %v7407_v50 }
  0x8b   :  { %1792 = vmatpush2.bf16.msra.mxu0 %v6497_v53  ;;  %v6565_v41 = vld [vmem:[#allocation2 + $0x624] ss:$16 sps:$4 sm:$0xff]   ;;  %v6563_v47 = vld [vmem:[#allocation2 + $0x620] ss:$16 sps:$4 sm:$0xff]   ;;  %v7409_v53 = vpack.c.bf16 %v193_v48, %v193_v48  ;;  %v6642_v48 = vld [vmem:[#allocation2 + $0x288] ss:$16 sps:$4 sm:$0xff]  }
  0x8c   :  { %1833 = vmatpush2.bf16.msra.mxu1 %v6498_v56  ;;  %1793 = vmatprep.subr.bf16.mxu0 %v6499_v57  ;;  %v6568_v51 = vld [vmem:[#allocation2 + $0x404] ss:$16 sps:$4 sm:$0xff]   ;;  %v6566_v55 = vld [vmem:[#allocation2 + $0x400] ss:$16 sps:$4 sm:$0xff]   ;;  %v7413_v57 = vpack.c.bf16 %v194_v54, %v194_v54  ;;  %v6656_v54 = vld [vmem:[#allocation2 + $0x24c] ss:$16 sps:$4 sm:$0xff]  }
  0x8d   :  { %1834 = vmatprep.subr.bf16.mxu1 %v6501_v58  ;;  %v6571_v52 = vld [vmem:[#allocation2 + $0x604] ss:$16 sps:$4 sm:$0xff]   ;;  %v6569_v56 = vld [vmem:[#allocation2 + $0x600] ss:$16 sps:$4 sm:$0xff]  }
  0x8e   :  { %v6574_v58 = vld [vmem:[#allocation2 + $0x5e4] ss:$16 sps:$4 sm:$0xff]   ;;  %v6572_v60 = vld [vmem:[#allocation2 + $0x5e0] ss:$16 sps:$4 sm:$0xff]  }
  0x8f   :  { %1794 = vmatpush2.bf16.msra.mxu0 %v6503_v61  ;;  %v6577_v59 = vld [vmem:[#allocation2 + $0x7e4] ss:$16 sps:$4 sm:$0xff]   ;;  %v6575_v61 = vld [vmem:[#allocation2 + $0x7e0] ss:$16 sps:$4 sm:$0xff]  }
  0x90   :  { %1835 = vmatpush2.bf16.msra.mxu1 %v6504_v0  ;;  %1795 = vmatprep.subr.bf16.mxu0 %v6505_v1  ;;  %v6580_v63 = vld [vmem:[#allocation2 + $0x5c4] ss:$16 sps:$4 sm:$0xff]   ;;  %v6578_v1 = vld [vmem:[#allocation2 + $0x5c0] ss:$16 sps:$4 sm:$0xff]  }
  0x91   :  { %1836 = vmatprep.subr.bf16.mxu1 %v6507_v2  ;;  %v6583_v0 = vld [vmem:[#allocation2 + $0x7c4] ss:$16 sps:$4 sm:$0xff]   ;;  %v6581_v2 = vld [vmem:[#allocation2 + $0x7c0] ss:$16 sps:$4 sm:$0xff]  }
  0x93   :  { %1796 = vmatpush2.bf16.msra.mxu0 %v6509_v4  ;;  %v6586_v4 = vld [vmem:[#allocation2 + $0x5a4] ss:$16 sps:$4 sm:$0xff]  }
  0x94   :  { %1837 = vmatpush2.bf16.msra.mxu1 %v6510_v5  ;;  %1797 = vmatprep.subr.bf16.mxu0 %v6511_v6  ;;  %v6589_v5 = vld [vmem:[#allocation2 + $0x7a4] ss:$16 sps:$4 sm:$0xff]   ;;  %v6584_v6 = vld [vmem:[#allocation2 + $0x5a0] ss:$16 sps:$4 sm:$0xff]  }
  0x95   :  { %1838 = vmatprep.subr.bf16.mxu1 %v6513_v7  ;;  %v6587_v7 = vld [vmem:[#allocation2 + $0x7a0] ss:$16 sps:$4 sm:$0xff]  }
  0x97   :  { %1798 = vmatpush2.bf16.msra.mxu0 %v6515_v8  ;;  %v6592_v8 = vld [vmem:[#allocation2 + $0x584] ss:$16 sps:$4 sm:$0xff]  }
  0x98   :  { %1839 = vmatpush2.bf16.msra.mxu1 %v6516_v9  ;;  %1799 = vmatprep.subr.bf16.mxu0 %v6517_v10  ;;  %v6595_v9 = vld [vmem:[#allocation2 + $0x784] ss:$16 sps:$4 sm:$0xff]   ;;  %v6590_v10 = vld [vmem:[#allocation2 + $0x580] ss:$16 sps:$4 sm:$0xff]  }
  0x99   :  { %1840 = vmatprep.subr.bf16.mxu1 %v6519_v11  ;;  %v6593_v11 = vld [vmem:[#allocation2 + $0x780] ss:$16 sps:$4 sm:$0xff]  }
  0x9b   :  { %1800 = vmatpush2.bf16.msra.mxu0 %v6521_v12  ;;  %v6598_v12 = vld [vmem:[#allocation2 + $0x564] ss:$16 sps:$4 sm:$0xff]  }
  0x9c   :  { %1841 = vmatpush2.bf16.msra.mxu1 %v6522_v13  ;;  %1851 = vmatprep.subr.bf16.mxu0 %v6526_v14  ;;  %v6601_v13 = vld [vmem:[#allocation2 + $0x764] ss:$16 sps:$4 sm:$0xff]   ;;  %v6596_v14 = vld [vmem:[#allocation2 + $0x560] ss:$16 sps:$4 sm:$0xff]  }
  0x9d   :  { %1892 = vmatprep.subr.bf16.mxu1 %v6529_v15  ;;  %v6599_v15 = vld [vmem:[#allocation2 + $0x760] ss:$16 sps:$4 sm:$0xff]  }
  0x9e   :  { %1802 = vmatmul.mubr.bf16.vlgmr.msra.gmra.mxu0 %v7392_v16 }
  0x9f   :  { %1843 = vmatmul.mubr.bf16.vlgmr.msra.gmra.mxu1 %v7394_v17  ;;  %1852 = vmatpush1.bf16.msra.mxu0 %v6524_v18  ;;  %v6604_v18 = vld [vmem:[#allocation2 + $0x544] ss:$16 sps:$4 sm:$0xff]  }
  0xa0   :  { %1893 = vmatpush1.bf16.msra.mxu1 %v6527_v19  ;;  %1853 = vmatprep.subr.bf16.mxu0 %v6532_v20  ;;  %v6607_v19 = vld [vmem:[#allocation2 + $0x744] ss:$16 sps:$4 sm:$0xff]   ;;  %v6602_v20 = vld [vmem:[#allocation2 + $0x540] ss:$16 sps:$4 sm:$0xff]  }
  0xa1   :  { %1894 = vmatprep.subr.bf16.mxu1 %v6535_v21  ;;  %1883 = vmatprep.mubr.bf16.mxu0 %v7409_v53  ;;  %v6605_v21 = vld [vmem:[#allocation2 + $0x740] ss:$16 sps:$4 sm:$0xff]  }
  0xa2   :  { %1924 = vmatprep.mubr.bf16.mxu1 %v7413_v57 }
  0xa3   :  { %1854 = vmatpush1.bf16.msra.mxu0 %v6530_v22  ;;  %v6610_v22 = vld [vmem:[#allocation2 + $0x524] ss:$16 sps:$4 sm:$0xff]  }
  0xa4   :  { %1895 = vmatpush1.bf16.msra.mxu1 %v6533_v23  ;;  %1855 = vmatprep.subr.bf16.mxu0 %v6538_v24  ;;  %v6613_v23 = vld [vmem:[#allocation2 + $0x724] ss:$16 sps:$4 sm:$0xff]   ;;  %v6608_v24 = vld [vmem:[#allocation2 + $0x520] ss:$16 sps:$4 sm:$0xff]  }
  0xa5   :  { %1896 = vmatprep.subr.bf16.mxu1 %v6541_v25  ;;  %v6611_v25 = vld [vmem:[#allocation2 + $0x720] ss:$16 sps:$4 sm:$0xff]  }
  0xa7   :  { %1856 = vmatpush1.bf16.msra.mxu0 %v6536_v26  ;;  %v6616_v26 = vld [vmem:[#allocation2 + $0x504] ss:$16 sps:$4 sm:$0xff]  }
  0xa8   :  { %1897 = vmatpush1.bf16.msra.mxu1 %v6539_v27  ;;  %1857 = vmatprep.subr.bf16.mxu0 %v6544_v28  ;;  %v6619_v27 = vld [vmem:[#allocation2 + $0x704] ss:$16 sps:$4 sm:$0xff]   ;;  %v6614_v28 = vld [vmem:[#allocation2 + $0x500] ss:$16 sps:$4 sm:$0xff]  }
  0xa9   :  { %1898 = vmatprep.subr.bf16.mxu1 %v6547_v29  ;;  %v6617_v29 = vld [vmem:[#allocation2 + $0x700] ss:$16 sps:$4 sm:$0xff]  }
  0xab   :  { %1858 = vmatpush1.bf16.msra.mxu0 %v6542_v30  ;;  %v6623_v30 = vld [vmem:[#allocation2 + $0xec] ss:$16 sps:$4 sm:$0xff]  }
  0xac   :  { %1899 = vmatpush1.bf16.msra.mxu1 %v6545_v31  ;;  %1859 = vmatprep.subr.bf16.mxu0 %v6550_v32  ;;  %v6626_v31 = vld [vmem:[#allocation2 + $0x2ec] ss:$16 sps:$4 sm:$0xff]   ;;  %v7419_v32 = vpack.c.bf16 %v7402_v44, %v7402_v44  ;;  %v6636_v44 = vld [vmem:[#allocation2 + $0x2a8] ss:$16 sps:$4 sm:$0xff]  }
  0xad   :  { %1900 = vmatprep.subr.bf16.mxu1 %v6553_v33  ;;  %v7423_v33 = vpack.c.bf16 %v7407_v50, %v7407_v50  ;;  %v6647_v50 = vld [vmem:[#allocation2 + $0x6c] ss:$16 sps:$4 sm:$0xff]  }
  0xaf   :  { %1860 = vmatpush1.bf16.msra.mxu0 %v6548_v34  ;;  %v6621_v34 = vld [vmem:[#allocation2 + $0xe8] ss:$16 sps:$4 sm:$0xff]  }
  0xb0   :  { %1901 = vmatpush1.bf16.msra.mxu1 %v6551_v35  ;;  %1861 = vmatprep.subr.bf16.mxu0 %v6556_v36  ;;  %v6624_v35 = vld [vmem:[#allocation2 + $0x2e8] ss:$16 sps:$4 sm:$0xff]   ;;  %v6629_v36 = vld [vmem:[#allocation2 + $0xcc] ss:$16 sps:$4 sm:$0xff]  }
  0xb1   :  { %1902 = vmatprep.subr.bf16.mxu1 %v6559_v37  ;;  %v6632_v37 = vld [vmem:[#allocation2 + $0x2cc] ss:$16 sps:$4 sm:$0xff]  }
  0xb3   :  { %1862 = vmatpush1.bf16.msra.mxu0 %v6554_v38  ;;  %v6627_v38 = vld [vmem:[#allocation2 + $0xc8] ss:$16 sps:$4 sm:$0xff]  }
  0xb4   :  { %1903 = vmatpush1.bf16.msra.mxu1 %v6557_v39  ;;  %1863 = vmatprep.subr.bf16.mxu0 %v6562_v40  ;;  %v6630_v39 = vld [vmem:[#allocation2 + $0x2c8] ss:$16 sps:$4 sm:$0xff]   ;;  %v6635_v40 = vld [vmem:[#allocation2 + $0xac] ss:$16 sps:$4 sm:$0xff]  }
  0xb5   :  { %1904 = vmatprep.subr.bf16.mxu1 %v6565_v41  ;;  %v6638_v41 = vld [vmem:[#allocation2 + $0x2ac] ss:$16 sps:$4 sm:$0xff]  }
  0xb7   :  { %1864 = vmatpush1.bf16.msra.mxu0 %v6560_v46  ;;  %v6644_v46 = vld [vmem:[#allocation2 + $0x28c] ss:$16 sps:$4 sm:$0xff]  }
  0xb8   :  { %1905 = vmatpush1.bf16.msra.mxu1 %v6563_v47  ;;  %1865 = vmatprep.subr.bf16.mxu0 %v6568_v51  ;;  %v6639_v47 = vld [vmem:[#allocation2 + $0x88] ss:$16 sps:$4 sm:$0xff]   ;;  %v6650_v51 = vld [vmem:[#allocation2 + $0x26c] ss:$16 sps:$4 sm:$0xff]  }
  0xb9   :  { %1906 = vmatprep.subr.bf16.mxu1 %v6571_v52  ;;  %v6653_v52 = vld [vmem:[#allocation2 + $0x4c] ss:$16 sps:$4 sm:$0xff]  }
  0xbb   :  { %1866 = vmatpush1.bf16.msra.mxu0 %v6566_v55  ;;  %v6651_v55 = vld [vmem:[#allocation2 + $0x48] ss:$16 sps:$4 sm:$0xff]  }
  0xbc   :  { %1907 = vmatpush1.bf16.msra.mxu1 %v6569_v56  ;;  %1867 = vmatprep.subr.bf16.mxu0 %v6574_v58  ;;  %v6654_v56 = vld [vmem:[#allocation2 + $0x248] ss:$16 sps:$4 sm:$0xff]   ;;  %v6659_v58 = vld [vmem:[#allocation2 + $0x2c] ss:$16 sps:$4 sm:$0xff]  }
  0xbd   :  { %1908 = vmatprep.subr.bf16.mxu1 %v6577_v59  ;;  %v6662_v59 = vld [vmem:[#allocation2 + $0x22c] ss:$16 sps:$4 sm:$0xff]  }
  0xbf   :  { %1868 = vmatpush2.bf16.msra.mxu0 %v6572_v60  ;;  %v6657_v60 = vld [vmem:[#allocation2 + $0x28] ss:$16 sps:$4 sm:$0xff]  }
  0xc0   :  { %1909 = vmatpush2.bf16.msra.mxu1 %v6575_v61  ;;  %1869 = vmatprep.subr.bf16.mxu0 %v6580_v63  ;;  %v6660_v61 = vld [vmem:[#allocation2 + $0x228] ss:$16 sps:$4 sm:$0xff]   ;;  %v6665_v63 = vld [vmem:[#allocation2 + $0xc] ss:$16 sps:$4 sm:$0xff]  }
  0xc1   :  { %1910 = vmatprep.subr.bf16.mxu1 %v6583_v0  ;;  %v6668_v0 = vld [vmem:[#allocation2 + $0x20c] ss:$16 sps:$4 sm:$0xff]  }
  0xc3   :  { %1870 = vmatpush2.bf16.msra.mxu0 %v6578_v1  ;;  %v6663_v1 = vld [vmem:[#allocation2 + $0x8] ss:$16 sps:$4 sm:$0xff]  }
  0xc4   :  { %1911 = vmatpush2.bf16.msra.mxu1 %v6581_v2  ;;  %1871 = vmatprep.subr.bf16.mxu0 %v6586_v4  ;;  %v6666_v2 = vld [vmem:[#allocation2 + $0x208] ss:$16 sps:$4 sm:$0xff]   ;;  %v6671_v4 = vld [vmem:[#allocation2 + $0x1ec] ss:$16 sps:$4 sm:$0xff]  }
  0xc5   :  { %1912 = vmatprep.subr.bf16.mxu1 %v6589_v5  ;;  %v6674_v5 = vld [vmem:[#allocation2 + $0x3ec] ss:$16 sps:$4 sm:$0xff]  }
  0xc7   :  { %1872 = vmatpush2.bf16.msra.mxu0 %v6584_v6  ;;  %v6669_v6 = vld [vmem:[#allocation2 + $0x1e8] ss:$16 sps:$4 sm:$0xff]  }
  0xc8   :  { %1913 = vmatpush2.bf16.msra.mxu1 %v6587_v7  ;;  %1873 = vmatprep.subr.bf16.mxu0 %v6592_v8  ;;  %v6672_v7 = vld [vmem:[#allocation2 + $0x3e8] ss:$16 sps:$4 sm:$0xff]   ;;  %v6677_v8 = vld [vmem:[#allocation2 + $0x1cc] ss:$16 sps:$4 sm:$0xff]  }
  0xc9   :  { %1914 = vmatprep.subr.bf16.mxu1 %v6595_v9  ;;  %v6680_v9 = vld [vmem:[#allocation2 + $0x3cc] ss:$16 sps:$4 sm:$0xff]  }
  0xcb   :  { %1874 = vmatpush2.bf16.msra.mxu0 %v6590_v10  ;;  %v6675_v10 = vld [vmem:[#allocation2 + $0x1c8] ss:$16 sps:$4 sm:$0xff]  }
  0xcc   :  { %1915 = vmatpush2.bf16.msra.mxu1 %v6593_v11  ;;  %1875 = vmatprep.subr.bf16.mxu0 %v6598_v12  ;;  %v6678_v11 = vld [vmem:[#allocation2 + $0x3c8] ss:$16 sps:$4 sm:$0xff]   ;;  %v6683_v12 = vld [vmem:[#allocation2 + $0x1ac] ss:$16 sps:$4 sm:$0xff]  }
  0xcd   :  { %1916 = vmatprep.subr.bf16.mxu1 %v6601_v13  ;;  %v6686_v13 = vld [vmem:[#allocation2 + $0x3ac] ss:$16 sps:$4 sm:$0xff]  }
  0xcf   :  { %1876 = vmatpush2.bf16.msra.mxu0 %v6596_v14  ;;  %v6681_v14 = vld [vmem:[#allocation2 + $0x1a8] ss:$16 sps:$4 sm:$0xff]  }
  0xd0   :  { %1917 = vmatpush2.bf16.msra.mxu1 %v6599_v15  ;;  %1877 = vmatprep.subr.bf16.mxu0 %v6604_v18  ;;  %v6684_v15 = vld [vmem:[#allocation2 + $0x3a8] ss:$16 sps:$4 sm:$0xff]   ;;  %v6689_v18 = vld [vmem:[#allocation2 + $0x18c] ss:$16 sps:$4 sm:$0xff]  }
  0xd1   :  { %1918 = vmatprep.subr.bf16.mxu1 %v6607_v19  ;;  %v6692_v19 = vld [vmem:[#allocation2 + $0x38c] ss:$16 sps:$4 sm:$0xff]  }
  0xd3   :  { %1878 = vmatpush2.bf16.msra.mxu0 %v6602_v20  ;;  %v6687_v20 = vld [vmem:[#allocation2 + $0x188] ss:$16 sps:$4 sm:$0xff]  }
  0xd4   :  { %1919 = vmatpush2.bf16.msra.mxu1 %v6605_v21  ;;  %1879 = vmatprep.subr.bf16.mxu0 %v6610_v22  ;;  %v6690_v21 = vld [vmem:[#allocation2 + $0x388] ss:$16 sps:$4 sm:$0xff]   ;;  %v6695_v22 = vld [vmem:[#allocation2 + $0x16c] ss:$16 sps:$4 sm:$0xff]  }
  0xd5   :  { %1920 = vmatprep.subr.bf16.mxu1 %v6613_v23  ;;  %v6698_v23 = vld [vmem:[#allocation2 + $0x36c] ss:$16 sps:$4 sm:$0xff]  }
  0xd7   :  { %1880 = vmatpush2.bf16.msra.mxu0 %v6608_v24  ;;  %v6693_v24 = vld [vmem:[#allocation2 + $0x168] ss:$16 sps:$4 sm:$0xff]  }
  0xd8   :  { %1921 = vmatpush2.bf16.msra.mxu1 %v6611_v25  ;;  %1881 = vmatprep.subr.bf16.mxu0 %v6616_v26  ;;  %v6696_v25 = vld [vmem:[#allocation2 + $0x368] ss:$16 sps:$4 sm:$0xff]   ;;  %v6701_v26 = vld [vmem:[#allocation2 + $0x14c] ss:$16 sps:$4 sm:$0xff]  }
  0xd9   :  { %1922 = vmatprep.subr.bf16.mxu1 %v6619_v27  ;;  %v6704_v27 = vld [vmem:[#allocation2 + $0x34c] ss:$16 sps:$4 sm:$0xff]  }
  0xdb   :  { %1882 = vmatpush2.bf16.msra.mxu0 %v6614_v28  ;;  %v6699_v28 = vld [vmem:[#allocation2 + $0x148] ss:$16 sps:$4 sm:$0xff]  }
  0xdc   :  { %1923 = vmatpush2.bf16.msra.mxu1 %v6617_v29  ;;  %1933 = vmatprep.subr.bf16.mxu0 %v6623_v30  ;;  %v6702_v29 = vld [vmem:[#allocation2 + $0x348] ss:$16 sps:$4 sm:$0xff]   ;;  %v6707_v30 = vld [vmem:[#allocation2 + $0x12c] ss:$16 sps:$4 sm:$0xff]  }
  0xdd   :  { %1974 = vmatprep.subr.bf16.mxu1 %v6626_v31  ;;  %v6710_v31 = vld [vmem:[#allocation2 + $0x32c] ss:$16 sps:$4 sm:$0xff]  }
  0xde   :  { %1884 = vmatmul.mubr.bf16.vlgmr.msra.gmra.mxu0 %v7419_v32 }
  0xdf   :  { %1925 = vmatmul.mubr.bf16.vlgmr.msra.gmra.mxu1 %v7423_v33  ;;  %1934 = vmatpush1.bf16.msra.mxu0 %v6621_v34  ;;  %v6705_v34 = vld [vmem:[#allocation2 + $0x128] ss:$16 sps:$4 sm:$0xff]  }
  0xe0   :  { %1975 = vmatpush1.bf16.msra.mxu1 %v6624_v35  ;;  %1935 = vmatprep.subr.bf16.mxu0 %v6629_v36  ;;  %v6708_v35 = vld [vmem:[#allocation2 + $0x328] ss:$16 sps:$4 sm:$0xff]   ;;  %v6713_v36 = vld [vmem:[#allocation2 + $0x10c] ss:$16 sps:$4 sm:$0xff]  }
  0xe1   :  { %1976 = vmatprep.subr.bf16.mxu1 %v6632_v37  ;;  %1965 = vmatprep.mubr.bf16.mxu0 %v7386_v62  ;;  %v6645_v62 = vld [vmem:[#allocation2 + $0x68] ss:$16 sps:$4 sm:$0xff]   ;;  %v6716_v37 = vld [vmem:[#allocation2 + $0x30c] ss:$16 sps:$4 sm:$0xff]  }
  0xe2   :  { %2006 = vmatprep.mubr.bf16.mxu1 %v7388_v3  ;;  %v6648_v3 = vld [vmem:[#allocation2 + $0x268] ss:$16 sps:$4 sm:$0xff]  }
  0xe3   :  { %1936 = vmatpush1.bf16.msra.mxu0 %v6627_v38  ;;  %v6711_v38 = vld [vmem:[#allocation2 + $0x108] ss:$16 sps:$4 sm:$0xff]  }
  0xe4   :  { %1977 = vmatpush1.bf16.msra.mxu1 %v6630_v39  ;;  %1937 = vmatprep.subr.bf16.mxu0 %v6635_v40  ;;  %v6714_v39 = vld [vmem:[#allocation2 + $0x308] ss:$16 sps:$4 sm:$0xff]   ;;  %v6719_v40 = vld [vmem:[#allocation2 + $0x4ec] ss:$16 sps:$4 sm:$0xff]  }
  0xe5   :  { %1978 = vmatprep.subr.bf16.mxu1 %v6638_v41  ;;  %v6722_v41 = vld [vmem:[#allocation2 + $0x6ec] ss:$16 sps:$4 sm:$0xff]  }
  0xe7   :  { %1938 = vmatpush1.bf16.msra.mxu0 %v6633_v42  ;;  %v6717_v42 = vld [vmem:[#allocation2 + $0x4e8] ss:$16 sps:$4 sm:$0xff]  }
  0xe8   :  { %1979 = vmatpush1.bf16.msra.mxu1 %v6636_v44  ;;  %1939 = vmatprep.subr.bf16.mxu0 %v6641_v45  ;;  %v6720_v44 = vld [vmem:[#allocation2 + $0x6e8] ss:$16 sps:$4 sm:$0xff]   ;;  %v6725_v45 = vld [vmem:[#allocation2 + $0x4cc] ss:$16 sps:$4 sm:$0xff]  }
  0xe9   :  { %1980 = vmatprep.subr.bf16.mxu1 %v6644_v46  ;;  %v6728_v46 = vld [vmem:[#allocation2 + $0x6cc] ss:$16 sps:$4 sm:$0xff]  }
  0xeb   :  { %1940 = vmatpush1.bf16.msra.mxu0 %v6639_v47  ;;  %v6723_v47 = vld [vmem:[#allocation2 + $0x4c8] ss:$16 sps:$4 sm:$0xff]  }
  0xec   :  { %1981 = vmatpush1.bf16.msra.mxu1 %v6642_v48  ;;  %1941 = vmatprep.subr.bf16.mxu0 %v6647_v50  ;;  %v6726_v48 = vld [vmem:[#allocation2 + $0x6c8] ss:$16 sps:$4 sm:$0xff]   ;;  %v6731_v50 = vld [vmem:[#allocation2 + $0x4ac] ss:$16 sps:$4 sm:$0xff]  }
  0xed   :  { %1982 = vmatprep.subr.bf16.mxu1 %v6650_v51  ;;  %v6734_v51 = vld [vmem:[#allocation2 + $0x6ac] ss:$16 sps:$4 sm:$0xff]  }
  0xef   :  { %1942 = vmatpush1.bf16.msra.mxu0 %v6645_v62  ;;  %v6729_v62 = vld [vmem:[#allocation2 + $0x4a8] ss:$16 sps:$4 sm:$0xff]  }
  0xf0   :  { %1983 = vmatpush1.bf16.msra.mxu1 %v6648_v3  ;;  %1943 = vmatprep.subr.bf16.mxu0 %v6653_v52  ;;  %v6732_v3 = vld [vmem:[#allocation2 + $0x6a8] ss:$16 sps:$4 sm:$0xff]   ;;  %v6737_v52 = vld [vmem:[#allocation2 + $0x48c] ss:$16 sps:$4 sm:$0xff]  }
  0xf1   :  { %1984 = vmatprep.subr.bf16.mxu1 %v6656_v54  ;;  %v6735_v54 = vld [vmem:[#allocation2 + $0x488] ss:$16 sps:$4 sm:$0xff]  }
  0xf3   :  { %1944 = vmatpush1.bf16.msra.mxu0 %v6651_v55  ;;  %v6743_v55 = vld [vmem:[#allocation2 + $0x46c] ss:$16 sps:$4 sm:$0xff]  }
  0xf4   :  { %1985 = vmatpush1.bf16.msra.mxu1 %v6654_v56  ;;  %1945 = vmatprep.subr.bf16.mxu0 %v6659_v58  ;;  %v6746_v56 = vld [vmem:[#allocation2 + $0x66c] ss:$16 sps:$4 sm:$0xff]   ;;  %v6741_v58 = vld [vmem:[#allocation2 + $0x468] ss:$16 sps:$4 sm:$0xff]  }
  0xf5   :  { %1986 = vmatprep.subr.bf16.mxu1 %v6662_v59  ;;  %v6744_v59 = vld [vmem:[#allocation2 + $0x668] ss:$16 sps:$4 sm:$0xff]  }
  0xf7   :  { %1946 = vmatpush1.bf16.msra.mxu0 %v6657_v60  ;;  %v6749_v60 = vld [vmem:[#allocation2 + $0x44c] ss:$16 sps:$4 sm:$0xff]  }
  0xf8   :  { %1987 = vmatpush1.bf16.msra.mxu1 %v6660_v61  ;;  %1947 = vmatprep.subr.bf16.mxu0 %v6665_v63  ;;  %v6750_v61 = vld [vmem:[#allocation2 + $0x648] ss:$16 sps:$4 sm:$0xff]   ;;  %v6755_v63 = vld [vmem:[#allocation2 + $0x42c] ss:$16 sps:$4 sm:$0xff]  }
  0xf9   :  { %1988 = vmatprep.subr.bf16.mxu1 %v6668_v0  ;;  %v6758_v0 = vld [vmem:[#allocation2 + $0x62c] ss:$16 sps:$4 sm:$0xff]  }
  0xfb   :  { %1948 = vmatpush1.bf16.msra.mxu0 %v6663_v1  ;;  %v6753_v1 = vld [vmem:[#allocation2 + $0x428] ss:$16 sps:$4 sm:$0xff]  }
  0xfc   :  { %1989 = vmatpush1.bf16.msra.mxu1 %v6666_v2  ;;  %1949 = vmatprep.subr.bf16.mxu0 %v6671_v4  ;;  %v6756_v2 = vld [vmem:[#allocation2 + $0x628] ss:$16 sps:$4 sm:$0xff]   ;;  %v6761_v4 = vld [vmem:[#allocation2 + $0x40c] ss:$16 sps:$4 sm:$0xff]  }
  0xfd   :  { %1990 = vmatprep.subr.bf16.mxu1 %v6674_v5  ;;  %v6764_v5 = vld [vmem:[#allocation2 + $0x60c] ss:$16 sps:$4 sm:$0xff]  }
  0xff   :  { %1950 = vmatpush2.bf16.msra.mxu0 %v6669_v6  ;;  %v6759_v6 = vld [vmem:[#allocation2 + $0x408] ss:$16 sps:$4 sm:$0xff]  }
 0x100   :  { %1991 = vmatpush2.bf16.msra.mxu1 %v6672_v7  ;;  %1951 = vmatprep.subr.bf16.mxu0 %v6677_v8  ;;  %v6762_v7 = vld [vmem:[#allocation2 + $0x608] ss:$16 sps:$4 sm:$0xff]   ;;  %v6767_v8 = vld [vmem:[#allocation2 + $0x5ec] ss:$16 sps:$4 sm:$0xff]  }
 0x101   :  { %1992 = vmatprep.subr.bf16.mxu1 %v6680_v9  ;;  %v6770_v9 = vld [vmem:[#allocation2 + $0x7ec] ss:$16 sps:$4 sm:$0xff]  }
 0x103   :  { %1952 = vmatpush2.bf16.msra.mxu0 %v6675_v10  ;;  %v6765_v10 = vld [vmem:[#allocation2 + $0x5e8] ss:$16 sps:$4 sm:$0xff]  }
 0x104   :  { %1993 = vmatpush2.bf16.msra.mxu1 %v6678_v11  ;;  %1953 = vmatprep.subr.bf16.mxu0 %v6683_v12  ;;  %v6768_v11 = vld [vmem:[#allocation2 + $0x7e8] ss:$16 sps:$4 sm:$0xff]   ;;  %v6773_v12 = vld [vmem:[#allocation2 + $0x5cc] ss:$16 sps:$4 sm:$0xff]  }
 0x105   :  { %1994 = vmatprep.subr.bf16.mxu1 %v6686_v13  ;;  %v6776_v13 = vld [vmem:[#allocation2 + $0x7cc] ss:$16 sps:$4 sm:$0xff]  }
 0x107   :  { %1954 = vmatpush2.bf16.msra.mxu0 %v6681_v14  ;;  %v6771_v14 = vld [vmem:[#allocation2 + $0x5c8] ss:$16 sps:$4 sm:$0xff]  }
 0x108   :  { %1995 = vmatpush2.bf16.msra.mxu1 %v6684_v15  ;;  %1955 = vmatprep.subr.bf16.mxu0 %v6689_v18  ;;  %v6774_v15 = vld [vmem:[#allocation2 + $0x7c8] ss:$16 sps:$4 sm:$0xff]   ;;  %v6779_v18 = vld [vmem:[#allocation2 + $0x5ac] ss:$16 sps:$4 sm:$0xff]  }
 0x109   :  { %1996 = vmatprep.subr.bf16.mxu1 %v6692_v19  ;;  %v6782_v19 = vld [vmem:[#allocation2 + $0x7ac] ss:$16 sps:$4 sm:$0xff]  }
 0x10b   :  { %1956 = vmatpush2.bf16.msra.mxu0 %v6687_v20  ;;  %v6777_v20 = vld [vmem:[#allocation2 + $0x5a8] ss:$16 sps:$4 sm:$0xff]  }
 0x10c   :  { %1997 = vmatpush2.bf16.msra.mxu1 %v6690_v21  ;;  %1957 = vmatprep.subr.bf16.mxu0 %v6695_v22  ;;  %v6780_v21 = vld [vmem:[#allocation2 + $0x7a8] ss:$16 sps:$4 sm:$0xff]   ;;  %v6785_v22 = vld [vmem:[#allocation2 + $0x58c] ss:$16 sps:$4 sm:$0xff]  }
 0x10d   :  { %1998 = vmatprep.subr.bf16.mxu1 %v6698_v23  ;;  %v6788_v23 = vld [vmem:[#allocation2 + $0x78c] ss:$16 sps:$4 sm:$0xff]  }
 0x10f   :  { %1958 = vmatpush2.bf16.msra.mxu0 %v6693_v24  ;;  %v6783_v24 = vld [vmem:[#allocation2 + $0x588] ss:$16 sps:$4 sm:$0xff]  }
 0x110   :  { %1999 = vmatpush2.bf16.msra.mxu1 %v6696_v25  ;;  %1959 = vmatprep.subr.bf16.mxu0 %v6701_v26  ;;  %v6786_v25 = vld [vmem:[#allocation2 + $0x788] ss:$16 sps:$4 sm:$0xff]   ;;  %v6791_v26 = vld [vmem:[#allocation2 + $0x56c] ss:$16 sps:$4 sm:$0xff]  }
 0x111   :  { %2000 = vmatprep.subr.bf16.mxu1 %v6704_v27  ;;  %v6794_v27 = vld [vmem:[#allocation2 + $0x76c] ss:$16 sps:$4 sm:$0xff]  }
 0x113   :  { %1960 = vmatpush2.bf16.msra.mxu0 %v6699_v28  ;;  %v6789_v28 = vld [vmem:[#allocation2 + $0x568] ss:$16 sps:$4 sm:$0xff]  }
 0x114   :  { %2001 = vmatpush2.bf16.msra.mxu1 %v6702_v29  ;;  %1961 = vmatprep.subr.bf16.mxu0 %v6707_v30  ;;  %v6792_v29 = vld [vmem:[#allocation2 + $0x768] ss:$16 sps:$4 sm:$0xff]   ;;  %v6797_v30 = vld [vmem:[#allocation2 + $0x54c] ss:$16 sps:$4 sm:$0xff]  }
 0x115   :  { %2002 = vmatprep.subr.bf16.mxu1 %v6710_v31  ;;  %v6800_v31 = vld [vmem:[#allocation2 + $0x74c] ss:$16 sps:$4 sm:$0xff]  }
 0x117   :  { %1962 = vmatpush2.bf16.msra.mxu0 %v6705_v34  ;;  %v6795_v34 = vld [vmem:[#allocation2 + $0x548] ss:$16 sps:$4 sm:$0xff]  }
 0x118   :  { %2003 = vmatpush2.bf16.msra.mxu1 %v6708_v35  ;;  %1963 = vmatprep.subr.bf16.mxu0 %v6713_v36  ;;  %v6798_v35 = vld [vmem:[#allocation2 + $0x748] ss:$16 sps:$4 sm:$0xff]   ;;  %v6803_v36 = vld [vmem:[#allocation2 + $0x52c] ss:$16 sps:$4 sm:$0xff]  }
 0x119   :  { %2004 = vmatprep.subr.bf16.mxu1 %v6716_v37  ;;  %v6806_v37 = vld [vmem:[#allocation2 + $0x72c] ss:$16 sps:$4 sm:$0xff]  }
 0x11b   :  { %1964 = vmatpush2.bf16.msra.mxu0 %v6711_v38  ;;  %v6801_v38 = vld [vmem:[#allocation2 + $0x528] ss:$16 sps:$4 sm:$0xff]  }
 0x11c   :  { %2005 = vmatpush2.bf16.msra.mxu1 %v6714_v39  ;;  %2015 = vmatprep.subr.bf16.mxu0 %v6719_v40  ;;  %v6804_v39 = vld [vmem:[#allocation2 + $0x728] ss:$16 sps:$4 sm:$0xff]   ;;  %v6809_v40 = vld [vmem:[#allocation2 + $0x50c] ss:$16 sps:$4 sm:$0xff]  }
 0x11d   :  { %2056 = vmatprep.subr.bf16.mxu1 %v6722_v41  ;;  %v6812_v41 = vld [vmem:[#allocation2 + $0x70c] ss:$16 sps:$4 sm:$0xff]  }
 0x11e   :  { %1966 = vmatmul.mubr.bf16.vlgmr.msra.gmra.mxu0 %v7392_v16  ;;  %v6740_v16 = vld [vmem:[#allocation2 + $0x68c] ss:$16 sps:$4 sm:$0xff]  }
 0x11f   :  { %2007 = vmatmul.mubr.bf16.vlgmr.msra.gmra.mxu1 %v7394_v17  ;;  %2016 = vmatpush1.bf16.msra.mxu0 %v6717_v42  ;;  %v6738_v17 = vld [vmem:[#allocation2 + $0x688] ss:$16 sps:$4 sm:$0xff]  }
 0x120   :  { %2057 = vmatpush1.bf16.msra.mxu1 %v6720_v44  ;;  %2017 = vmatprep.subr.bf16.mxu0 %v6725_v45  ;;  %v6807_v42 = vld [vmem:[#allocation2 + $0x508] ss:$16 sps:$4 sm:$0xff]   ;;  %v6815_v45 = vld [vmem:[#allocation4 + $0x74] ss:$8 sps:$4 sm:$0xff]  }
 0x121   :  { %2058 = vmatprep.subr.bf16.mxu1 %v6728_v46  ;;  %2047 = vmatprep.mubr.bf16.mxu0 %v7409_v53  ;;  %v6752_v53 = vld [vmem:[#allocation2 + $0x64c] ss:$16 sps:$4 sm:$0xff]   ;;  %v6810_v44 = vld [vmem:[#allocation2 + $0x708] ss:$16 sps:$4 sm:$0xff]  }
 0x122   :  { %2088 = vmatprep.mubr.bf16.mxu1 %v7413_v57  ;;  %v6747_v57 = vld [vmem:[#allocation2 + $0x448] ss:$16 sps:$4 sm:$0xff]  }
 0x123   :  { %2018 = vmatpush1.bf16.msra.mxu0 %v6723_v47  ;;  %v6813_v46 = vld [vmem:[#allocation4 + $0x70] ss:$8 sps:$4 sm:$0xff]   ;;  %v6818_v47 = vld [vmem:[#allocation4 + $0x64] ss:$8 sps:$4 sm:$0xff]  }
 0x124   :  { %2059 = vmatpush1.bf16.msra.mxu1 %v6726_v48  ;;  %2019 = vmatprep.subr.bf16.mxu0 %v6731_v50 }
 0x125   :  { %2060 = vmatprep.subr.bf16.mxu1 %v6734_v51  ;;  %v6816_v51 = vld [vmem:[#allocation4 + $0x60] ss:$8 sps:$4 sm:$0xff]  }
 0x127   :  { %2020 = vmatpush1.bf16.msra.mxu0 %v6729_v62 }
 0x128   :  { %2061 = vmatpush1.bf16.msra.mxu1 %v6732_v3  ;;  %2021 = vmatprep.subr.bf16.mxu0 %v6737_v52  ;;  %v6821_v52 = vld [vmem:[#allocation4 + $0x54] ss:$8 sps:$4 sm:$0xff]  }
 0x129   :  { %2062 = vmatprep.subr.bf16.mxu1 %v6740_v16 }
 0x12b   :  { %2022 = vmatpush1.bf16.msra.mxu0 %v6735_v54 }
 0x12c   :  { %2063 = vmatpush1.bf16.msra.mxu1 %v6738_v17  ;;  %2023 = vmatprep.subr.bf16.mxu0 %v6743_v55  ;;  %v6819_v17 = vld [vmem:[#allocation4 + $0x50] ss:$8 sps:$4 sm:$0xff]  }
 0x12d   :  { %2064 = vmatprep.subr.bf16.mxu1 %v6746_v56 }
 0x12f   :  { %2024 = vmatpush1.bf16.msra.mxu0 %v6741_v58  ;;  %v6824_v58 = vld [vmem:[#allocation4 + $0x44] ss:$8 sps:$4 sm:$0xff]  }
 0x130   :  { %2065 = vmatpush1.bf16.msra.mxu1 %v6744_v59  ;;  %2025 = vmatprep.subr.bf16.mxu0 %v6749_v60  ;;  %v6861_v59 = vld [vmem:[#allocation4 + $0x170] ss:$8 sps:$4 sm:$0xff]   ;;  %v6866_v60 = vld [vmem:[#allocation4 + $0x164] ss:$8 sps:$4 sm:$0xff]  }
 0x131   :  { %2066 = vmatprep.subr.bf16.mxu1 %v6752_v53  ;;  %v6864_v53 = vld [vmem:[#allocation4 + $0x160] ss:$8 sps:$4 sm:$0xff]  }
 0x133   :  { %2026 = vmatpush1.bf16.msra.mxu0 %v6747_v57  ;;  %v6827_v57 = vld [vmem:[#allocation4 + $0x34] ss:$8 sps:$4 sm:$0xff]  }
 0x134   :  { %2067 = vmatpush1.bf16.msra.mxu1 %v6750_v61  ;;  %2027 = vmatprep.subr.bf16.mxu0 %v6755_v63  ;;  %v6869_v61 = vld [vmem:[#allocation4 + $0x154] ss:$8 sps:$4 sm:$0xff]   ;;  %v6825_v63 = vld [vmem:[#allocation4 + $0x30] ss:$8 sps:$4 sm:$0xff]  }
 0x135   :  { %2068 = vmatprep.subr.bf16.mxu1 %v6758_v0  ;;  %v6867_v0 = vld [vmem:[#allocation4 + $0x150] ss:$8 sps:$4 sm:$0xff]  }
 0x137   :  { %2028 = vmatpush1.bf16.msra.mxu0 %v6753_v1  ;;  %v6830_v1 = vld [vmem:[#allocation4 + $0x24] ss:$8 sps:$4 sm:$0xff]  }
 0x138   :  { %2069 = vmatpush1.bf16.msra.mxu1 %v6756_v2  ;;  %2029 = vmatprep.subr.bf16.mxu0 %v6761_v4  ;;  %v6872_v2 = vld [vmem:[#allocation4 + $0x144] ss:$8 sps:$4 sm:$0xff]   ;;  %v6828_v4 = vld [vmem:[#allocation4 + $0x20] ss:$8 sps:$4 sm:$0xff]  }
 0x139   :  { %2070 = vmatprep.subr.bf16.mxu1 %v6764_v5  ;;  %v6870_v5 = vld [vmem:[#allocation4 + $0x140] ss:$8 sps:$4 sm:$0xff]  }
 0x13b   :  { %2030 = vmatpush1.bf16.msra.mxu0 %v6759_v6  ;;  %v6833_v6 = vld [vmem:[#allocation4 + $0x14] ss:$8 sps:$4 sm:$0xff]  }
 0x13c   :  { %2071 = vmatpush1.bf16.msra.mxu1 %v6762_v7  ;;  %2031 = vmatprep.subr.bf16.mxu0 %v6767_v8  ;;  %v6875_v7 = vld [vmem:[#allocation4 + $0x134] ss:$8 sps:$4 sm:$0xff]   ;;  %v6831_v8 = vld [vmem:[#allocation4 + $0x10] ss:$8 sps:$4 sm:$0xff]  }
 0x13d   :  { %2072 = vmatprep.subr.bf16.mxu1 %v6770_v9  ;;  %v6873_v9 = vld [vmem:[#allocation4 + $0x130] ss:$8 sps:$4 sm:$0xff]  }
 0x13f   :  { %2032 = vmatpush2.bf16.msra.mxu0 %v6765_v10  ;;  %v6836_v10 = vld [vmem:[#allocation4 + $0x4] ss:$8 sps:$4 sm:$0xff]  }
 0x140   :  { %2073 = vmatpush2.bf16.msra.mxu1 %v6768_v11  ;;  %2033 = vmatprep.subr.bf16.mxu0 %v6773_v12  ;;  %v6878_v11 = vld [vmem:[#allocation4 + $0x124] ss:$8 sps:$4 sm:$0xff]   ;;  %v6834_v12 = vld [vmem:[#allocation4] ss:$8 sps:$4 sm:$0xff]  }
 0x141   :  { %2074 = vmatprep.subr.bf16.mxu1 %v6776_v13  ;;  %v6876_v13 = vld [vmem:[#allocation4 + $0x120] ss:$8 sps:$4 sm:$0xff]  }
 0x143   :  { %2034 = vmatpush2.bf16.msra.mxu0 %v6771_v14  ;;  %v6839_v14 = vld [vmem:[#allocation4 + $0xf4] ss:$8 sps:$4 sm:$0xff]  }
 0x144   :  { %2075 = vmatpush2.bf16.msra.mxu1 %v6774_v15  ;;  %2035 = vmatprep.subr.bf16.mxu0 %v6779_v18  ;;  %v6881_v15 = vld [vmem:[#allocation4 + $0x114] ss:$8 sps:$4 sm:$0xff]   ;;  %v6837_v18 = vld [vmem:[#allocation4 + $0xf0] ss:$8 sps:$4 sm:$0xff]  }
 0x145   :  { %2076 = vmatprep.subr.bf16.mxu1 %v6782_v19  ;;  %v6879_v19 = vld [vmem:[#allocation4 + $0x110] ss:$8 sps:$4 sm:$0xff]  }
 0x147   :  { %2036 = vmatpush2.bf16.msra.mxu0 %v6777_v20  ;;  %v6842_v20 = vld [vmem:[#allocation4 + $0xe4] ss:$8 sps:$4 sm:$0xff]  }
 0x148   :  { %2077 = vmatpush2.bf16.msra.mxu1 %v6780_v21  ;;  %2037 = vmatprep.subr.bf16.mxu0 %v6785_v22  ;;  %v6884_v21 = vld [vmem:[#allocation4 + $0x104] ss:$8 sps:$4 sm:$0xff]   ;;  %v6840_v22 = vld [vmem:[#allocation4 + $0xe0] ss:$8 sps:$4 sm:$0xff]  }
 0x149   :  { %2078 = vmatprep.subr.bf16.mxu1 %v6788_v23  ;;  %v6882_v23 = vld [vmem:[#allocation4 + $0x100] ss:$8 sps:$4 sm:$0xff]  }
 0x14b   :  { %2038 = vmatpush2.bf16.msra.mxu0 %v6783_v24  ;;  %v6845_v24 = vld [vmem:[#allocation4 + $0xd4] ss:$8 sps:$4 sm:$0xff]  }
 0x14c   :  { %2079 = vmatpush2.bf16.msra.mxu1 %v6786_v25  ;;  %2039 = vmatprep.subr.bf16.mxu0 %v6791_v26  ;;  %v6887_v25 = vld [vmem:[#allocation4 + $0x1f4] ss:$8 sps:$4 sm:$0xff]   ;;  %v6843_v26 = vld [vmem:[#allocation4 + $0xd0] ss:$8 sps:$4 sm:$0xff]  }
 0x14d   :  { %2080 = vmatprep.subr.bf16.mxu1 %v6794_v27  ;;  %v6885_v27 = vld [vmem:[#allocation4 + $0x1f0] ss:$8 sps:$4 sm:$0xff]  }
 0x14f   :  { %2040 = vmatpush2.bf16.msra.mxu0 %v6789_v28  ;;  %v6848_v28 = vld [vmem:[#allocation4 + $0xc4] ss:$8 sps:$4 sm:$0xff]  }
 0x150   :  { %2081 = vmatpush2.bf16.msra.mxu1 %v6792_v29  ;;  %2041 = vmatprep.subr.bf16.mxu0 %v6797_v30  ;;  %v6890_v29 = vld [vmem:[#allocation4 + $0x1e4] ss:$8 sps:$4 sm:$0xff]   ;;  %v6846_v30 = vld [vmem:[#allocation4 + $0xc0] ss:$8 sps:$4 sm:$0xff]  }
 0x151   :  { %2082 = vmatprep.subr.bf16.mxu1 %v6800_v31  ;;  %v6888_v31 = vld [vmem:[#allocation4 + $0x1e0] ss:$8 sps:$4 sm:$0xff]  }
 0x153   :  { %2042 = vmatpush2.bf16.msra.mxu0 %v6795_v34  ;;  %v6851_v34 = vld [vmem:[#allocation4 + $0xb4] ss:$8 sps:$4 sm:$0xff]  }
 0x154   :  { %2083 = vmatpush2.bf16.msra.mxu1 %v6798_v35  ;;  %2043 = vmatprep.subr.bf16.mxu0 %v6803_v36  ;;  %v6893_v35 = vld [vmem:[#allocation4 + $0x1d4] ss:$8 sps:$4 sm:$0xff]   ;;  %v6849_v36 = vld [vmem:[#allocation4 + $0xb0] ss:$8 sps:$4 sm:$0xff]  }
 0x155   :  { %2084 = vmatprep.subr.bf16.mxu1 %v6806_v37  ;;  %v6891_v37 = vld [vmem:[#allocation4 + $0x1d0] ss:$8 sps:$4 sm:$0xff]  }
 0x157   :  { %2044 = vmatpush2.bf16.msra.mxu0 %v6801_v38  ;;  %v6854_v38 = vld [vmem:[#allocation4 + $0xa4] ss:$8 sps:$4 sm:$0xff]  }
 0x158   :  { %2085 = vmatpush2.bf16.msra.mxu1 %v6804_v39  ;;  %2045 = vmatprep.subr.bf16.mxu0 %v6809_v40  ;;  %v6896_v39 = vld [vmem:[#allocation4 + $0x1c4] ss:$8 sps:$4 sm:$0xff]   ;;  %v6852_v40 = vld [vmem:[#allocation4 + $0xa0] ss:$8 sps:$4 sm:$0xff]  }
 0x159   :  { %2086 = vmatprep.subr.bf16.mxu1 %v6812_v41  ;;  %v6894_v41 = vld [vmem:[#allocation4 + $0x1c0] ss:$8 sps:$4 sm:$0xff]  }
 0x15b   :  { %2046 = vmatpush2.bf16.msra.mxu0 %v6807_v42  ;;  %v6857_v42 = vld [vmem:[#allocation4 + $0x94] ss:$8 sps:$4 sm:$0xff]  }
 0x15c   :  { %2087 = vmatpush2.bf16.msra.mxu1 %v6810_v44  ;;  %2501 = vmatprep.subr.bf16.mxu0 %v6815_v45  ;;  %v6899_v44 = vld [vmem:[#allocation4 + $0x1b4] ss:$8 sps:$4 sm:$0xff]   ;;  %v7444_v45 = vsub.s32 0, %v7376_v43 }
 0x15e   :  { %v7433_v48 = vpop.f32.mrf.mxu0  ;;  %2048 = vmatmul.mubr.bf16.vlgmr.msra.gmra.mxu0 %v7419_v32  ;;  %v6863_v32 = vld [vmem:[#allocation4 + $0x174] ss:$8 sps:$4 sm:$0xff]  }
 0x15f   :  { %v7435_v50 = vpop.f32.mrf.mxu1  ;;  %2089 = vmatmul.mubr.bf16.vlgmr.msra.gmra.mxu1 %v7423_v33  ;;  %2502 = vmatpush1.bf16.msra.mxu0 %v6813_v46  ;;  %v6822_v33 = vld [vmem:[#allocation4 + $0x40] ss:$8 sps:$4 sm:$0xff]  }
 0x160   :  { %v7439_v62 = vpop.f32.mrf.mxu0  ;;  %2503 = vmatprep.subr.bf16.mxu0 %v6818_v47  ;;  %2542 = vmatprep.subr.bf16.mxu1 %v6863_v32  ;;  %v7449_v46 = vld [vmem:[%s7629_s20] sm:$0xf]  ;;  %v7452_v47 = vsub.s32 1, %v7376_v43 }
 0x161   :  { %v7441_v3 = vpop.f32.mrf.mxu1  ;;  %2543 = vmatpush1.bf16.msra.mxu1 %v6861_v59  ;;  %v6902_v59 = vld [vmem:[#allocation4 + $0x1a4] ss:$8 sps:$4 sm:$0xff]  }
 0x162   :  { %v1807_v16 = vpop.f32.mrf.mxu0  ;;  %2544 = vmatprep.subr.bf16.mxu1 %v6866_v60  ;;  %v6900_v60 = vld [vmem:[#allocation4 + $0x1a0] ss:$8 sps:$4 sm:$0xff]  }
 0x163   :  { %v1848_v54 = vpop.f32.mrf.mxu1  ;;  %2504 = vmatpush1.bf16.msra.mxu0 %v6816_v51  ;;  %v6855_v51 = vld [vmem:[#allocation4 + $0x90] ss:$8 sps:$4 sm:$0xff]   ;;  %v6860_v16 = vld [vmem:[#allocation4 + $0x84] ss:$8 sps:$4 sm:$0xff]  }
 0x164   :  { %v1808_v55 = vpop.f32.mrf.mxu0  ;;  %2505 = vmatprep.subr.bf16.mxu0 %v6821_v52  ;;  %v6897_v52 = vld [vmem:[#allocation4 + $0x1b0] ss:$8 sps:$4 sm:$0xff]   ;;  %v472_v54 = vrot.slane %v7449_v46, %v7444_v45 }
 0x165   :  { %v1849_v56 = vpop.f32.mrf.mxu1  ;;  %2545 = vmatpush1.bf16.msra.mxu1 %v6864_v53  ;;  %v6858_v55 = vld [vmem:[#allocation4 + $0x80] ss:$8 sps:$4 sm:$0xff]  }
 0x166   :  { %2546 = vmatprep.subr.bf16.mxu1 %v6869_v61  ;;  %v1804_v56 = vadd.f32 %v7433_v48, %v472_v54  ;;  %v6903_v48 = vld [vmem:[#allocation4 + $0x190] ss:$8 sps:$4 sm:$0xff]  }
 0x167   :  { %2506 = vmatpush1.bf16.msra.mxu0 %v6819_v17  ;;  %v476_v17 = vrot.slane %v7449_v46, %v7452_v47 }
 0x168   :  { %2507 = vmatprep.subr.bf16.mxu0 %v6824_v58  ;;  %v1845_v32 = vadd.f32 %v7435_v50, %v1804_v56 }
 0x169   :  { %2547 = vmatpush1.bf16.msra.mxu1 %v6867_v0  ;;  %v1806_v58 = vadd.f32 %v7439_v62, %v476_v17 }
 0x16a   :  { %2548 = vmatprep.subr.bf16.mxu1 %v6872_v2 }
 0x16b   :  { %2508 = vmatpush1.bf16.msra.mxu0 %v6822_v33 }
 0x16c   :  { %2509 = vmatprep.subr.bf16.mxu0 %v6827_v57  ;;  %v1847_v57 = vadd.f32 %v7441_v3, %v1806_v58 }
 0x16d   :  { %2549 = vmatpush1.bf16.msra.mxu1 %v6870_v5 }
 0x16e   :  { %2550 = vmatprep.subr.bf16.mxu1 %v6875_v7 }
 0x16f   :  { %2510 = vmatpush1.bf16.msra.mxu0 %v6825_v63 }
 0x170   :  { %2511 = vmatprep.subr.bf16.mxu0 %v6830_v1  ;;  %v6905_v1 = vld [vmem:[#allocation4 + $0x194] ss:$8 sps:$4 sm:$0xff]  }
 0x171   :  { %2551 = vmatpush1.bf16.msra.mxu1 %v6873_v9  ;;  %v6908_v9 = vld [vmem:[#allocation4 + $0x184] ss:$8 sps:$4 sm:$0xff]  }
 0x172   :  { %2552 = vmatprep.subr.bf16.mxu1 %v6878_v11  ;;  %v6906_v11 = vld [vmem:[#allocation4 + $0x180] ss:$8 sps:$4 sm:$0xff]  }
 0x173   :  { %2512 = vmatpush1.bf16.msra.mxu0 %v6828_v4 }
 0x174   :  { %2513 = vmatprep.subr.bf16.mxu0 %v6833_v6 }
 0x175   :  { %2553 = vmatpush1.bf16.msra.mxu1 %v6876_v13 }
 0x176   :  { %2554 = vmatprep.subr.bf16.mxu1 %v6881_v15 }
 0x177   :  { %2514 = vmatpush1.bf16.msra.mxu0 %v6831_v8 }
 0x178   :  { %2515 = vmatprep.subr.bf16.mxu0 %v6836_v10 }
 0x179   :  { %2555 = vmatpush1.bf16.msra.mxu1 %v6879_v19 }
 0x17a   :  { %2556 = vmatprep.subr.bf16.mxu1 %v6884_v21 }
 0x17b   :  { %2516 = vmatpush1.bf16.msra.mxu0 %v6834_v12 }
 0x17c   :  { %2517 = vmatprep.subr.bf16.mxu0 %v6839_v14 }
 0x17d   :  { %2557 = vmatpush1.bf16.msra.mxu1 %v6882_v23  ;;  %v6909_v23 = vld [vmem:[%s7608_s6 + $0x78] sm:$0xff]  }
 0x17e   :  { %2558 = vmatprep.subr.bf16.mxu1 %v6887_v25  ;;  %v6911_v25 = vld [vmem:[%s7608_s6 + $0x70] sm:$0xff]  }
 0x17f   :  { %2518 = vmatpush2.bf16.msra.mxu0 %v6837_v18 }
 0x180   :  { %2519 = vmatprep.subr.bf16.mxu0 %v6842_v20 }
 0x181   :  { %2559 = vmatpush2.bf16.msra.mxu1 %v6885_v27  ;;  %v6913_v27 = vld [vmem:[%s7608_s6 + $0x68] sm:$0xff]  }
 0x182   :  { %2560 = vmatprep.subr.bf16.mxu1 %v6890_v29  ;;  %v6915_v29 = vld [vmem:[%s7608_s6 + $0x60] sm:$0xff]  }
 0x183   :  { %2520 = vmatpush2.bf16.msra.mxu0 %v6840_v22 }
 0x184   :  { %2521 = vmatprep.subr.bf16.mxu0 %v6845_v24  ;;  %v6910_v24 = vld [vmem:[%s7608_s6 + $0x38] sm:$0xff]  }
 0x185   :  { %2561 = vmatpush2.bf16.msra.mxu1 %v6888_v31  ;;  %v6917_v31 = vld [vmem:[%s7608_s6 + $0x58] sm:$0xff]  }
 0x186   :  { %2562 = vmatprep.subr.bf16.mxu1 %v6893_v35  ;;  %v6919_v35 = vld [vmem:[%s7608_s6 + $0x50] sm:$0xff]  }
 0x187   :  { %2522 = vmatpush2.bf16.msra.mxu0 %v6843_v26  ;;  %v6912_v26 = vld [vmem:[%s7608_s6 + $0x30] sm:$0xff]  }
 0x188   :  { %2523 = vmatprep.subr.bf16.mxu0 %v6848_v28  ;;  %v6914_v28 = vld [vmem:[%s7608_s6 + $0x28] sm:$0xff]  }
 0x189   :  { %2563 = vmatpush2.bf16.msra.mxu1 %v6891_v37  ;;  %v7499_v37 = vsub.s32 2, %v7376_v43 }
 0x18a   :  { %2564 = vmatprep.subr.bf16.mxu1 %v6896_v39 }
 0x18b   :  { %2524 = vmatpush2.bf16.msra.mxu0 %v6846_v30  ;;  %v6916_v30 = vld [vmem:[%s7608_s6 + $0x20] sm:$0xff]   ;;  %v480_v39 = vrot.slane %v7449_v46, %v7499_v37 }
 0x18c   :  { %2525 = vmatprep.subr.bf16.mxu0 %v6851_v34  ;;  %v6918_v34 = vld [vmem:[%s7608_s6 + $0x18] sm:$0xff]  }
 0x18d   :  { %2565 = vmatpush2.bf16.msra.mxu1 %v6894_v41 }
 0x18e   :  { %2566 = vmatprep.subr.bf16.mxu1 %v6899_v44 }
 0x18f   :  { %2526 = vmatpush2.bf16.msra.mxu0 %v6849_v36  ;;  %v6920_v36 = vld [vmem:[%s7608_s6 + $0x10] sm:$0xff]  }
 0x190   :  { %2527 = vmatprep.subr.bf16.mxu0 %v6854_v38  ;;  %v7502_v38 = vsub.s32 3, %v7376_v43 }
 0x191   :  { %2567 = vmatpush2.bf16.msra.mxu1 %v6897_v52 }
 0x192   :  { %2568 = vmatprep.subr.bf16.mxu1 %v6902_v59 }
 0x193   :  { %2528 = vmatpush2.bf16.msra.mxu0 %v6852_v40  ;;  %v484_v40 = vrot.slane %v7449_v46, %v7502_v38 }
 0x194   :  { %2529 = vmatprep.subr.bf16.mxu0 %v6857_v42 }
 0x195   :  { %2569 = vmatpush2.bf16.msra.mxu1 %v6900_v60 }
 0x196   :  { %2570 = vmatprep.subr.bf16.mxu1 %v6905_v1  ;;  %v6921_v1 = vld [vmem:[%s7608_s6 + $0x48] sm:$0xff]  }
 0x197   :  { %2530 = vmatpush2.bf16.msra.mxu0 %v6855_v51 }
 0x198   :  { %2531 = vmatprep.subr.bf16.mxu0 %v6860_v16 }
 0x199   :  { %2571 = vmatpush2.bf16.msra.mxu1 %v6903_v48 }
 0x19a   :  { %2572 = vmatprep.subr.bf16.mxu1 %v6908_v9  ;;  %v6928_v9 = vld [vmem:[#allocation6 + $0x60] ss:$8 sps:$4 sm:$0xff]  }
 0x19b   :  { %2532 = vmatpush2.bf16.msra.mxu0 %v6858_v55 }
 0x19c   :  { %6357 = vmatprep.subr.bf16.mxu0 %v6909_v23 }
 0x19d   :  { %2573 = vmatpush2.bf16.msra.mxu1 %v6906_v11  ;;  %v6931_v11 = vld [vmem:[#allocation6 + $0x50] ss:$8 sps:$4 sm:$0xff]  }
 0x19e   :  { %v1885_v33 = vpop.f32.mrf.mxu0 }
 0x19f   :  { %v1926_v53 = vpop.f32.mrf.mxu1  ;;  %v1886_v61 = vadd.f32 %v1885_v33, %v1845_v32 }
 0x1a0   :  { %v1887_v63 = vpop.f32.mrf.mxu0 }
 0x1a1   :  { %v1928_v0 = vpop.f32.mrf.mxu1  ;;  %v1927_v2 = vadd.f32 %v1926_v53, %v1886_v61  ;;  %v1888_v4 = vadd.f32 %v1887_v63, %v1847_v57 }
 0x1a2   :  { %v1889_v5 = vpop.f32.mrf.mxu0 }
 0x1a3   :  { %v1930_v62 = vpop.f32.mrf.mxu1  ;;  %v1929_v6 = vadd.f32 %v1928_v0, %v1888_v4  ;;  %v2097_v50 = vmax.f32 %v1927_v2, 0.0  ;;  %v6922_v2 = vld [vmem:[%s7608_s6 + $0x8] sm:$0xff]   ;;  %v6923_v5 = vld [vmem:[%s7608_s6 + $0x40] sm:$0xff]  }
 0x1a4   :  { %v1890_v7 = vpop.f32.mrf.mxu0  ;;  %v6924_v62 = vld [vmem:[%s7608_s6] sm:$0xff]  }
 0x1a5   :  { %v1931_v8 = vpop.f32.mrf.mxu1  ;;  %v2098_v10 = vmax.f32 %v1929_v6, 0.0  ;;  %v2101_v12 = vpack.c.bf16 %v2097_v50, %v2097_v50  ;;  %v6925_v50 = vld [vmem:[#allocation6 + $0x70] ss:$8 sps:$4 sm:$0xff]   ;;  %v6927_v7 = vld [vmem:[#allocation6 + $0x74] ss:$8 sps:$4 sm:$0xff]  }
 0x1a6   :  { %v6930_v8 = vld [vmem:[#allocation6 + $0x64] ss:$8 sps:$4 sm:$0xff]   ;;  %2872 = vmatprep.subr.bf16.mxu1 %v6927_v7  ;;  %v6969_v7 = vld [vmem:[#allocation9 + $0x30] ss:$8 sps:$4 sm:$0xff]  }
 0x1a7   :  { %v2102_v3 = vpack.c.bf16 %v2098_v10, %v2098_v10  ;;  %v6933_v10 = vld [vmem:[#allocation6 + $0x54] ss:$8 sps:$4 sm:$0xff]  }
 0x1a9   :  { %2533 = vmatprep.mubr.bf16.mxu0 %v2102_v3  ;;  %v6936_v3 = vld [vmem:[#allocation6 + $0x44] ss:$8 sps:$4 sm:$0xff]  }
 0x1aa   :  { %2534 = vmatmul.mubr.bf16.vlgmr.msra.gmra.mxu0 %v2101_v12  ;;  %v6934_v12 = vld [vmem:[#allocation6 + $0x40] ss:$8 sps:$4 sm:$0xff]  }
 0x1ab   :  { %6358 = vmatpush3.bf16.msra.mxu0 %v6910_v24 }
 0x1ac   :  { %6359 = vmatprep.subr.bf16.mxu0 %v6911_v25 }
 0x1af   :  { %6360 = vmatpush3.bf16.msra.mxu0 %v6912_v26 }
 0x1b0   :  { %6361 = vmatprep.subr.bf16.mxu0 %v6913_v27 }
 0x1b3   :  { %6362 = vmatpush3.bf16.msra.mxu0 %v6914_v28 }
 0x1b4   :  { %6363 = vmatprep.subr.bf16.mxu0 %v6915_v29 }
 0x1b7   :  { %6364 = vmatpush3.bf16.msra.mxu0 %v6916_v30 }
 0x1b8   :  { %6365 = vmatprep.subr.bf16.mxu0 %v6917_v31 }
 0x1bb   :  { %6366 = vmatpush3.bf16.msra.mxu0 %v6918_v34 }
 0x1bc   :  { %6367 = vmatprep.subr.bf16.mxu0 %v6919_v35 }
 0x1bf   :  { %6368 = vmatpush3.bf16.msra.mxu0 %v6920_v36  ;;  %v6945_v36 = vld [vmem:[#allocation6 + $0x14] ss:$8 sps:$4 sm:$0xff]  }
 0x1c0   :  { %6369 = vmatprep.subr.bf16.mxu0 %v6921_v1  ;;  %v6959_v1 = vld [vmem:[#allocation9 + $0x74] ss:$8 sps:$4 sm:$0xff]  }
 0x1c3   :  { %6370 = vmatpush3.bf16.msra.mxu0 %v6922_v2  ;;  %v6962_v2 = vld [vmem:[#allocation9 + $0x64] ss:$8 sps:$4 sm:$0xff]  }
 0x1c4   :  { %6371 = vmatprep.subr.bf16.mxu0 %v6923_v5  ;;  %v6963_v5 = vld [vmem:[#allocation9 + $0x50] ss:$8 sps:$4 sm:$0xff]  }
 0x1c7   :  { %6372 = vmatpush3.bf16.msra.mxu0 %v6924_v62  ;;  %v6968_v62 = vld [vmem:[#allocation9 + $0x44] ss:$8 sps:$4 sm:$0xff]  }
 0x1de   :  { %v1967_v13 = vpop.f32.mrf.mxu0 }
 0x1df   :  { %v2008_v14 = vpop.f32.mrf.mxu1  ;;  %v1968_v41 = vadd.f32 %v1967_v13, %v480_v39  ;;  %v6939_v13 = vld [vmem:[#allocation6 + $0x34] ss:$8 sps:$4 sm:$0xff]   ;;  %v6943_v39 = vld [vmem:[#allocation6 + $0x10] ss:$8 sps:$4 sm:$0xff]  }
 0x1e0   :  { %v1969_v15 = vpop.f32.mrf.mxu0 }
 0x1e1   :  { %v2010_v18 = vpop.f32.mrf.mxu1  ;;  %v1970_v42 = vadd.f32 %v1969_v15, %v484_v40  ;;  %v2009_v44 = vadd.f32 %v2008_v14, %v1968_v41  ;;  %v6937_v14 = vld [vmem:[#allocation6 + $0x30] ss:$8 sps:$4 sm:$0xff]   ;;  %v6942_v15 = vld [vmem:[#allocation6 + $0x24] ss:$8 sps:$4 sm:$0xff]   ;;  %v6946_v41 = vld [vmem:[#allocation6] ss:$8 sps:$4 sm:$0xff]  }
 0x1e2   :  { %v1971_v19 = vpop.f32.mrf.mxu0  ;;  %v6948_v40 = vld [vmem:[#allocation6 + $0x4] ss:$8 sps:$4 sm:$0xff]  }
 0x1e3   :  { %v2012_v20 = vpop.f32.mrf.mxu1  ;;  %v2011_v16 = vadd.f32 %v2010_v18, %v1970_v42  ;;  %v6940_v18 = vld [vmem:[#allocation6 + $0x20] ss:$8 sps:$4 sm:$0xff]   ;;  %v7243_v42 = vmov 0  }
 0x1e4   :  { %v1972_v21 = vpop.f32.mrf.mxu0  ;;  %v2169_v19 = vld [vmem:[%s7607_s5] sm:$0x3] }
 0x1e5   :  { %v2013_v22 = vpop.f32.mrf.mxu1  ;;  %v2174_v20 = vrot.slane %v2169_v19, %v7444_v45  ;;  %v2178_v21 = vrot.slane %v2169_v19, %v7452_v47 }
 0x21e   :  { %v2049_v51 = vpop.f32.mrf.mxu0 }
 0x21f   :  { %v2090_v52 = vpop.f32.mrf.mxu1  ;;  %v2050_v54 = vadd.f32 %v2049_v51, %v2009_v44  ;;  %v6949_v44 = vld [vmem:[#allocation7 + $0x38] sm:$0xff]   ;;  %v7244_v51 = vmov 0.0  }
 0x220   :  { %v2051_v17 = vpop.f32.mrf.mxu0  ;;  %6388 = vmatprep.subr.bf16.mxu0 %v7244_v51 }
 0x221   :  { %v2092_v55 = vpop.f32.mrf.mxu1  ;;  %v2091_v56 = vadd.f32 %v2090_v52, %v2050_v54  ;;  %v2052_v58 = vadd.f32 %v2051_v17, %v2011_v16  ;;  %v5978_v16 = vld [vmem:[%s7609_s7] ss:$0 sm:$0xff] }
 0x222   :  { %v2053_v59 = vpop.f32.mrf.mxu0 }
 0x223   :  { %v2094_v32 = vpop.f32.mrf.mxu1  ;;  %v2093_v60 = vadd.f32 %v2092_v55, %v2052_v58  ;;  %v2099_v33 = vmax.f32 %v2091_v56, 0.0 }
 0x224   :  { %v2054_v53 = vpop.f32.mrf.mxu0 }
 0x225   :  { %v2095_v57 = vpop.f32.mrf.mxu1  ;;  %v2100_v61 = vmax.f32 %v2093_v60, 0.0  ;;  %v2103_v46 = vpack.c.bf16 %v2099_v33, %v2099_v33  ;;  %v6950_v60 = vld [vmem:[#allocation7 + $0x30] sm:$0xff]   ;;  %v6951_v33 = vld [vmem:[#allocation7 + $0x28] sm:$0xff]   ;;  %v6952_v53 = vld [vmem:[#allocation7 + $0x20] sm:$0xff]  }
 0x226   :  { %v6953_v57 = vld [vmem:[#allocation7 + $0x18] sm:$0xff]  }
 0x227   :  { %v2104_v63 = vpack.c.bf16 %v2100_v61, %v2100_v61  ;;  %v6954_v61 = vld [vmem:[#allocation7 + $0x10] sm:$0xff]  }
 0x229   :  { %2574 = vmatprep.mubr.bf16.mxu1 %v2104_v63  ;;  %v6955_v63 = vld [vmem:[#allocation7 + $0x8] sm:$0xff]  }
 0x22a   :  { %2575 = vmatmul.mubr.bf16.vlgmr.msra.gmra.mxu1 %v2103_v46  ;;  %v6956_v46 = vld [vmem:[#allocation7] sm:$0xff]  }
 0x22b   :  { %2873 = vmatpush1.bf16.msra.mxu1 %v6925_v50  ;;  %2904 = vmatprep.mubr.bf16.mxu1 %v7243_v42  ;;  %v6971_v50 = vld [vmem:[#allocation9 + $0x34] ss:$8 sps:$4 sm:$0xff]  }
 0x22c   :  { %2874 = vmatprep.subr.bf16.mxu1 %v6930_v8  ;;  %v6974_v8 = vld [vmem:[#allocation9 + $0x24] ss:$8 sps:$4 sm:$0xff]  }
 0x22f   :  { %2875 = vmatpush1.bf16.msra.mxu1 %v6928_v9  ;;  %v6972_v9 = vld [vmem:[#allocation9 + $0x20] ss:$8 sps:$4 sm:$0xff]  }
 0x230   :  { %2876 = vmatprep.subr.bf16.mxu1 %v6933_v10  ;;  %v6977_v10 = vld [vmem:[#allocation9 + $0x14] ss:$8 sps:$4 sm:$0xff]  }
 0x233   :  { %2877 = vmatpush1.bf16.msra.mxu1 %v6931_v11  ;;  %v6975_v11 = vld [vmem:[#allocation9 + $0x10] ss:$8 sps:$4 sm:$0xff]  }
 0x234   :  { %2878 = vmatprep.subr.bf16.mxu1 %v6936_v3  ;;  %v2780_v3 = vld [vmem:[%s7611_s9] sm:$0x3]  ;;  %s7630_s9 = sld [smem:[#allocation18_spill]] }
 0x237   :  { %2879 = vmatpush1.bf16.msra.mxu1 %v6934_v12  ;;  %v2785_v12 = vrot.slane %v2780_v3, %v7444_v45 }
 0x238   :  { %2880 = vmatprep.subr.bf16.mxu1 %v6939_v13  ;;  %v2789_v13 = vrot.slane %v2780_v3, %v7452_v47  ;;  %v6998_v3 = vld [vmem:[#allocation10 + $0xac] ss:$16 sps:$4 sm:$0xff]  }
 0x23b   :  { %2881 = vmatpush1.bf16.msra.mxu1 %v6937_v14 }
 0x23c   :  { %2882 = vmatprep.subr.bf16.mxu1 %v6942_v15 }
 0x23f   :  { %2883 = vmatpush1.bf16.msra.mxu1 %v6940_v18 }
 0x240   :  { %2884 = vmatprep.subr.bf16.mxu1 %v6945_v36  ;;  %v6989_v36 = vld [vmem:[#allocation10 + $0xc4] ss:$16 sps:$4 sm:$0xff]  }
 0x243   :  { %2885 = vmatpush1.bf16.msra.mxu1 %v6943_v39  ;;  %v6987_v39 = vld [vmem:[#allocation10 + $0xc0] ss:$16 sps:$4 sm:$0xff]  }
 0x244   :  { %2886 = vmatprep.subr.bf16.mxu1 %v6948_v40  ;;  %v6995_v40 = vld [vmem:[#allocation10 + $0xa4] ss:$16 sps:$4 sm:$0xff]  }
 0x247   :  { %2887 = vmatpush1.bf16.msra.mxu1 %v6946_v41  ;;  %v6993_v41 = vld [vmem:[#allocation10 + $0xa0] ss:$16 sps:$4 sm:$0xff]  }
 0x248   :  { %3140 = vmatprep.subr.bf16.mxu1 %v6959_v1  ;;  %v7061_v1 = vld [vmem:[#allocation10 + $0x144] ss:$16 sps:$4 sm:$0xff]  }
 0x26a   :  { %v2535_v0 = vpop.f32.mrf.mxu0 }
 0x26b   :  { %v2536_v22 = vadd.f32 %v2535_v0, %v2174_v20  ;;  %v6957_v0 = vld [vmem:[#allocation9 + $0x70] ss:$8 sps:$4 sm:$0xff]  }
 0x26c   :  { %v2537_v4 = vpop.f32.mrf.mxu0 }
 0x26d   :  { %v2538_v24 = vadd.f32 %v2537_v4, %v2178_v21  ;;  %v6960_v4 = vld [vmem:[#allocation9 + $0x60] ss:$8 sps:$4 sm:$0xff]  }
 0x26e   :  { %v2539_v48 = vpop.f32.mrf.mxu0 }
 0x26f   :  { %v6965_v48 = vld [vmem:[#allocation9 + $0x54] ss:$8 sps:$4 sm:$0xff]  }
 0x270   :  { %v2540_v6 = vpop.f32.mrf.mxu0 }
 0x271   :  { %v6966_v6 = vld [vmem:[#allocation9 + $0x40] ss:$8 sps:$4 sm:$0xff]  }
 0x2ea   :  { %v2576_v23 = vpop.f32.mrf.mxu1 }
 0x2eb   :  { %v2577_v25 = vadd.f32 %v2576_v23, %v2536_v22 }
 0x2ec   :  { %v2578_v26 = vpop.f32.mrf.mxu1 }
 0x2ed   :  { %v2579_v27 = vadd.f32 %v2578_v26, %v2538_v24  ;;  %v2583_v28 = vmax.f32 %v2577_v25, 0.0  ;;  %v2915_v24 = vld [vmem:[%s7630_s9] sm:$0x3] }
 0x2ee   :  { %v2580_v29 = vpop.f32.mrf.mxu1 }
 0x2ef   :  { %v2584_v30 = vmax.f32 %v2579_v27, 0.0  ;;  %v2585_v35 = vpack.c.bf16 %v2583_v28, %v2583_v28  ;;  %v6980_v29 = vld [vmem:[#allocation9 + $0x4] ss:$8 sps:$4 sm:$0xff]  }
 0x2f0   :  { %v2581_v31 = vpop.f32.mrf.mxu1 }
 0x2f1   :  { %v2586_v34 = vpack.c.bf16 %v2584_v30, %v2584_v30  ;;  %v6978_v30 = vld [vmem:[#allocation9] ss:$8 sps:$4 sm:$0xff]  }
 0x2f2   :  { %v6981_v31 = vld [vmem:[#allocation10 + $0xe0] ss:$16 sps:$4 sm:$0xff]  }
 0x2f3   :  { %2754 = vmatprep.mubr.bf16.mxu0 %v2586_v34  ;;  %v6983_v34 = vld [vmem:[#allocation10 + $0xe4] ss:$16 sps:$4 sm:$0xff]  }
 0x2f4   :  { %2755 = vmatmul.mubr.bf16.vlgmr.msra.gmra.mxu0 %v2585_v35  ;;  %v6986_v35 = vld [vmem:[#allocation10 + $0xec] ss:$16 sps:$4 sm:$0xff]  }
 0x2f5   :  { %6389 = vmatpush3.bf16.msra.mxu0 %v6949_v44  ;;  %6404 = vmatprep.mubr.msk.bf16.mxu0 %vm7245_vm0, %v7244_v51  ;;  %v6999_v44 = vld [vmem:[#allocation10 + $0x80] ss:$16 sps:$4 sm:$0xff]  }
 0x2f6   :  { %6390 = vmatprep.subr.bf16.mxu0 %v7244_v51 }
 0x2f9   :  { %6391 = vmatpush3.bf16.msra.mxu0 %v6950_v60  ;;  %v7037_v60 = vld [vmem:[#allocation10 + $0x1c4] ss:$16 sps:$4 sm:$0xff]  }
 0x2fa   :  { %6392 = vmatprep.subr.bf16.mxu0 %v7244_v51 }
 0x2fd   :  { %6393 = vmatpush3.bf16.msra.mxu0 %v6951_v33  ;;  %v7035_v33 = vld [vmem:[#allocation10 + $0x1c0] ss:$16 sps:$4 sm:$0xff]  }
 0x2fe   :  { %6394 = vmatprep.subr.bf16.mxu0 %v7244_v51 }
 0x301   :  { %6395 = vmatpush3.bf16.msra.mxu0 %v6952_v53  ;;  %v7043_v53 = vld [vmem:[#allocation10 + $0x1a4] ss:$16 sps:$4 sm:$0xff]  }
 0x302   :  { %6396 = vmatprep.subr.bf16.mxu0 %v7244_v51 }
 0x305   :  { %6397 = vmatpush3.bf16.msra.mxu0 %v6953_v57  ;;  %v7041_v57 = vld [vmem:[#allocation10 + $0x1a0] ss:$16 sps:$4 sm:$0xff]  }
 0x306   :  { %6398 = vmatprep.subr.bf16.mxu0 %v7244_v51 }
 0x309   :  { %6399 = vmatpush3.bf16.msra.mxu0 %v6954_v61  ;;  %v7049_v61 = vld [vmem:[#allocation10 + $0x184] ss:$16 sps:$4 sm:$0xff]  }
 0x30a   :  { %6400 = vmatprep.subr.bf16.mxu0 %v7244_v51 }
 0x30d   :  { %6401 = vmatpush3.bf16.msra.mxu0 %v6955_v63  ;;  %v7047_v63 = vld [vmem:[#allocation10 + $0x180] ss:$16 sps:$4 sm:$0xff]  }
 0x30e   :  { %6402 = vmatprep.subr.bf16.mxu0 %v7244_v51  ;;  %v7007_v51 = vld [vmem:[#allocation10 + $0x64] ss:$16 sps:$4 sm:$0xff]  }
 0x311   :  { %6403 = vmatpush3.bf16.msra.mxu0 %v6956_v46  ;;  %v7055_v46 = vld [vmem:[#allocation10 + $0x164] ss:$16 sps:$4 sm:$0xff]  }
 0x312   :  { %3591 = vmatprep.subr.bf16.mxu0 %v6983_v34  ;;  %v7050_v34 = vld [vmem:[#allocation10 + $0x188] ss:$16 sps:$4 sm:$0xff]  }
 0x3b4   :  { %v6373_v52 = vpop.f32.mrf.mxu0 }
 0x3b6   :  { %v6374_v54 = vpop.f32.mrf.mxu0 }
 0x3b7   :  { %v6375_v17 = vadd.f32 %v6374_v54, %v6373_v52  ;;  %v7005_v52 = vld [vmem:[#allocation10 + $0x60] ss:$16 sps:$4 sm:$0xff]  }
 0x3b8   :  { %v6376_v55 = vpop.f32.mrf.mxu0  ;;  %v7011_v54 = vld [vmem:[#allocation10 + $0x40] ss:$16 sps:$4 sm:$0xff]  }
 0x3b9   :  { %v2757_v56 = vadd.f32 %v6375_v17, %v5978_v16  ;;  %v7013_v16 = vld [vmem:[#allocation10 + $0x44] ss:$16 sps:$4 sm:$0xff]   ;;  %v7017_v55 = vld [vmem:[#allocation10 + $0x20] ss:$16 sps:$4 sm:$0xff]  }
 0x3ba   :  { %v6377_v58 = vpop.f32.mrf.mxu0  ;;  %v7019_v17 = vld [vmem:[#allocation10 + $0x24] ss:$16 sps:$4 sm:$0xff]  }
 0x3bb   :  { %v2762_v59 = vmax.f32 %v2757_v56, 0.0  ;;  %v7025_v56 = vld [vmem:[#allocation10 + $0x4] ss:$16 sps:$4 sm:$0xff]   ;;  %v7023_v58 = vld [vmem:[#allocation10] ss:$16 sps:$4 sm:$0xff]  }
 0x3bd   :  { %v2763_v32 = vpack.c.bf16 %v2762_v59, %v2762_v59  ;;  %v7031_v59 = vld [vmem:[#allocation10 + $0x1e4] ss:$16 sps:$4 sm:$0xff]  }
 0x3bf   :  { %2905 = vmatmul.mubr.bf16.vlgmr.msra.gmra.mxu1 %v2763_v32  ;;  %v7029_v32 = vld [vmem:[#allocation10 + $0x1e0] ss:$16 sps:$4 sm:$0xff]  }
 0x3c0   :  { %3172 = vmatprep.mubr.bf16.mxu1 %v7243_v42  ;;  %3141 = vmatpush1.bf16.msra.mxu1 %v6957_v0  ;;  %v7001_v42 = vld [vmem:[#allocation10 + $0x84] ss:$16 sps:$4 sm:$0xff]   ;;  %v7053_v0 = vld [vmem:[#allocation10 + $0x160] ss:$16 sps:$4 sm:$0xff]  }
 0x3c1   :  { %3142 = vmatprep.subr.bf16.mxu1 %v6962_v2  ;;  %v7059_v2 = vld [vmem:[#allocation10 + $0x140] ss:$16 sps:$4 sm:$0xff]  }
 0x3c4   :  { %3143 = vmatpush1.bf16.msra.mxu1 %v6960_v4  ;;  %v6011_v4 = vld [vmem:[%s7613_s11] ss:$0 sm:$0xff] }
 0x3c5   :  { %3144 = vmatprep.subr.bf16.mxu1 %v6965_v48 }
 0x3c8   :  { %3145 = vmatpush1.bf16.msra.mxu1 %v6963_v5 }
 0x3c9   :  { %3146 = vmatprep.subr.bf16.mxu1 %v6968_v62 }
 0x3cc   :  { %3147 = vmatpush1.bf16.msra.mxu1 %v6966_v6 }
 0x3cd   :  { %3148 = vmatprep.subr.bf16.mxu1 %v6971_v50 }
 0x3d0   :  { %3149 = vmatpush1.bf16.msra.mxu1 %v6969_v7  ;;  %v6984_v7 = vld [vmem:[#allocation10 + $0xe8] ss:$16 sps:$4 sm:$0xff]  }
 0x3d1   :  { %3150 = vmatprep.subr.bf16.mxu1 %v6974_v8 }
 0x3d4   :  { %3151 = vmatpush1.bf16.msra.mxu1 %v6972_v9  ;;  %v6992_v9 = vld [vmem:[#allocation10 + $0xcc] ss:$16 sps:$4 sm:$0xff]  }
 0x3d5   :  { %3152 = vmatprep.subr.bf16.mxu1 %v6977_v10 }
 0x3d8   :  { %3153 = vmatpush1.bf16.msra.mxu1 %v6975_v11  ;;  %v6990_v11 = vld [vmem:[#allocation10 + $0xc8] ss:$16 sps:$4 sm:$0xff]  }
 0x3d9   :  { %3154 = vmatprep.subr.bf16.mxu1 %v6980_v29  ;;  %v7046_v29 = vld [vmem:[#allocation10 + $0x1ac] ss:$16 sps:$4 sm:$0xff]  }
 0x3dc   :  { %3155 = vmatpush1.bf16.msra.mxu1 %v6978_v30  ;;  %v7044_v30 = vld [vmem:[#allocation10 + $0x1a8] ss:$16 sps:$4 sm:$0xff]  }
 0x3dd   :  { %3632 = vmatprep.subr.bf16.mxu1 %v6986_v35  ;;  %v7058_v35 = vld [vmem:[#allocation10 + $0x16c] ss:$16 sps:$4 sm:$0xff]  }
 0x47f   :  { %v2906_v14 = vpop.f32.mrf.mxu1 }
 0x480   :  { %v2907_v18 = vadd.f32 %v2906_v14, %v2785_v12  ;;  %v6996_v12 = vld [vmem:[#allocation10 + $0xa8] ss:$16 sps:$4 sm:$0xff]  }
 0x481   :  { %v2908_v15 = vpop.f32.mrf.mxu1  ;;  %v7002_v14 = vld [vmem:[#allocation10 + $0x88] ss:$16 sps:$4 sm:$0xff]  }
 0x482   :  { %v2909_v19 = vadd.f32 %v2908_v15, %v2789_v13  ;;  %v7004_v13 = vld [vmem:[#allocation10 + $0x8c] ss:$16 sps:$4 sm:$0xff]  }
 0x483   :  { %v2910_v20 = vpop.f32.mrf.mxu1  ;;  %v7010_v15 = vld [vmem:[#allocation10 + $0x6c] ss:$16 sps:$4 sm:$0xff]  }
 0x484   :  { %v2913_v21 = vmul.f32 1.442695, %v2909_v19  ;;  %v5635_v22 = vcombine.low %v2907_v18, %v2909_v19  ;;  %v7016_v19 = vld [vmem:[#allocation10 + $0x4c] ss:$16 sps:$4 sm:$0xff]   ;;  %v7014_v20 = vld [vmem:[#allocation10 + $0x48] ss:$16 sps:$4 sm:$0xff]  }
 0x485   :  { %v2911_v23 = vpop.f32.mrf.mxu1 }
 0x486   :  { %7077 = vpow2.f32 %v2913_v21  ;;  %6356 = vst.sshfl [vmem:[%s7621_s19] sm:$0x33 pattern:$0x76325410] %v5635_v22  ;;  %v7022_v21 = vld [vmem:[#allocation10 + $0x2c] ss:$16 sps:$4 sm:$0xff]  }
 0x487   :  { %v7020_v22 = vld [vmem:[#allocation10 + $0x28] ss:$16 sps:$4 sm:$0xff]   ;;  %v7028_v23 = vld [vmem:[#allocation10 + $0xc] ss:$16 sps:$4 sm:$0xff]  }
 0x493   :  { %v7078_v25 = vpop.eup %7077 }
 0x494   :  { %v2916_v26 = vmul.f32 %v7078_v25, %v2915_v24  ;;  %v7026_v24 = vld [vmem:[#allocation10 + $0x8] ss:$16 sps:$4 sm:$0xff]   ;;  %v7034_v25 = vld [vmem:[#allocation10 + $0x1ec] ss:$16 sps:$4 sm:$0xff]  }
 0x496   :  { %v2917_v27 = vadd.f32 %v2916_v26, %v2907_v18  ;;  %v7008_v18 = vld [vmem:[#allocation10 + $0x68] ss:$16 sps:$4 sm:$0xff]  }
 0x497   :  { %v7032_v26 = vld [vmem:[#allocation10 + $0x1e8] ss:$16 sps:$4 sm:$0xff]  }
 0x498   :  { %v2918_v28 = vpack.c.bf16 %v2917_v27, %v2917_v27  ;;  %5645 = vst [vmem:[%s7621_s19 + $0x4] sm:$0x3] %v2917_v27  ;;  %v7040_v27 = vld [vmem:[#allocation10 + $0x1cc] ss:$16 sps:$4 sm:$0xff]  }
 0x49a   :  { %6405 = vmatmul.mubr.bf16.vlgmr.msra.gmra.mxu0 %v2918_v28  ;;  %v7038_v28 = vld [vmem:[#allocation10 + $0x1c8] ss:$16 sps:$4 sm:$0xff]  }
 0x49b   :  { %3592 = vmatpush1.bf16.msra.mxu0 %v6981_v31  ;;  %v7052_v31 = vld [vmem:[#allocation10 + $0x18c] ss:$16 sps:$4 sm:$0xff]  }
 0x49c   :  { %3593 = vmatprep.subr.bf16.mxu0 %v6989_v36  ;;  %v7056_v36 = vld [vmem:[#allocation10 + $0x168] ss:$16 sps:$4 sm:$0xff]  }
 0x49f   :  { %3594 = vmatpush1.bf16.msra.mxu0 %v6987_v39  ;;  %v7064_v39 = vld [vmem:[#allocation10 + $0x14c] ss:$16 sps:$4 sm:$0xff]  }
 0x4a0   :  { %3595 = vmatprep.subr.bf16.mxu0 %v6995_v40  ;;  %v7062_v40 = vld [vmem:[#allocation10 + $0x148] ss:$16 sps:$4 sm:$0xff]  }
 0x4a3   :  { %3596 = vmatpush1.bf16.msra.mxu0 %v6993_v41  ;;  %v7067_v41 = vld [vmem:[#allocation10 + $0x124] ss:$16 sps:$4 sm:$0xff]  }
 0x4a4   :  { %3597 = vmatprep.subr.bf16.mxu0 %v7001_v42  ;;  %v7070_v42 = vld [vmem:[#allocation10 + $0x12c] ss:$16 sps:$4 sm:$0xff]  }
 0x4a7   :  { %3598 = vmatpush1.bf16.msra.mxu0 %v6999_v44  ;;  %v7065_v44 = vld [vmem:[#allocation10 + $0x120] ss:$16 sps:$4 sm:$0xff]  }
 0x4a8   :  { %3599 = vmatprep.subr.bf16.mxu0 %v7007_v51  ;;  %v7068_v51 = vld [vmem:[#allocation10 + $0x128] ss:$16 sps:$4 sm:$0xff]  }
 0x4ab   :  { %3600 = vmatpush1.bf16.msra.mxu0 %v7005_v52  ;;  %v7073_v52 = vld [vmem:[#allocation10 + $0x104] ss:$16 sps:$4 sm:$0xff]  }
 0x4ac   :  { %3601 = vmatprep.subr.bf16.mxu0 %v7013_v16  ;;  %v7076_v16 = vld [vmem:[#allocation10 + $0x10c] ss:$16 sps:$4 sm:$0xff]  }
 0x4af   :  { %3602 = vmatpush1.bf16.msra.mxu0 %v7011_v54  ;;  %v7071_v54 = vld [vmem:[#allocation10 + $0x100] ss:$16 sps:$4 sm:$0xff]  }
 0x4b0   :  { %3603 = vmatprep.subr.bf16.mxu0 %v7019_v17  ;;  %v7074_v17 = vld [vmem:[#allocation10 + $0x108] ss:$16 sps:$4 sm:$0xff]  }
 0x4b3   :  { %3604 = vmatpush1.bf16.msra.mxu0 %v7017_v55  ;;  %v3737_v55 = vld [vmem:[#allocation12 + $0x1c0] sm:$0xff] }
 0x4b4   :  { %3605 = vmatprep.subr.bf16.mxu0 %v7025_v56  ;;  %v3741_v56 = vld [vmem:[#allocation12 + $0x1e0] sm:$0xff] }
 0x4b7   :  { %3606 = vmatpush1.bf16.msra.mxu0 %v7023_v58  ;;  %v3865_v58 = vld [vmem:[#allocation12 + $0x5c0] sm:$0xff] }
 0x4b8   :  { %3607 = vmatprep.subr.bf16.mxu0 %v7031_v59  ;;  %v6156_v59 = vcombine.low %v3737_v55, %v3741_v56 }
 0x4bb   :  { %3608 = vmatpush2.bf16.msra.mxu0 %v7029_v32  ;;  %v6157_v32 = vcombine.high %v3737_v55, %v3741_v56  ;;  %v3689_v56 = vld [vmem:[#allocation12 + $0x40] sm:$0xff] }
 0x4bc   :  { %3609 = vmatprep.subr.bf16.mxu0 %v7037_v60  ;;  %v3869_v60 = vld [vmem:[#allocation12 + $0x5e0] sm:$0xff] }
 0x4bf   :  { %3610 = vmatpush2.bf16.msra.mxu0 %v7035_v33  ;;  %v6284_v33 = vcombine.low %v3865_v58, %v3869_v60 }
 0x4c0   :  { %3611 = vmatprep.subr.bf16.mxu0 %v7043_v53  ;;  %v6285_v53 = vcombine.high %v3865_v58, %v3869_v60  ;;  %v3693_v58 = vld [vmem:[#allocation12 + $0x60] sm:$0xff] }
 0x4c3   :  { %3612 = vmatpush2.bf16.msra.mxu0 %v7041_v57  ;;  %v3048_v57 = vld [vmem:[%s7615_s13] sm:$0x3] }
 0x4c4   :  { %3613 = vmatprep.subr.bf16.mxu0 %v7049_v61  ;;  %v3053_v61 = vrot.slane %v3048_v57, %v7444_v45 }
 0x4c7   :  { %3614 = vmatpush2.bf16.msra.mxu0 %v7047_v63  ;;  %v3057_v63 = vrot.slane %v3048_v57, %v7452_v47 }
 0x4c8   :  { %3615 = vmatprep.subr.bf16.mxu0 %v7055_v46 }
 0x4cb   :  { %3616 = vmatpush2.bf16.msra.mxu0 %v7053_v0 }
 0x4cc   :  { %3617 = vmatprep.subr.bf16.mxu0 %v7061_v1 }
 0x4cf   :  { %3618 = vmatpush2.bf16.msra.mxu0 %v7059_v2 }
 0x4d0   :  { %3619 = vmatprep.subr.bf16.mxu0 %v7067_v41 }
 0x4d3   :  { %3620 = vmatpush2.bf16.msra.mxu0 %v7065_v44  ;;  %v3701_v44 = vld [vmem:[#allocation12 + $0xa0] sm:$0xff] }
 0x4d4   :  { %3621 = vmatprep.subr.bf16.mxu0 %v7073_v52  ;;  %v3829_v52 = vld [vmem:[#allocation12 + $0x4a0] sm:$0xff] }
 0x4d7   :  { %3622 = vmatpush2.bf16.msra.mxu0 %v7071_v54 }
 0x4d8   :  { %5259 = vmatprep.subr.bf16.mxu0 %v6157_v32  ;;  %v3821_v32 = vld [vmem:[#allocation12 + $0x460] sm:$0xff] }
 0x55a   :  { %v3024_v48 = vpop.f32.mrf.mxu0 }
 0x55b   :  { %v3025_v5 = vadd.f32 %v6011_v4, %v3024_v48 }
 0x55c   :  { %v6406_v62 = vpop.f32.mrf.mxu0 }
 0x55d   :  { %v3030_v6 = vmax.f32 %v3025_v5, 0.0  ;;  %v3729_v5 = vld [vmem:[#allocation12 + $0x180] sm:$0xff] }
 0x55e   :  { %v3027_v50 = vpop.f32.mrf.mxu0 }
 0x55f   :  { %v3031_v8 = vpack.c.bf16 %v3030_v6, %v3030_v6  ;;  %v3733_v6 = vld [vmem:[#allocation12 + $0x1a0] sm:$0xff] }
 0x560   :  { %v6407_v10 = vpop.f32.mrf.mxu0  ;;  %v3857_v50 = vld [vmem:[#allocation12 + $0x580] sm:$0xff] }
 0x561   :  { %3173 = vmatmul.mubr.bf16.vlgmr.msra.gmra.mxu1 %v3031_v8 }
 0x562   :  { %3633 = vmatpush1.bf16.msra.mxu1 %v6984_v7  ;;  %v3861_v7 = vld [vmem:[#allocation12 + $0x5a0] sm:$0xff] }
 0x563   :  { %3634 = vmatprep.subr.bf16.mxu1 %v6992_v9 }
 0x566   :  { %3635 = vmatpush1.bf16.msra.mxu1 %v6990_v11  ;;  %v6149_v11 = vcombine.high %v3729_v5, %v3733_v6 }
 0x567   :  { %3636 = vmatprep.subr.bf16.mxu1 %v6998_v3  ;;  %v6277_v3 = vcombine.high %v3857_v50, %v3861_v7 }
 0x56a   :  { %3637 = vmatpush1.bf16.msra.mxu1 %v6996_v12  ;;  %v3721_v12 = vld [vmem:[#allocation12 + $0x140] sm:$0xff] }
 0x56b   :  { %3638 = vmatprep.subr.bf16.mxu1 %v7004_v13  ;;  %v3725_v13 = vld [vmem:[#allocation12 + $0x160] sm:$0xff] }
 0x56e   :  { %3639 = vmatpush1.bf16.msra.mxu1 %v7002_v14  ;;  %v3849_v14 = vld [vmem:[#allocation12 + $0x540] sm:$0xff] }
 0x56f   :  { %3640 = vmatprep.subr.bf16.mxu1 %v7010_v15  ;;  %v3853_v15 = vld [vmem:[#allocation12 + $0x560] sm:$0xff] }
 0x572   :  { %3641 = vmatpush1.bf16.msra.mxu1 %v7008_v18  ;;  %v6148_v18 = vcombine.low %v3729_v5, %v3733_v6  ;;  %v3801_v5 = vld [vmem:[#allocation12 + $0x3c0] sm:$0xff] }
 0x573   :  { %3642 = vmatprep.subr.bf16.mxu1 %v7016_v19  ;;  %v6276_v19 = vcombine.low %v3857_v50, %v3861_v7  ;;  %v3929_v6 = vld [vmem:[#allocation12 + $0x7c0] sm:$0xff] }
 0x574   :  { %v3933_v50 = vld [vmem:[#allocation12 + $0x7e0] sm:$0xff] }
 0x576   :  { %3643 = vmatpush1.bf16.msra.mxu1 %v7014_v20  ;;  %v6141_v20 = vcombine.high %v3721_v12, %v3725_v13 }
 0x577   :  { %3644 = vmatprep.subr.bf16.mxu1 %v7022_v21  ;;  %v6269_v21 = vcombine.high %v3849_v14, %v3853_v15 }
 0x57a   :  { %3645 = vmatpush1.bf16.msra.mxu1 %v7020_v22  ;;  %v3713_v22 = vld [vmem:[#allocation12 + $0x100] sm:$0xff] }
 0x57b   :  { %3646 = vmatprep.subr.bf16.mxu1 %v7028_v23  ;;  %v3717_v23 = vld [vmem:[#allocation12 + $0x120] sm:$0xff] }
 0x57e   :  { %3647 = vmatpush1.bf16.msra.mxu1 %v7026_v24  ;;  %v3841_v24 = vld [vmem:[#allocation12 + $0x500] sm:$0xff] }
 0x57f   :  { %3648 = vmatprep.subr.bf16.mxu1 %v7034_v25  ;;  %v3845_v25 = vld [vmem:[#allocation12 + $0x520] sm:$0xff] }
 0x582   :  { %3649 = vmatpush2.bf16.msra.mxu1 %v7032_v26  ;;  %v6140_v26 = vcombine.low %v3721_v12, %v3725_v13  ;;  %v3921_v12 = vld [vmem:[#allocation12 + $0x780] sm:$0xff] }
 0x583   :  { %3650 = vmatprep.subr.bf16.mxu1 %v7040_v27  ;;  %v6268_v27 = vcombine.low %v3849_v14, %v3853_v15  ;;  %v3925_v13 = vld [vmem:[#allocation12 + $0x7a0] sm:$0xff]  ;;  %v6348_v15 = vcombine.low %v3929_v6, %v3933_v50 }
 0x586   :  { %3651 = vmatpush2.bf16.msra.mxu1 %v7038_v28  ;;  %v6133_v28 = vcombine.high %v3713_v22, %v3717_v23 }
 0x587   :  { %3652 = vmatprep.subr.bf16.mxu1 %v7046_v29  ;;  %v6261_v29 = vcombine.high %v3841_v24, %v3845_v25 }
 0x58a   :  { %3653 = vmatpush2.bf16.msra.mxu1 %v7044_v30  ;;  %v3705_v30 = vld [vmem:[#allocation12 + $0xc0] sm:$0xff] }
 0x58b   :  { %3654 = vmatprep.subr.bf16.mxu1 %v7052_v31  ;;  %v3709_v31 = vld [vmem:[#allocation12 + $0xe0] sm:$0xff] }
 0x58e   :  { %3655 = vmatpush2.bf16.msra.mxu1 %v7050_v34  ;;  %v3833_v34 = vld [vmem:[#allocation12 + $0x4c0] sm:$0xff] }
 0x58f   :  { %3656 = vmatprep.subr.bf16.mxu1 %v7058_v35  ;;  %v3837_v35 = vld [vmem:[#allocation12 + $0x4e0] sm:$0xff] }
 0x590   :  { %v6253_v41 = vcombine.high %v3833_v34, %v3837_v35  ;;  %v6252_v54 = vcombine.low %v3833_v34, %v3837_v35 }
 0x592   :  { %3657 = vmatpush2.bf16.msra.mxu1 %v7056_v36  ;;  %v6132_v36 = vcombine.low %v3713_v22, %v3717_v23  ;;  %v3913_v22 = vld [vmem:[#allocation12 + $0x740] sm:$0xff] }
 0x593   :  { %3658 = vmatprep.subr.bf16.mxu1 %v7064_v39  ;;  %v6260_v39 = vcombine.low %v3841_v24, %v3845_v25  ;;  %v3917_v23 = vld [vmem:[#allocation12 + $0x760] sm:$0xff]  ;;  %v6340_v25 = vcombine.low %v3921_v12, %v3925_v13 }
 0x594   :  { %v6332_v35 = vcombine.low %v3913_v22, %v3917_v23 }
 0x596   :  { %3659 = vmatpush2.bf16.msra.mxu1 %v7062_v40  ;;  %v6125_v40 = vcombine.high %v3705_v30, %v3709_v31 }
 0x597   :  { %3660 = vmatprep.subr.bf16.mxu1 %v7070_v42  ;;  %v3697_v42 = vld [vmem:[#allocation12 + $0x80] sm:$0xff] }
 0x598   :  { %v6116_v60 = vcombine.low %v3697_v42, %v3701_v44 }
 0x59a   :  { %3661 = vmatpush2.bf16.msra.mxu1 %v7068_v51  ;;  %v3825_v51 = vld [vmem:[#allocation12 + $0x480] sm:$0xff] }
 0x59b   :  { %3662 = vmatprep.subr.bf16.mxu1 %v7076_v16  ;;  %v6124_v16 = vcombine.low %v3705_v30, %v3709_v31  ;;  %v6245_v55 = vcombine.high %v3825_v51, %v3829_v52  ;;  %v3905_v30 = vld [vmem:[#allocation12 + $0x700] sm:$0xff] }
 0x59c   :  { %v3909_v31 = vld [vmem:[#allocation12 + $0x720] sm:$0xff] }
 0x59e   :  { %3663 = vmatpush2.bf16.msra.mxu1 %v7074_v17  ;;  %v6117_v17 = vcombine.high %v3697_v42, %v3701_v44  ;;  %v3897_v42 = vld [vmem:[#allocation12 + $0x6c0] sm:$0xff] }
 0x59f   :  { %5300 = vmatprep.subr.bf16.mxu1 %v6285_v53  ;;  %v6109_v53 = vcombine.high %v3689_v56, %v3693_v58  ;;  %v3901_v44 = vld [vmem:[#allocation12 + $0x6e0] sm:$0xff] }
 0x621   :  { %v3174_v46 = vpop.f32.mrf.mxu1 }
 0x622   :  { %v3175_v0 = vadd.f32 %v3174_v46, %v3053_v61  ;;  %v3681_v61 = vld [vmem:[#allocation12] sm:$0xff] }
 0x623   :  { %v3176_v1 = vpop.f32.mrf.mxu1  ;;  %v3809_v46 = vld [vmem:[#allocation12 + $0x400] sm:$0xff] }
 0x624   :  { %v3177_v2 = vadd.f32 %v3176_v1, %v3057_v63  ;;  %v3181_v4 = vmax.f32 %v3175_v0, 0.0  ;;  %v3685_v63 = vld [vmem:[#allocation12 + $0x20] sm:$0xff]  ;;  %v6108_v1 = vcombine.low %v3689_v56, %v3693_v58 }
 0x625   :  { %v3178_v48 = vpop.f32.mrf.mxu1  ;;  %v3813_v0 = vld [vmem:[#allocation12 + $0x420] sm:$0xff]  ;;  %v6100_v7 = vcombine.low %v3681_v61, %v3685_v63 }
 0x626   :  { %v3182_v62 = vmax.f32 %v3177_v2, 0.0  ;;  %v3183_v10 = vpack.c.bf16 %v3181_v4, %v3181_v4  ;;  %v6101_v4 = vcombine.high %v3681_v61, %v3685_v63  ;;  %v6229_v48 = vcombine.high %v3809_v46, %v3813_v0  ;;  %v3889_v56 = vld [vmem:[#allocation12 + $0x680] sm:$0xff] }
 0x627   :  { %v3179_v8 = vpop.f32.mrf.mxu1  ;;  %v3893_v58 = vld [vmem:[#allocation12 + $0x6a0] sm:$0xff] }
 0x628   :  { %v3184_v9 = vpack.c.bf16 %v3182_v62, %v3182_v62  ;;  %v3805_v62 = vld [vmem:[#allocation12 + $0x3e0] sm:$0xff]  ;;  %v6228_v8 = vcombine.low %v3809_v46, %v3813_v0 }
 0x629   :  { %v6220_v14 = vcombine.low %v3801_v5, %v3805_v62  ;;  %v3753_v61 = vld [vmem:[#allocation12 + $0x240] sm:$0xff] }
 0x62a   :  { %3623 = vmatprep.mubr.bf16.mxu0 %v3184_v9  ;;  %3664 = vmatprep.mubr.bf16.mxu1 %v3184_v9  ;;  %v6221_v9 = vcombine.high %v3801_v5, %v3805_v62  ;;  %v3757_v63 = vld [vmem:[#allocation12 + $0x260] sm:$0xff] }
 0x62b   :  { %3624 = vmatmul.mubr.bf16.vlgmr.msra.gmra.mxu0 %v3183_v10  ;;  %3665 = vmatmul.mubr.bf16.vlgmr.msra.gmra.mxu1 %v3183_v10  ;;  %v6349_v10 = vcombine.high %v3929_v6, %v3933_v50  ;;  %v3881_v46 = vld [vmem:[#allocation12 + $0x640] sm:$0xff]  ;;  %v6173_v0 = vcombine.high %v3753_v61, %v3757_v63 }
 0x62c   :  { %5260 = vmatpush1.bf16.msra.mxu0 %v6156_v59  ;;  %5301 = vmatpush1.bf16.msra.mxu1 %v6284_v33  ;;  %v3817_v59 = vld [vmem:[#allocation12 + $0x440] sm:$0xff]  ;;  %v6244_v33 = vcombine.low %v3825_v51, %v3829_v52  ;;  %v6324_v52 = vcombine.low %v3905_v30, %v3909_v31 }
 0x62d   :  { %5261 = vmatprep.subr.bf16.mxu0 %v6149_v11  ;;  %5302 = vmatprep.subr.bf16.mxu1 %v6277_v3  ;;  %v6237_v57 = vcombine.high %v3817_v59, %v3821_v32  ;;  %v6236_v2 = vcombine.low %v3817_v59, %v3821_v32  ;;  %v3793_v11 = vld [vmem:[#allocation12 + $0x380] sm:$0xff]  ;;  %v6316_v32 = vcombine.low %v3897_v42, %v3901_v44 }
 0x62e   :  { %v3797_v3 = vld [vmem:[#allocation12 + $0x3a0] sm:$0xff] }
 0x62f   :  { %v6212_v24 = vcombine.low %v3793_v11, %v3797_v3  ;;  %v3745_v5 = vld [vmem:[#allocation12 + $0x200] sm:$0xff] }
 0x630   :  { %5262 = vmatpush1.bf16.msra.mxu0 %v6148_v18  ;;  %5303 = vmatpush1.bf16.msra.mxu1 %v6276_v19  ;;  %v6213_v18 = vcombine.high %v3793_v11, %v3797_v3  ;;  %v6341_v19 = vcombine.high %v3921_v12, %v3925_v13  ;;  %v3749_v62 = vld [vmem:[#allocation12 + $0x220] sm:$0xff]  ;;  %v3738_v11 = vld [vmem:[#allocation12 + $0x1c8] sm:$0xff] }
 0x631   :  { %5263 = vmatprep.subr.bf16.mxu0 %v6141_v20  ;;  %5304 = vmatprep.subr.bf16.mxu1 %v6269_v21  ;;  %v3785_v20 = vld [vmem:[#allocation12 + $0x340] sm:$0xff]  ;;  %v6165_v50 = vcombine.high %v3745_v5, %v3749_v62  ;;  %v3742_v3 = vld [vmem:[#allocation12 + $0x1e8] sm:$0xff] }
 0x632   :  { %v3789_v21 = vld [vmem:[#allocation12 + $0x360] sm:$0xff]  ;;  %v3866_v12 = vld [vmem:[#allocation12 + $0x5c8] sm:$0xff]  ;;  %v6159_v13 = vcombine.high %v3738_v11, %v3742_v3 }
 0x633   :  { %v6204_v34 = vcombine.low %v3785_v20, %v3789_v21  ;;  %v3873_v6 = vld [vmem:[#allocation12 + $0x600] sm:$0xff] }
 0x634   :  { %5264 = vmatpush1.bf16.msra.mxu0 %v6140_v26  ;;  %5305 = vmatpush1.bf16.msra.mxu1 %v6268_v27  ;;  %v6205_v26 = vcombine.high %v3785_v20, %v3789_v21  ;;  %v6333_v27 = vcombine.high %v3913_v22, %v3917_v23  ;;  %v3249_v20 = vld [vmem:[%s7617_s15] sm:$0xf] }
 0x635   :  { %5265 = vmatprep.subr.bf16.mxu0 %v6133_v28  ;;  %5306 = vmatprep.subr.bf16.mxu1 %v6261_v29  ;;  %v3777_v28 = vld [vmem:[#allocation12 + $0x300] sm:$0xff]  ;;  %v3254_v21 = vrot.slane %v3249_v20, %v7444_v45  ;;  %v3262_v22 = vrot.slane %v3249_v20, %v7499_v37  ;;  %v3258_v23 = vrot.slane %v3249_v20, %v7452_v47 }
 0x636   :  { %v3781_v29 = vld [vmem:[#allocation12 + $0x320] sm:$0xff] }
 0x637   :  { %v6196_v51 = vcombine.low %v3777_v28, %v3781_v29 }
 0x638   :  { %5266 = vmatpush1.bf16.msra.mxu0 %v6132_v36  ;;  %5307 = vmatpush1.bf16.msra.mxu1 %v6260_v39  ;;  %v6197_v36 = vcombine.high %v3777_v28, %v3781_v29  ;;  %v6325_v39 = vcombine.high %v3905_v30, %v3909_v31 }
 0x639   :  { %5267 = vmatprep.subr.bf16.mxu0 %v6125_v40  ;;  %5308 = vmatprep.subr.bf16.mxu1 %v6253_v41  ;;  %v3769_v40 = vld [vmem:[#allocation12 + $0x2c0] sm:$0xff] }
 0x63a   :  { %v3773_v41 = vld [vmem:[#allocation12 + $0x2e0] sm:$0xff] }
 0x63b   :  { %v6188_v59 = vcombine.low %v3769_v40, %v3773_v41 }
 0x63c   :  { %5268 = vmatpush1.bf16.msra.mxu0 %v6124_v16  ;;  %5309 = vmatpush1.bf16.msra.mxu1 %v6252_v54  ;;  %v6189_v16 = vcombine.high %v3769_v40, %v3773_v41  ;;  %v6317_v54 = vcombine.high %v3897_v42, %v3901_v44  ;;  %v3730_v44 = vld [vmem:[#allocation12 + $0x188] sm:$0xff] }
 0x63d   :  { %5269 = vmatprep.subr.bf16.mxu0 %v6117_v17  ;;  %5310 = vmatprep.subr.bf16.mxu1 %v6245_v55  ;;  %v3761_v17 = vld [vmem:[#allocation12 + $0x280] sm:$0xff] }
 0x63e   :  { %v3765_v55 = vld [vmem:[#allocation12 + $0x2a0] sm:$0xff] }
 0x640   :  { %5270 = vmatpush1.bf16.msra.mxu0 %v6116_v60  ;;  %5311 = vmatpush1.bf16.msra.mxu1 %v6244_v33  ;;  %v6181_v60 = vcombine.high %v3761_v17, %v3765_v55  ;;  %v6309_v33 = vcombine.high %v3889_v56, %v3893_v58 }
 0x641   :  { %5271 = vmatprep.subr.bf16.mxu0 %v6109_v53  ;;  %5312 = vmatprep.subr.bf16.mxu1 %v6237_v57  ;;  %v6180_v53 = vcombine.low %v3761_v17, %v3765_v55  ;;  %v6308_v57 = vcombine.low %v3889_v56, %v3893_v58  ;;  %v3862_v17 = vld [vmem:[#allocation12 + $0x5a8] sm:$0xff] }
 0x644   :  { %5272 = vmatpush1.bf16.msra.mxu0 %v6108_v1  ;;  %5313 = vmatpush1.bf16.msra.mxu1 %v6236_v2  ;;  %v3885_v1 = vld [vmem:[#allocation12 + $0x660] sm:$0xff]  ;;  %v6172_v2 = vcombine.low %v3753_v61, %v3757_v63  ;;  %v3854_v61 = vld [vmem:[#allocation12 + $0x568] sm:$0xff] }
 0x645   :  { %5273 = vmatprep.subr.bf16.mxu0 %v6101_v4  ;;  %5314 = vmatprep.subr.bf16.mxu1 %v6229_v48  ;;  %v6300_v4 = vcombine.low %v3881_v46, %v3885_v1  ;;  %v6301_v48 = vcombine.high %v3881_v46, %v3885_v1 }
 0x648   :  { %5274 = vmatpush1.bf16.msra.mxu0 %v6100_v7  ;;  %5315 = vmatpush1.bf16.msra.mxu1 %v6228_v8  ;;  %v3877_v7 = vld [vmem:[#allocation12 + $0x620] sm:$0xff]  ;;  %v6164_v8 = vcombine.low %v3745_v5, %v3749_v62  ;;  %v3846_v5 = vld [vmem:[#allocation12 + $0x528] sm:$0xff] }
 0x649   :  { %5275 = vmatprep.subr.bf16.mxu0 %v6221_v9  ;;  %5316 = vmatprep.subr.bf16.mxu1 %v6349_v10  ;;  %v6292_v9 = vcombine.low %v3873_v6, %v3877_v7  ;;  %v6293_v10 = vcombine.high %v3873_v6, %v3877_v7 }
 0x64c   :  { %5276 = vmatpush2.bf16.msra.mxu0 %v6220_v14  ;;  %5317 = vmatpush2.bf16.msra.mxu1 %v6348_v15  ;;  %v3870_v14 = vld [vmem:[#allocation12 + $0x5e8] sm:$0xff]  ;;  %v6158_v15 = vcombine.low %v3738_v11, %v3742_v3 }
 0x64d   :  { %5277 = vmatprep.subr.bf16.mxu0 %v6213_v18  ;;  %5318 = vmatprep.subr.bf16.mxu1 %v6341_v19  ;;  %v6286_v18 = vcombine.low %v3866_v12, %v3870_v14  ;;  %v6287_v19 = vcombine.high %v3866_v12, %v3870_v14  ;;  %v3838_v11 = vld [vmem:[#allocation12 + $0x4e8] sm:$0xff] }
 0x650   :  { %5278 = vmatpush2.bf16.msra.mxu0 %v6212_v24  ;;  %5319 = vmatpush2.bf16.msra.mxu1 %v6340_v25  ;;  %v3266_v24 = vrot.slane %v3249_v20, %v7502_v38  ;;  %v3830_v20 = vld [vmem:[#allocation12 + $0x4a8] sm:$0xff] }
 0x651   :  { %5279 = vmatprep.subr.bf16.mxu0 %v6205_v26  ;;  %5320 = vmatprep.subr.bf16.mxu1 %v6333_v27 }
 0x654   :  { %5280 = vmatpush2.bf16.msra.mxu0 %v6204_v34  ;;  %5321 = vmatpush2.bf16.msra.mxu1 %v6332_v35 }
 0x655   :  { %5281 = vmatprep.subr.bf16.mxu0 %v6197_v36  ;;  %5322 = vmatprep.subr.bf16.mxu1 %v6325_v39 }
 0x658   :  { %5282 = vmatpush2.bf16.msra.mxu0 %v6196_v51  ;;  %5323 = vmatpush2.bf16.msra.mxu1 %v6324_v52 }
 0x659   :  { %5283 = vmatprep.subr.bf16.mxu0 %v6189_v16  ;;  %5324 = vmatprep.subr.bf16.mxu1 %v6317_v54  ;;  %v3734_v16 = vld [vmem:[#allocation12 + $0x1a8] sm:$0xff] }
 0x65a   :  { %v3858_v54 = vld [vmem:[#allocation12 + $0x588] sm:$0xff]  ;;  %v6150_v63 = vcombine.low %v3730_v44, %v3734_v16 }
 0x65b   :  { %v6278_v46 = vcombine.low %v3858_v54, %v3862_v17 }
 0x65c   :  { %5284 = vmatpush2.bf16.msra.mxu0 %v6188_v59  ;;  %5325 = vmatpush2.bf16.msra.mxu1 %v6316_v32  ;;  %v3722_v32 = vld [vmem:[#allocation12 + $0x148] sm:$0xff] }
 0x65d   :  { %5285 = vmatprep.subr.bf16.mxu0 %v6181_v60  ;;  %5326 = vmatprep.subr.bf16.mxu1 %v6309_v33  ;;  %v6151_v60 = vcombine.high %v3730_v44, %v3734_v16  ;;  %v6279_v33 = vcombine.high %v3858_v54, %v3862_v17  ;;  %v3806_v16 = vld [vmem:[#allocation12 + $0x3e8] sm:$0xff] }
 0x65e   :  { %v3930_v54 = vld [vmem:[#allocation12 + $0x7c8] sm:$0xff] }
 0x65f   :  { %v3934_v17 = vld [vmem:[#allocation12 + $0x7e8] sm:$0xff] }
 0x660   :  { %5286 = vmatpush2.bf16.msra.mxu0 %v6180_v53  ;;  %5327 = vmatpush2.bf16.msra.mxu1 %v6308_v57  ;;  %v3726_v53 = vld [vmem:[#allocation12 + $0x168] sm:$0xff] }
 0x661   :  { %5287 = vmatprep.subr.bf16.mxu0 %v6173_v0  ;;  %5328 = vmatprep.subr.bf16.mxu1 %v6301_v48  ;;  %v3850_v57 = vld [vmem:[#allocation12 + $0x548] sm:$0xff]  ;;  %v6143_v0 = vcombine.high %v3722_v32, %v3726_v53  ;;  %v6142_v62 = vcombine.low %v3722_v32, %v3726_v53  ;;  %v6351_v53 = vcombine.high %v3930_v54, %v3934_v17 }
 0x662   :  { %v6271_v1 = vcombine.high %v3850_v57, %v3854_v61  ;;  %v3842_v48 = vld [vmem:[#allocation12 + $0x508] sm:$0xff]  ;;  %v6270_v6 = vcombine.low %v3850_v57, %v3854_v61 }
 0x663   :  { %v6263_v7 = vcombine.high %v3842_v48, %v3846_v5  ;;  %v6262_v12 = vcombine.low %v3842_v48, %v3846_v5  ;;  %v3794_v57 = vld [vmem:[#allocation12 + $0x388] sm:$0xff] }
 0x664   :  { %5288 = vmatpush2.bf16.msra.mxu0 %v6172_v2  ;;  %5329 = vmatpush2.bf16.msra.mxu1 %v6300_v4  ;;  %v3714_v2 = vld [vmem:[#allocation12 + $0x108] sm:$0xff] }
 0x665   :  { %5289 = vmatprep.subr.bf16.mxu0 %v6165_v50  ;;  %5330 = vmatprep.subr.bf16.mxu1 %v6293_v10  ;;  %v3718_v4 = vld [vmem:[#allocation12 + $0x128] sm:$0xff] }
 0x666   :  { %v6135_v50 = vcombine.high %v3714_v2, %v3718_v4  ;;  %v3834_v10 = vld [vmem:[#allocation12 + $0x4c8] sm:$0xff]  ;;  %v6134_v3 = vcombine.low %v3714_v2, %v3718_v4 }
 0x667   :  { %v6255_v14 = vcombine.high %v3834_v10, %v3838_v11  ;;  %v3798_v61 = vld [vmem:[#allocation12 + $0x3a8] sm:$0xff] }
 0x668   :  { %5290 = vmatpush2.bf16.msra.mxu0 %v6164_v8  ;;  %5331 = vmatpush2.bf16.msra.mxu1 %v6292_v9  ;;  %v3706_v8 = vld [vmem:[#allocation12 + $0xc8] sm:$0xff]  ;;  %v6215_v2 = vcombine.high %v3794_v57, %v3798_v61 }
 0x669   :  { %5341 = vmatprep.subr.bf16.mxu0 %v6159_v13  ;;  %5382 = vmatprep.subr.bf16.mxu1 %v6287_v19  ;;  %v3710_v9 = vld [vmem:[#allocation12 + $0xe8] sm:$0xff] }
 0x66a   :  { %v6127_v13 = vcombine.high %v3706_v8, %v3710_v9  ;;  %v3826_v19 = vld [vmem:[#allocation12 + $0x488] sm:$0xff] }
 0x66b   :  { %v3786_v48 = vld [vmem:[#allocation12 + $0x348] sm:$0xff] }
 0x66c   :  { %v3790_v5 = vld [vmem:[#allocation12 + $0x368] sm:$0xff] }
 0x6eb   :  { %v3625_v25 = vpop.f32.mrf.mxu0  ;;  %v3666_v26 = vpop.f32.mrf.mxu1 }
 0x6ec   :  { %v3626_v27 = vadd.f32 %v3625_v25, %v3254_v21  ;;  %v3667_v28 = vadd.f32 %v3666_v26, %v3262_v22  ;;  %v6126_v21 = vcombine.low %v3706_v8, %v3710_v9  ;;  %v6254_v22 = vcombine.low %v3834_v10, %v3838_v11  ;;  %v3690_v25 = vld [vmem:[#allocation12 + $0x48] sm:$0xff] }
 0x6ed   :  { %v3627_v29 = vpop.f32.mrf.mxu0  ;;  %v3668_v30 = vpop.f32.mrf.mxu1  ;;  %v3694_v26 = vld [vmem:[#allocation12 + $0x68] sm:$0xff]  ;;  %v6207_v8 = vcombine.high %v3786_v48, %v3790_v5 }
 0x6ee   :  { %v3628_v31 = vadd.f32 %v3627_v29, %v3258_v23  ;;  %v3669_v34 = vadd.f32 %v3668_v30, %v3266_v24  ;;  %v3673_v35 = vmax.f32 %v3626_v27, 0.0  ;;  %v3675_v36 = vmax.f32 %v3667_v28, 0.0  ;;  %v3818_v27 = vld [vmem:[#allocation12 + $0x448] sm:$0xff] }
 0x6ef   :  { %v3629_v39 = vpop.f32.mrf.mxu0  ;;  %v3670_v40 = vpop.f32.mrf.mxu1  ;;  %v6247_v24 = vcombine.high %v3826_v19, %v3830_v20  ;;  %v3822_v28 = vld [vmem:[#allocation12 + $0x468] sm:$0xff]  ;;  %v6246_v30 = vcombine.low %v3826_v19, %v3830_v20 }
 0x6f0   :  { %v3674_v41 = vmax.f32 %v3628_v31, 0.0  ;;  %v3676_v42 = vmax.f32 %v3669_v34, 0.0  ;;  %v7561_v58 = vpack.c.bf16 %v3673_v35, %v3673_v35  ;;  %v7563_v59 = vpack.c.bf16 %v3675_v36, %v3675_v36  ;;  %v3682_v35 = vld [vmem:[#allocation12 + $0x8] sm:$0xff] }
 0x6f1   :  { %v3630_v51 = vpop.f32.mrf.mxu0  ;;  %v3671_v52 = vpop.f32.mrf.mxu1  ;;  %v6111_v31 = vcombine.high %v3690_v25, %v3694_v26  ;;  %v6239_v34 = vcombine.high %v3818_v27, %v3822_v28  ;;  %v3686_v36 = vld [vmem:[#allocation12 + $0x28] sm:$0xff] }
 0x6f2   :  { %v7557_v55 = vpack.c.bf16 %v3674_v41, %v3674_v41  ;;  %v7559_v56 = vpack.c.bf16 %v3676_v42, %v3676_v42  ;;  %v3810_v39 = vld [vmem:[#allocation12 + $0x408] sm:$0xff]  ;;  %v6110_v41 = vcombine.low %v3690_v25, %v3694_v26  ;;  %v6238_v42 = vcombine.low %v3818_v27, %v3822_v28 }
 0x6f3   :  { %v3814_v40 = vld [vmem:[#allocation12 + $0x428] sm:$0xff]  ;;  %v6103_v44 = vcombine.high %v3682_v35, %v3686_v36  ;;  %v6102_v32 = vcombine.low %v3682_v35, %v3686_v36 }
 0x6f4   :  { %5291 = vmatprep.mubr.bf16.mxu0 %v7557_v55  ;;  %5332 = vmatprep.mubr.bf16.mxu1 %v7559_v56  ;;  %v6231_v51 = vcombine.high %v3810_v39, %v3814_v40  ;;  %v3802_v52 = vld [vmem:[#allocation12 + $0x3c8] sm:$0xff] }
 0x6f5   :  { %5292 = vmatmul.mubr.bf16.vlgmr.msra.gmra.mxu0 %v7561_v58  ;;  %5333 = vmatmul.mubr.bf16.vlgmr.msra.gmra.mxu1 %v7563_v59  ;;  %v3778_v10 = vld [vmem:[#allocation12 + $0x308] sm:$0xff] }
 0x6f6   :  { %5342 = vmatpush1.bf16.msra.mxu0 %v6158_v15  ;;  %5383 = vmatpush1.bf16.msra.mxu1 %v6286_v18  ;;  %v3698_v15 = vld [vmem:[#allocation12 + $0x88] sm:$0xff] }
 0x6f7   :  { %5373 = vmatprep.mubr.bf16.mxu0 %v7557_v55  ;;  %5414 = vmatprep.mubr.bf16.mxu1 %v7559_v56  ;;  %v3702_v18 = vld [vmem:[#allocation12 + $0xa8] sm:$0xff] }
 0x6f8   :  { %5343 = vmatprep.subr.bf16.mxu0 %v6151_v60  ;;  %5384 = vmatprep.subr.bf16.mxu1 %v6279_v33  ;;  %v6119_v23 = vcombine.high %v3698_v15, %v3702_v18  ;;  %v6118_v29 = vcombine.low %v3698_v15, %v3702_v18  ;;  %v6230_v60 = vcombine.low %v3810_v39, %v3814_v40  ;;  %v3782_v11 = vld [vmem:[#allocation12 + $0x328] sm:$0xff] }
 0x6f9   :  { %v6223_v33 = vcombine.high %v3802_v52, %v3806_v16  ;;  %v6199_v15 = vcombine.high %v3778_v10, %v3782_v11  ;;  %v3770_v19 = vld [vmem:[#allocation12 + $0x2c8] sm:$0xff] }
 0x6fa   :  { %5344 = vmatpush1.bf16.msra.mxu0 %v6150_v63  ;;  %5385 = vmatpush1.bf16.msra.mxu1 %v6278_v46  ;;  %v3922_v63 = vld [vmem:[#allocation12 + $0x788] sm:$0xff] }
 0x6fb   :  { %5345 = vmatprep.subr.bf16.mxu0 %v6143_v0  ;;  %5386 = vmatprep.subr.bf16.mxu1 %v6271_v1  ;;  %v3926_v46 = vld [vmem:[#allocation12 + $0x7a8] sm:$0xff]  ;;  %v6222_v0 = vcombine.low %v3802_v52, %v3806_v16  ;;  %v6350_v1 = vcombine.low %v3930_v54, %v3934_v17 }
 0x6fc   :  { %v6343_v4 = vcombine.high %v3922_v63, %v3926_v46  ;;  %v3774_v20 = vld [vmem:[#allocation12 + $0x2e8] sm:$0xff] }
 0x6fd   :  { %v6191_v25 = vcombine.high %v3770_v19, %v3774_v20  ;;  %v3762_v27 = vld [vmem:[#allocation12 + $0x288] sm:$0xff] }
 0x6fe   :  { %5346 = vmatpush1.bf16.msra.mxu0 %v6142_v62  ;;  %5387 = vmatpush1.bf16.msra.mxu1 %v6270_v6  ;;  %v3914_v62 = vld [vmem:[#allocation12 + $0x748] sm:$0xff] }
 0x6ff   :  { %5347 = vmatprep.subr.bf16.mxu0 %v6135_v50  ;;  %5388 = vmatprep.subr.bf16.mxu1 %v6263_v7  ;;  %v3918_v6 = vld [vmem:[#allocation12 + $0x768] sm:$0xff]  ;;  %v6214_v50 = vcombine.low %v3794_v57, %v3798_v61  ;;  %v6342_v7 = vcombine.low %v3922_v63, %v3926_v46  ;;  %v3739_v63 = vld [vmem:[#allocation12 + $0x1d0] sm:$0xff] }
 0x700   :  { %v6335_v9 = vcombine.high %v3914_v62, %v3918_v6  ;;  %v3766_v28 = vld [vmem:[#allocation12 + $0x2a8] sm:$0xff]  ;;  %v3743_v46 = vld [vmem:[#allocation12 + $0x1f0] sm:$0xff] }
 0x701   :  { %v6183_v35 = vcombine.high %v3762_v27, %v3766_v28  ;;  %v3754_v39 = vld [vmem:[#allocation12 + $0x248] sm:$0xff] }
 0x702   :  { %5348 = vmatpush1.bf16.msra.mxu0 %v6134_v3  ;;  %5389 = vmatpush1.bf16.msra.mxu1 %v6262_v12  ;;  %v3906_v3 = vld [vmem:[#allocation12 + $0x708] sm:$0xff] }
 0x703   :  { %5349 = vmatprep.subr.bf16.mxu0 %v6127_v13  ;;  %5390 = vmatprep.subr.bf16.mxu1 %v6255_v14  ;;  %v3910_v12 = vld [vmem:[#allocation12 + $0x728] sm:$0xff]  ;;  %v6206_v13 = vcombine.low %v3786_v48, %v3790_v5  ;;  %v6334_v14 = vcombine.low %v3914_v62, %v3918_v6  ;;  %v6161_v48 = vcombine.high %v3739_v63, %v3743_v46  ;;  %v3731_v62 = vld [vmem:[#allocation12 + $0x190] sm:$0xff] }
 0x704   :  { %v6327_v18 = vcombine.high %v3906_v3, %v3910_v12  ;;  %v3758_v40 = vld [vmem:[#allocation12 + $0x268] sm:$0xff]  ;;  %v3735_v6 = vld [vmem:[#allocation12 + $0x1b0] sm:$0xff] }
 0x705   :  { %v6175_v52 = vcombine.high %v3754_v39, %v3758_v40  ;;  %v3746_v54 = vld [vmem:[#allocation12 + $0x208] sm:$0xff] }
 0x706   :  { %5350 = vmatpush1.bf16.msra.mxu0 %v6126_v21  ;;  %5391 = vmatpush1.bf16.msra.mxu1 %v6254_v22  ;;  %v3898_v21 = vld [vmem:[#allocation12 + $0x6c8] sm:$0xff] }
 0x707   :  { %5351 = vmatprep.subr.bf16.mxu0 %v6119_v23  ;;  %5392 = vmatprep.subr.bf16.mxu1 %v6247_v24  ;;  %v3902_v22 = vld [vmem:[#allocation12 + $0x6e8] sm:$0xff]  ;;  %v6198_v23 = vcombine.low %v3778_v10, %v3782_v11  ;;  %v6326_v24 = vcombine.low %v3906_v3, %v3910_v12  ;;  %v6153_v10 = vcombine.high %v3731_v62, %v3735_v6  ;;  %v3723_v3 = vld [vmem:[#allocation12 + $0x150] sm:$0xff] }
 0x708   :  { %v6319_v26 = vcombine.high %v3898_v21, %v3902_v22  ;;  %v3750_v17 = vld [vmem:[#allocation12 + $0x228] sm:$0xff]  ;;  %v3727_v12 = vld [vmem:[#allocation12 + $0x170] sm:$0xff] }
 0x709   :  { %v6167_v57 = vcombine.high %v3746_v54, %v3750_v17 }
 0x70a   :  { %5352 = vmatpush1.bf16.msra.mxu0 %v6118_v29  ;;  %5393 = vmatpush1.bf16.msra.mxu1 %v6246_v30  ;;  %v3890_v29 = vld [vmem:[#allocation12 + $0x688] sm:$0xff] }
 0x70b   :  { %5353 = vmatprep.subr.bf16.mxu0 %v6111_v31  ;;  %5394 = vmatprep.subr.bf16.mxu1 %v6239_v34  ;;  %v3894_v30 = vld [vmem:[#allocation12 + $0x6a8] sm:$0xff]  ;;  %v6190_v31 = vcombine.low %v3770_v19, %v3774_v20  ;;  %v6318_v34 = vcombine.low %v3898_v21, %v3902_v22  ;;  %v6145_v19 = vcombine.high %v3723_v3, %v3727_v12  ;;  %v3715_v21 = vld [vmem:[#allocation12 + $0x110] sm:$0xff] }
 0x70c   :  { %v6311_v36 = vcombine.high %v3890_v29, %v3894_v30  ;;  %v3719_v22 = vld [vmem:[#allocation12 + $0x130] sm:$0xff] }
 0x70e   :  { %5354 = vmatpush1.bf16.msra.mxu0 %v6110_v41  ;;  %5395 = vmatpush1.bf16.msra.mxu1 %v6238_v42  ;;  %v3882_v41 = vld [vmem:[#allocation12 + $0x648] sm:$0xff] }
 0x70f   :  { %5355 = vmatprep.subr.bf16.mxu0 %v6103_v44  ;;  %5396 = vmatprep.subr.bf16.mxu1 %v6231_v51  ;;  %v3886_v42 = vld [vmem:[#allocation12 + $0x668] sm:$0xff]  ;;  %v6182_v44 = vcombine.low %v3762_v27, %v3766_v28  ;;  %v6310_v51 = vcombine.low %v3890_v29, %v3894_v30  ;;  %v6137_v27 = vcombine.high %v3715_v21, %v3719_v22  ;;  %v3707_v29 = vld [vmem:[#allocation12 + $0xd0] sm:$0xff] }
 0x710   :  { %v6303_v16 = vcombine.high %v3882_v41, %v3886_v42  ;;  %v3711_v30 = vld [vmem:[#allocation12 + $0xf0] sm:$0xff] }
 0x712   :  { %5356 = vmatpush1.bf16.msra.mxu0 %v6102_v32  ;;  %5397 = vmatpush1.bf16.msra.mxu1 %v6230_v60  ;;  %v3874_v32 = vld [vmem:[#allocation12 + $0x608] sm:$0xff] }
 0x713   :  { %5357 = vmatprep.subr.bf16.mxu0 %v6223_v33  ;;  %5398 = vmatprep.subr.bf16.mxu1 %v6351_v53  ;;  %v3878_v60 = vld [vmem:[#allocation12 + $0x628] sm:$0xff]  ;;  %v6174_v33 = vcombine.low %v3754_v39, %v3758_v40  ;;  %v6302_v53 = vcombine.low %v3882_v41, %v3886_v42  ;;  %v6129_v39 = vcombine.high %v3707_v29, %v3711_v30  ;;  %v3699_v41 = vld [vmem:[#allocation12 + $0x90] sm:$0xff] }
 0x714   :  { %v6295_v61 = vcombine.high %v3874_v32, %v3878_v60  ;;  %v3703_v42 = vld [vmem:[#allocation12 + $0xb0] sm:$0xff] }
 0x716   :  { %5358 = vmatpush2.bf16.msra.mxu0 %v6222_v0  ;;  %5399 = vmatpush2.bf16.msra.mxu1 %v6350_v1  ;;  %v3867_v0 = vld [vmem:[#allocation12 + $0x5d0] sm:$0xff] }
 0x717   :  { %5359 = vmatprep.subr.bf16.mxu0 %v6215_v2  ;;  %5400 = vmatprep.subr.bf16.mxu1 %v6343_v4  ;;  %v3871_v1 = vld [vmem:[#allocation12 + $0x5f0] sm:$0xff]  ;;  %v6166_v2 = vcombine.low %v3746_v54, %v3750_v17  ;;  %v6294_v4 = vcombine.low %v3874_v32, %v3878_v60  ;;  %v6121_v54 = vcombine.high %v3699_v41, %v3703_v42 }
 0x718   :  { %v6289_v5 = vcombine.high %v3867_v0, %v3871_v1  ;;  %v3691_v32 = vld [vmem:[#allocation12 + $0x50] sm:$0xff] }
 0x719   :  { %v3695_v60 = vld [vmem:[#allocation12 + $0x70] sm:$0xff] }
 0x71a   :  { %5360 = vmatpush2.bf16.msra.mxu0 %v6214_v50  ;;  %5401 = vmatpush2.bf16.msra.mxu1 %v6342_v7  ;;  %v3859_v50 = vld [vmem:[#allocation12 + $0x590] sm:$0xff] }
 0x71b   :  { %5361 = vmatprep.subr.bf16.mxu0 %v6207_v8  ;;  %5402 = vmatprep.subr.bf16.mxu1 %v6335_v9  ;;  %v3863_v7 = vld [vmem:[#allocation12 + $0x5b0] sm:$0xff]  ;;  %v6160_v8 = vcombine.low %v3739_v63, %v3743_v46  ;;  %v6288_v9 = vcombine.low %v3867_v0, %v3871_v1  ;;  %v6113_v63 = vcombine.high %v3691_v32, %v3695_v60 }
 0x71c   :  { %v6281_v11 = vcombine.high %v3859_v50, %v3863_v7  ;;  %v3683_v0 = vld [vmem:[#allocation12 + $0x10] sm:$0xff] }
 0x71d   :  { %v3687_v1 = vld [vmem:[#allocation12 + $0x30] sm:$0xff] }
 0x71e   :  { %5362 = vmatpush2.bf16.msra.mxu0 %v6206_v13  ;;  %5403 = vmatpush2.bf16.msra.mxu1 %v6334_v14  ;;  %v3851_v13 = vld [vmem:[#allocation12 + $0x550] sm:$0xff] }
 0x71f   :  { %5363 = vmatprep.subr.bf16.mxu0 %v6199_v15  ;;  %5404 = vmatprep.subr.bf16.mxu1 %v6327_v18  ;;  %v3855_v14 = vld [vmem:[#allocation12 + $0x570] sm:$0xff]  ;;  %v6152_v15 = vcombine.low %v3731_v62, %v3735_v6  ;;  %v6280_v18 = vcombine.low %v3859_v50, %v3863_v7  ;;  %v6105_v62 = vcombine.high %v3683_v0, %v3687_v1 }
 0x720   :  { %v6273_v20 = vcombine.high %v3851_v13, %v3855_v14  ;;  %v3803_v50 = vld [vmem:[#allocation12 + $0x3d0] sm:$0xff] }
 0x721   :  { %v3807_v7 = vld [vmem:[#allocation12 + $0x3f0] sm:$0xff] }
 0x722   :  { %5364 = vmatpush2.bf16.msra.mxu0 %v6198_v23  ;;  %5405 = vmatpush2.bf16.msra.mxu1 %v6326_v24  ;;  %v3843_v23 = vld [vmem:[#allocation12 + $0x510] sm:$0xff] }
 0x723   :  { %5365 = vmatprep.subr.bf16.mxu0 %v6191_v25  ;;  %5406 = vmatprep.subr.bf16.mxu1 %v6319_v26  ;;  %v3847_v24 = vld [vmem:[#allocation12 + $0x530] sm:$0xff]  ;;  %v6144_v25 = vcombine.low %v3723_v3, %v3727_v12  ;;  %v6272_v26 = vcombine.low %v3851_v13, %v3855_v14  ;;  %v6225_v3 = vcombine.high %v3803_v50, %v3807_v7 }
 0x724   :  { %v6265_v28 = vcombine.high %v3843_v23, %v3847_v24  ;;  %v3795_v13 = vld [vmem:[#allocation12 + $0x390] sm:$0xff] }
 0x725   :  { %v3799_v14 = vld [vmem:[#allocation12 + $0x3b0] sm:$0xff] }
 0x726   :  { %5366 = vmatpush2.bf16.msra.mxu0 %v6190_v31  ;;  %5407 = vmatpush2.bf16.msra.mxu1 %v6318_v34  ;;  %v3835_v31 = vld [vmem:[#allocation12 + $0x4d0] sm:$0xff] }
 0x727   :  { %5367 = vmatprep.subr.bf16.mxu0 %v6183_v35  ;;  %5408 = vmatprep.subr.bf16.mxu1 %v6311_v36  ;;  %v3839_v34 = vld [vmem:[#allocation12 + $0x4f0] sm:$0xff]  ;;  %v6136_v35 = vcombine.low %v3715_v21, %v3719_v22  ;;  %v6264_v36 = vcombine.low %v3843_v23, %v3847_v24  ;;  %v6217_v21 = vcombine.high %v3795_v13, %v3799_v14 }
 0x728   :  { %v6257_v40 = vcombine.high %v3835_v31, %v3839_v34  ;;  %v3787_v23 = vld [vmem:[#allocation12 + $0x350] sm:$0xff] }
 0x729   :  { %v3791_v24 = vld [vmem:[#allocation12 + $0x370] sm:$0xff] }
 0x72a   :  { %5368 = vmatpush2.bf16.msra.mxu0 %v6182_v44  ;;  %5409 = vmatpush2.bf16.msra.mxu1 %v6310_v51  ;;  %v3827_v44 = vld [vmem:[#allocation12 + $0x490] sm:$0xff] }
 0x72b   :  { %5369 = vmatprep.subr.bf16.mxu0 %v6175_v52  ;;  %5410 = vmatprep.subr.bf16.mxu1 %v6303_v16  ;;  %v3831_v51 = vld [vmem:[#allocation12 + $0x4b0] sm:$0xff]  ;;  %v6128_v52 = vcombine.low %v3707_v29, %v3711_v30  ;;  %v6256_v16 = vcombine.low %v3835_v31, %v3839_v34  ;;  %v6209_v29 = vcombine.high %v3787_v23, %v3791_v24 }
 0x72c   :  { %v6249_v17 = vcombine.high %v3827_v44, %v3831_v51  ;;  %v3779_v31 = vld [vmem:[#allocation12 + $0x310] sm:$0xff] }
 0x72d   :  { %v3783_v34 = vld [vmem:[#allocation12 + $0x330] sm:$0xff] }
 0x72e   :  { %5370 = vmatpush2.bf16.msra.mxu0 %v6174_v33  ;;  %5411 = vmatpush2.bf16.msra.mxu1 %v6302_v53  ;;  %v3819_v33 = vld [vmem:[#allocation12 + $0x450] sm:$0xff] }
 0x72f   :  { %5371 = vmatprep.subr.bf16.mxu0 %v6167_v57  ;;  %5412 = vmatprep.subr.bf16.mxu1 %v6295_v61  ;;  %v3823_v53 = vld [vmem:[#allocation12 + $0x470] sm:$0xff]  ;;  %v6120_v57 = vcombine.low %v3699_v41, %v3703_v42  ;;  %v6248_v61 = vcombine.low %v3827_v44, %v3831_v51  ;;  %v6201_v41 = vcombine.high %v3779_v31, %v3783_v34 }
 0x730   :  { %v6241_v46 = vcombine.high %v3819_v33, %v3823_v53  ;;  %v3771_v44 = vld [vmem:[#allocation12 + $0x2d0] sm:$0xff] }
 0x731   :  { %v3775_v51 = vld [vmem:[#allocation12 + $0x2f0] sm:$0xff] }
 0x732   :  { %5372 = vmatpush2.bf16.msra.mxu0 %v6166_v2  ;;  %5413 = vmatpush2.bf16.msra.mxu1 %v6294_v4  ;;  %v3811_v2 = vld [vmem:[#allocation12 + $0x410] sm:$0xff] }
 0x733   :  { %5423 = vmatprep.subr.bf16.mxu0 %v6161_v48  ;;  %5464 = vmatprep.subr.bf16.mxu1 %v6289_v5  ;;  %v3815_v4 = vld [vmem:[#allocation12 + $0x430] sm:$0xff]  ;;  %v6112_v48 = vcombine.low %v3691_v32, %v3695_v60  ;;  %v6240_v5 = vcombine.low %v3819_v33, %v3823_v53  ;;  %v6193_v32 = vcombine.high %v3771_v44, %v3775_v51 }
 0x734   :  { %v6233_v6 = vcombine.high %v3811_v2, %v3815_v4  ;;  %v3763_v33 = vld [vmem:[#allocation12 + $0x290] sm:$0xff] }
 0x735   :  { %5374 = vmatmul.mubr.bf16.vlgmr.msra.gmra.mxu0 %v7561_v58  ;;  %5415 = vmatmul.mubr.bf16.vlgmr.msra.gmra.mxu1 %v7563_v59  ;;  %v3767_v53 = vld [vmem:[#allocation12 + $0x2b0] sm:$0xff] }
 0x736   :  { %5424 = vmatpush1.bf16.msra.mxu0 %v6160_v8  ;;  %5455 = vmatprep.mubr.bf16.mxu0 %v7557_v55  ;;  %v3931_v8 = vld [vmem:[#allocation12 + $0x7d0] sm:$0xff] }
 0x737   :  { %5465 = vmatpush1.bf16.msra.mxu1 %v6288_v9  ;;  %5496 = vmatprep.mubr.bf16.mxu1 %v7559_v56  ;;  %v3935_v9 = vld [vmem:[#allocation12 + $0x7f0] sm:$0xff] }
 0x738   :  { %5425 = vmatprep.subr.bf16.mxu0 %v6153_v10  ;;  %5466 = vmatprep.subr.bf16.mxu1 %v6281_v11  ;;  %v6104_v10 = vcombine.low %v3683_v0, %v3687_v1  ;;  %v6232_v11 = vcombine.low %v3811_v2, %v3815_v4  ;;  %v6353_v12 = vcombine.high %v3931_v8, %v3935_v9  ;;  %v3755_v2 = vld [vmem:[#allocation12 + $0x250] sm:$0xff] }
 0x739   :  { %v6185_v0 = vcombine.high %v3763_v33, %v3767_v53  ;;  %v3759_v4 = vld [vmem:[#allocation12 + $0x270] sm:$0xff] }
 0x73a   :  { %5426 = vmatpush1.bf16.msra.mxu0 %v6152_v15  ;;  %v3923_v15 = vld [vmem:[#allocation12 + $0x790] sm:$0xff] }
 0x73b   :  { %5467 = vmatpush1.bf16.msra.mxu1 %v6280_v18  ;;  %5427 = vmatprep.subr.bf16.mxu0 %v6145_v19  ;;  %v3927_v18 = vld [vmem:[#allocation12 + $0x7b0] sm:$0xff]  ;;  %v6224_v19 = vcombine.low %v3803_v50, %v3807_v7  ;;  %v6177_v50 = vcombine.high %v3755_v2, %v3759_v4 }
 0x73c   :  { %5468 = vmatprep.subr.bf16.mxu1 %v6273_v20  ;;  %v6352_v20 = vcombine.low %v3931_v8, %v3935_v9  ;;  %v6345_v22 = vcombine.high %v3923_v15, %v3927_v18  ;;  %v3747_v8 = vld [vmem:[#allocation12 + $0x210] sm:$0xff] }
 0x73d   :  { %v3751_v9 = vld [vmem:[#allocation12 + $0x230] sm:$0xff] }
 0x73e   :  { %5428 = vmatpush1.bf16.msra.mxu0 %v6144_v25  ;;  %v3915_v25 = vld [vmem:[#allocation12 + $0x750] sm:$0xff] }
 0x73f   :  { %5469 = vmatpush1.bf16.msra.mxu1 %v6272_v26  ;;  %5429 = vmatprep.subr.bf16.mxu0 %v6137_v27  ;;  %v3919_v26 = vld [vmem:[#allocation12 + $0x770] sm:$0xff]  ;;  %v6216_v27 = vcombine.low %v3795_v13, %v3799_v14  ;;  %v6169_v13 = vcombine.high %v3747_v8, %v3751_v9 }
 0x740   :  { %5470 = vmatprep.subr.bf16.mxu1 %v6265_v28  ;;  %v6344_v28 = vcombine.low %v3923_v15, %v3927_v18  ;;  %v6337_v30 = vcombine.high %v3915_v25, %v3919_v26  ;;  %v3740_v15 = vld [vmem:[#allocation12 + $0x1d8] sm:$0xff] }
 0x741   :  { %v3744_v18 = vld [vmem:[#allocation12 + $0x1f8] sm:$0xff] }
 0x742   :  { %5430 = vmatpush1.bf16.msra.mxu0 %v6136_v35  ;;  %v3907_v35 = vld [vmem:[#allocation12 + $0x710] sm:$0xff] }
 0x743   :  { %5471 = vmatpush1.bf16.msra.mxu1 %v6264_v36  ;;  %5431 = vmatprep.subr.bf16.mxu0 %v6129_v39  ;;  %v3911_v36 = vld [vmem:[#allocation12 + $0x730] sm:$0xff]  ;;  %v6208_v39 = vcombine.low %v3787_v23, %v3791_v24  ;;  %v6163_v23 = vcombine.high %v3740_v15, %v3744_v18 }
 0x744   :  { %5472 = vmatprep.subr.bf16.mxu1 %v6257_v40  ;;  %v6336_v40 = vcombine.low %v3915_v25, %v3919_v26  ;;  %v6329_v42 = vcombine.high %v3907_v35, %v3911_v36  ;;  %v3732_v25 = vld [vmem:[#allocation12 + $0x198] sm:$0xff] }
 0x745   :  { %v3736_v26 = vld [vmem:[#allocation12 + $0x1b8] sm:$0xff] }
 0x746   :  { %5432 = vmatpush1.bf16.msra.mxu0 %v6128_v52  ;;  %v3899_v52 = vld [vmem:[#allocation12 + $0x6d0] sm:$0xff] }
 0x747   :  { %5473 = vmatpush1.bf16.msra.mxu1 %v6256_v16  ;;  %5433 = vmatprep.subr.bf16.mxu0 %v6121_v54  ;;  %v3903_v16 = vld [vmem:[#allocation12 + $0x6f0] sm:$0xff]  ;;  %v6200_v54 = vcombine.low %v3779_v31, %v3783_v34  ;;  %v6155_v31 = vcombine.high %v3732_v25, %v3736_v26  ;;  %v3724_v34 = vld [vmem:[#allocation12 + $0x158] sm:$0xff] }
 0x748   :  { %5474 = vmatprep.subr.bf16.mxu1 %v6249_v17  ;;  %v6328_v17 = vcombine.low %v3907_v35, %v3911_v36  ;;  %v6321_v60 = vcombine.high %v3899_v52, %v3903_v16  ;;  %v3728_v35 = vld [vmem:[#allocation12 + $0x178] sm:$0xff] }
 0x74a   :  { %5434 = vmatpush1.bf16.msra.mxu0 %v6120_v57  ;;  %v3891_v57 = vld [vmem:[#allocation12 + $0x690] sm:$0xff] }
 0x74b   :  { %5475 = vmatpush1.bf16.msra.mxu1 %v6248_v61  ;;  %5435 = vmatprep.subr.bf16.mxu0 %v6113_v63  ;;  %v3895_v61 = vld [vmem:[#allocation12 + $0x6b0] sm:$0xff]  ;;  %v6192_v63 = vcombine.low %v3771_v44, %v3775_v51  ;;  %v6147_v44 = vcombine.high %v3724_v34, %v3728_v35 }
 0x74c   :  { %5476 = vmatprep.subr.bf16.mxu1 %v6241_v46  ;;  %v6320_v46 = vcombine.low %v3899_v52, %v3903_v16  ;;  %v6313_v1 = vcombine.high %v3891_v57, %v3895_v61  ;;  %v3716_v52 = vld [vmem:[#allocation12 + $0x118] sm:$0xff] }
 0x74d   :  { %v3720_v16 = vld [vmem:[#allocation12 + $0x138] sm:$0xff] }
 0x74e   :  { %5436 = vmatpush1.bf16.msra.mxu0 %v6112_v48  ;;  %v3883_v48 = vld [vmem:[#allocation12 + $0x650] sm:$0xff] }
 0x74f   :  { %5477 = vmatpush1.bf16.msra.mxu1 %v6240_v5  ;;  %5437 = vmatprep.subr.bf16.mxu0 %v6105_v62  ;;  %v3887_v5 = vld [vmem:[#allocation12 + $0x670] sm:$0xff]  ;;  %v6184_v62 = vcombine.low %v3763_v33, %v3767_v53  ;;  %v6139_v33 = vcombine.high %v3716_v52, %v3720_v16  ;;  %v3708_v53 = vld [vmem:[#allocation12 + $0xd8] sm:$0xff] }
 0x750   :  { %5478 = vmatprep.subr.bf16.mxu1 %v6233_v6  ;;  %v6312_v6 = vcombine.low %v3891_v57, %v3895_v61  ;;  %v6305_v7 = vcombine.high %v3883_v48, %v3887_v5  ;;  %v3712_v57 = vld [vmem:[#allocation12 + $0xf8] sm:$0xff] }
 0x751   :  { %v3836_v61 = vld [vmem:[#allocation12 + $0x4d8] sm:$0xff] }
 0x752   :  { %5438 = vmatpush1.bf16.msra.mxu0 %v6104_v10  ;;  %v3875_v10 = vld [vmem:[#allocation12 + $0x610] sm:$0xff] }
 0x753   :  { %5479 = vmatpush1.bf16.msra.mxu1 %v6232_v11  ;;  %5439 = vmatprep.subr.bf16.mxu0 %v6225_v3  ;;  %v3879_v11 = vld [vmem:[#allocation12 + $0x630] sm:$0xff]  ;;  %v6176_v3 = vcombine.low %v3755_v2, %v3759_v4  ;;  %v3700_v2 = vld [vmem:[#allocation12 + $0x98] sm:$0xff] }
 0x754   :  { %5480 = vmatprep.subr.bf16.mxu1 %v6353_v12  ;;  %v6304_v12 = vcombine.low %v3883_v48, %v3887_v5  ;;  %v6297_v14 = vcombine.high %v3875_v10, %v3879_v11  ;;  %v3704_v4 = vld [vmem:[#allocation12 + $0xb8] sm:$0xff] }
 0x755   :  { %v3828_v48 = vld [vmem:[#allocation12 + $0x498] sm:$0xff] }
 0x756   :  { %5440 = vmatpush2.bf16.msra.mxu0 %v6224_v19  ;;  %v3868_v19 = vld [vmem:[#allocation12 + $0x5d8] sm:$0xff] }
 0x757   :  { %5481 = vmatpush2.bf16.msra.mxu1 %v6352_v20  ;;  %5441 = vmatprep.subr.bf16.mxu0 %v6217_v21  ;;  %v3872_v20 = vld [vmem:[#allocation12 + $0x5f8] sm:$0xff]  ;;  %v6168_v21 = vcombine.low %v3747_v8, %v3751_v9 }
 0x758   :  { %5482 = vmatprep.subr.bf16.mxu1 %v6345_v22  ;;  %v6296_v22 = vcombine.low %v3875_v10, %v3879_v11  ;;  %v6291_v24 = vcombine.high %v3868_v19, %v3872_v20  ;;  %v3832_v5 = vld [vmem:[#allocation12 + $0x4b8] sm:$0xff] }
 0x759   :  { %v3692_v8 = vld [vmem:[#allocation12 + $0x58] sm:$0xff] }
 0x75a   :  { %5442 = vmatpush2.bf16.msra.mxu0 %v6216_v27  ;;  %v6162_v27 = vcombine.low %v3740_v15, %v3744_v18  ;;  %v3696_v9 = vld [vmem:[#allocation12 + $0x78] sm:$0xff] }
 0x75b   :  { %5483 = vmatpush2.bf16.msra.mxu1 %v6344_v28  ;;  %5443 = vmatprep.subr.bf16.mxu0 %v6209_v29  ;;  %v3860_v28 = vld [vmem:[#allocation12 + $0x598] sm:$0xff] }
 0x75c   :  { %5484 = vmatprep.subr.bf16.mxu1 %v6337_v30  ;;  %v3864_v29 = vld [vmem:[#allocation12 + $0x5b8] sm:$0xff]  ;;  %v6290_v30 = vcombine.low %v3868_v19, %v3872_v20 }
 0x75d   :  { %v6283_v36 = vcombine.high %v3860_v28, %v3864_v29  ;;  %v3820_v10 = vld [vmem:[#allocation12 + $0x458] sm:$0xff] }
 0x75e   :  { %5444 = vmatpush2.bf16.msra.mxu0 %v6208_v39  ;;  %v3852_v39 = vld [vmem:[#allocation12 + $0x558] sm:$0xff] }
 0x75f   :  { %5485 = vmatpush2.bf16.msra.mxu1 %v6336_v40  ;;  %5445 = vmatprep.subr.bf16.mxu0 %v6201_v41  ;;  %v3856_v40 = vld [vmem:[#allocation12 + $0x578] sm:$0xff]  ;;  %v6154_v41 = vcombine.low %v3732_v25, %v3736_v26 }
 0x760   :  { %5486 = vmatprep.subr.bf16.mxu1 %v6329_v42  ;;  %v6282_v42 = vcombine.low %v3860_v28, %v3864_v29  ;;  %v6275_v51 = vcombine.high %v3852_v39, %v3856_v40  ;;  %v3824_v11 = vld [vmem:[#allocation12 + $0x478] sm:$0xff] }
 0x761   :  { %v3684_v15 = vld [vmem:[#allocation12 + $0x18] sm:$0xff] }
 0x762   :  { %5446 = vmatpush2.bf16.msra.mxu0 %v6200_v54  ;;  %v3844_v54 = vld [vmem:[#allocation12 + $0x518] sm:$0xff] }
 0x763   :  { %5487 = vmatpush2.bf16.msra.mxu1 %v6328_v17  ;;  %5447 = vmatprep.subr.bf16.mxu0 %v6193_v32  ;;  %v3848_v17 = vld [vmem:[#allocation12 + $0x538] sm:$0xff]  ;;  %v6146_v32 = vcombine.low %v3724_v34, %v3728_v35 }
 0x764   :  { %5488 = vmatprep.subr.bf16.mxu1 %v6321_v60  ;;  %v6274_v60 = vcombine.low %v3852_v39, %v3856_v40  ;;  %v3688_v18 = vld [vmem:[#allocation12 + $0x38] sm:$0xff] }
 0x765   :  { %v3812_v19 = vld [vmem:[#allocation12 + $0x418] sm:$0xff]  ;;  %v6106_v29 = vcombine.low %v3684_v15, %v3688_v18 }
 0x766   :  { %5448 = vmatpush2.bf16.msra.mxu0 %v6192_v63  ;;  %v3840_v63 = vld [vmem:[#allocation12 + $0x4f8] sm:$0xff] }
 0x767   :  { %5489 = vmatpush2.bf16.msra.mxu1 %v6320_v46  ;;  %5449 = vmatprep.subr.bf16.mxu0 %v6185_v0  ;;  %v6266_v46 = vcombine.low %v3844_v54, %v3848_v17  ;;  %v6131_v0 = vcombine.high %v3708_v53, %v3712_v57  ;;  %v3816_v20 = vld [vmem:[#allocation12 + $0x438] sm:$0xff] }
 0x768   :  { %5490 = vmatprep.subr.bf16.mxu1 %v6313_v1  ;;  %v6259_v1 = vcombine.high %v3836_v61, %v3840_v63  ;;  %v3804_v25 = vld [vmem:[#allocation12 + $0x3d8] sm:$0xff] }
 0x769   :  { %v3808_v26 = vld [vmem:[#allocation12 + $0x3f8] sm:$0xff] }
 0x76a   :  { %5450 = vmatpush2.bf16.msra.mxu0 %v6184_v62  ;;  %v6130_v62 = vcombine.low %v3708_v53, %v3712_v57  ;;  %v3936_v28 = vld [vmem:[#allocation12 + $0x7f8] sm:$0xff] }
 0x76b   :  { %5491 = vmatpush2.bf16.msra.mxu1 %v6312_v6  ;;  %5451 = vmatprep.subr.bf16.mxu0 %v6177_v50  ;;  %v6258_v6 = vcombine.low %v3836_v61, %v3840_v63  ;;  %v6123_v50 = vcombine.high %v3700_v2, %v3704_v4  ;;  %v3796_v35 = vld [vmem:[#allocation12 + $0x398] sm:$0xff] }
 0x76c   :  { %5492 = vmatprep.subr.bf16.mxu1 %v6305_v7  ;;  %v6251_v7 = vcombine.high %v3828_v48, %v3832_v5  ;;  %v3924_v39 = vld [vmem:[#allocation12 + $0x798] sm:$0xff] }
 0x76d   :  { %v3928_v40 = vld [vmem:[#allocation12 + $0x7b8] sm:$0xff] }
 0x76e   :  { %5452 = vmatpush2.bf16.msra.mxu0 %v6176_v3  ;;  %v6122_v3 = vcombine.low %v3700_v2, %v3704_v4  ;;  %v3780_v53 = vld [vmem:[#allocation12 + $0x318] sm:$0xff] }
 0x76f   :  { %5493 = vmatpush2.bf16.msra.mxu1 %v6304_v12  ;;  %5453 = vmatprep.subr.bf16.mxu0 %v6169_v13  ;;  %v6250_v12 = vcombine.low %v3828_v48, %v3832_v5  ;;  %v6115_v13 = vcombine.high %v3692_v8, %v3696_v9  ;;  %v3784_v57 = vld [vmem:[#allocation12 + $0x338] sm:$0xff] }
 0x770   :  { %5494 = vmatprep.subr.bf16.mxu1 %v6297_v14  ;;  %v6243_v14 = vcombine.high %v3820_v10, %v3824_v11  ;;  %v3908_v61 = vld [vmem:[#allocation12 + $0x718] sm:$0xff] }
 0x771   :  { %v3912_v63 = vld [vmem:[#allocation12 + $0x738] sm:$0xff] }
 0x772   :  { %5454 = vmatpush2.bf16.msra.mxu0 %v6168_v21  ;;  %v6114_v21 = vcombine.low %v3692_v8, %v3696_v9  ;;  %v3772_v2 = vld [vmem:[#allocation12 + $0x2d8] sm:$0xff] }
 0x773   :  { %5495 = vmatpush2.bf16.msra.mxu1 %v6296_v22  ;;  %5505 = vmatprep.subr.bf16.mxu0 %v6163_v23  ;;  %v6242_v22 = vcombine.low %v3820_v10, %v3824_v11  ;;  %v6107_v23 = vcombine.high %v3684_v15, %v3688_v18  ;;  %v3776_v4 = vld [vmem:[#allocation12 + $0x2f8] sm:$0xff] }
 0x774   :  { %5546 = vmatprep.subr.bf16.mxu1 %v6291_v24  ;;  %v6235_v24 = vcombine.high %v3812_v19, %v3816_v20  ;;  %v3900_v48 = vld [vmem:[#allocation12 + $0x6d8] sm:$0xff] }
 0x775   :  { %5456 = vmatmul.mubr.bf16.vlgmr.msra.gmra.mxu0 %v7561_v58  ;;  %v3904_v5 = vld [vmem:[#allocation12 + $0x6f8] sm:$0xff] }
 0x776   :  { %5497 = vmatmul.mubr.bf16.vlgmr.msra.gmra.mxu1 %v7563_v59  ;;  %5506 = vmatpush1.bf16.msra.mxu0 %v6162_v27  ;;  %v3932_v27 = vld [vmem:[#allocation12 + $0x7d8] sm:$0xff] }
 0x777   :  { %5537 = vmatprep.mubr.bf16.mxu0 %v7557_v55  ;;  %5547 = vmatpush1.bf16.msra.mxu1 %v6290_v30  ;;  %v6267_v55 = vcombine.high %v3844_v54, %v3848_v17  ;;  %v6234_v30 = vcombine.low %v3812_v19, %v3816_v20  ;;  %v6355_v34 = vcombine.high %v3932_v27, %v3936_v28  ;;  %v3916_v54 = vld [vmem:[#allocation12 + $0x758] sm:$0xff] }
 0x778   :  { %5578 = vmatprep.mubr.bf16.mxu1 %v7559_v56  ;;  %5507 = vmatprep.subr.bf16.mxu0 %v6155_v31  ;;  %v6138_v56 = vcombine.low %v3716_v52, %v3720_v16  ;;  %v6227_v31 = vcombine.high %v3804_v25, %v3808_v26  ;;  %v3788_v52 = vld [vmem:[#allocation12 + $0x358] sm:$0xff] }
 0x779   :  { %5548 = vmatprep.subr.bf16.mxu1 %v6283_v36  ;;  %v3800_v36 = vld [vmem:[#allocation12 + $0x3b8] sm:$0xff] }
 0x77a   :  { %5508 = vmatpush1.bf16.msra.mxu0 %v6154_v41  ;;  %v6226_v41 = vcombine.low %v3804_v25, %v3808_v26  ;;  %v3792_v16 = vld [vmem:[#allocation12 + $0x378] sm:$0xff] }
 0x77b   :  { %5549 = vmatpush1.bf16.msra.mxu1 %v6282_v42  ;;  %5509 = vmatprep.subr.bf16.mxu0 %v6147_v44  ;;  %v6354_v42 = vcombine.low %v3932_v27, %v3936_v28  ;;  %v6219_v44 = vcombine.high %v3796_v35, %v3800_v36  ;;  %v3920_v17 = vld [vmem:[#allocation12 + $0x778] sm:$0xff] }
 0x77c   :  { %5550 = vmatprep.subr.bf16.mxu1 %v6275_v51  ;;  %v6347_v51 = vcombine.high %v3924_v39, %v3928_v40  ;;  %v3764_v8 = vld [vmem:[#allocation12 + $0x298] sm:$0xff] }
 0x77d   :  { %v3768_v9 = vld [vmem:[#allocation12 + $0x2b8] sm:$0xff] }
 0x77e   :  { %5510 = vmatpush1.bf16.msra.mxu0 %v6146_v32  ;;  %v6218_v32 = vcombine.low %v3796_v35, %v3800_v36  ;;  %v3892_v10 = vld [vmem:[#allocation12 + $0x698] sm:$0xff] }
 0x77f   :  { %5551 = vmatpush1.bf16.msra.mxu1 %v6274_v60  ;;  %5511 = vmatprep.subr.bf16.mxu0 %v6139_v33  ;;  %v6346_v60 = vcombine.low %v3924_v39, %v3928_v40  ;;  %v6211_v33 = vcombine.high %v3788_v52, %v3792_v16  ;;  %v3896_v11 = vld [vmem:[#allocation12 + $0x6b8] sm:$0xff]  ;;  %v3937_v39 = vld [vmem:[%s7619_s17] sm:$0xff] }
 0x780   :  { %5552 = vmatprep.subr.bf16.mxu1 %v6267_v55  ;;  %v6339_v55 = vcombine.high %v3916_v54, %v3920_v17  ;;  %v3756_v15 = vld [vmem:[#allocation12 + $0x258] sm:$0xff]  ;;  %v3942_v40 = vrot.slane %v3937_v39, %v7444_v45 }
 0x781   :  { %v3760_v18 = vld [vmem:[#allocation12 + $0x278] sm:$0xff] }
 0x782   :  { %5512 = vmatpush1.bf16.msra.mxu0 %v6138_v56  ;;  %v6210_v56 = vcombine.low %v3788_v52, %v3792_v16  ;;  %v3884_v19 = vld [vmem:[#allocation12 + $0x658] sm:$0xff] }
 0x783   :  { %5553 = vmatpush1.bf16.msra.mxu1 %v6266_v46  ;;  %5513 = vmatprep.subr.bf16.mxu0 %v6131_v0  ;;  %v6338_v46 = vcombine.low %v3916_v54, %v3920_v17  ;;  %v6203_v0 = vcombine.high %v3780_v53, %v3784_v57  ;;  %v3888_v20 = vld [vmem:[#allocation12 + $0x678] sm:$0xff] }
 0x784   :  { %5554 = vmatprep.subr.bf16.mxu1 %v6259_v1  ;;  %v6331_v1 = vcombine.high %v3908_v61, %v3912_v63  ;;  %v3748_v25 = vld [vmem:[#allocation12 + $0x218] sm:$0xff] }
 0x785   :  { %v3752_v26 = vld [vmem:[#allocation12 + $0x238] sm:$0xff] }
 0x786   :  { %5514 = vmatpush1.bf16.msra.mxu0 %v6130_v62  ;;  %v6202_v62 = vcombine.low %v3780_v53, %v3784_v57  ;;  %v3876_v27 = vld [vmem:[#allocation12 + $0x618] sm:$0xff]  ;;  %v6170_v35 = vcombine.low %v3748_v25, %v3752_v26  ;;  %v3950_v57 = vrot.slane %v3937_v39, %v7499_v37 }
 0x787   :  { %5555 = vmatpush1.bf16.msra.mxu1 %v6258_v6  ;;  %5515 = vmatprep.subr.bf16.mxu0 %v6123_v50  ;;  %v6330_v6 = vcombine.low %v3908_v61, %v3912_v63  ;;  %v6195_v50 = vcombine.high %v3772_v2, %v3776_v4  ;;  %v3880_v28 = vld [vmem:[#allocation12 + $0x638] sm:$0xff] }
 0x788   :  { %5556 = vmatprep.subr.bf16.mxu1 %v6251_v7  ;;  %v6323_v7 = vcombine.high %v3900_v48, %v3904_v5  ;;  %v6298_v36 = vcombine.low %v3876_v27, %v3880_v28 }
 0x78a   :  { %5516 = vmatpush1.bf16.msra.mxu0 %v6122_v3  ;;  %v6194_v3 = vcombine.low %v3772_v2, %v3776_v4 }
 0x78b   :  { %5557 = vmatpush1.bf16.msra.mxu1 %v6250_v12  ;;  %5517 = vmatprep.subr.bf16.mxu0 %v6115_v13  ;;  %v6322_v12 = vcombine.low %v3900_v48, %v3904_v5  ;;  %v6187_v13 = vcombine.high %v3764_v8, %v3768_v9 }
 0x78c   :  { %5558 = vmatprep.subr.bf16.mxu1 %v6243_v14  ;;  %v6315_v14 = vcombine.high %v3892_v10, %v3896_v11 }
 0x78e   :  { %5518 = vmatpush1.bf16.msra.mxu0 %v6114_v21  ;;  %v6186_v21 = vcombine.low %v3764_v8, %v3768_v9 }
 0x78f   :  { %5559 = vmatpush1.bf16.msra.mxu1 %v6242_v22  ;;  %5519 = vmatprep.subr.bf16.mxu0 %v6107_v23  ;;  %v6314_v22 = vcombine.low %v3892_v10, %v3896_v11  ;;  %v6179_v23 = vcombine.high %v3756_v15, %v3760_v18 }
 0x790   :  { %5560 = vmatprep.subr.bf16.mxu1 %v6235_v24  ;;  %v6307_v24 = vcombine.high %v3884_v19, %v3888_v20 }
 0x792   :  { %5520 = vmatpush1.bf16.msra.mxu0 %v6106_v29  ;;  %v6178_v29 = vcombine.low %v3756_v15, %v3760_v18 }
 0x793   :  { %5561 = vmatpush1.bf16.msra.mxu1 %v6234_v30  ;;  %5521 = vmatprep.subr.bf16.mxu0 %v6227_v31  ;;  %v6306_v30 = vcombine.low %v3884_v19, %v3888_v20  ;;  %v6171_v31 = vcombine.high %v3748_v25, %v3752_v26  ;;  %v3969_v25 = vsub.s32 7, %v7376_v43 }
 0x794   :  { %5562 = vmatprep.subr.bf16.mxu1 %v6355_v34  ;;  %v6299_v34 = vcombine.high %v3876_v27, %v3880_v28 }
 0x795   :  { %v3970_v27 = vrot.slane %v3937_v39, %v3969_v25 }
 0x796   :  { %5522 = vmatpush2.bf16.msra.mxu0 %v6226_v41  ;;  %v3946_v41 = vrot.slane %v3937_v39, %v7452_v47  ;;  %v3954_v47 = vrot.slane %v3937_v39, %v7502_v38  ;;  %v3957_v38 = vsub.s32 4, %v7376_v43 }
 0x797   :  { %5563 = vmatpush2.bf16.msra.mxu1 %v6354_v42  ;;  %5523 = vmatprep.subr.bf16.mxu0 %v6219_v44 }
 0x798   :  { %5564 = vmatprep.subr.bf16.mxu1 %v6347_v51  ;;  %v3958_v8 = vrot.slane %v3937_v39, %v3957_v38 }
 0x79a   :  { %5524 = vmatpush2.bf16.msra.mxu0 %v6218_v32 }
 0x79b   :  { %5565 = vmatpush2.bf16.msra.mxu1 %v6346_v60  ;;  %5525 = vmatprep.subr.bf16.mxu0 %v6211_v33 }
 0x79c   :  { %5566 = vmatprep.subr.bf16.mxu1 %v6339_v55 }
 0x79e   :  { %5526 = vmatpush2.bf16.msra.mxu0 %v6210_v56 }
 0x79f   :  { %5567 = vmatpush2.bf16.msra.mxu1 %v6338_v46  ;;  %5527 = vmatprep.subr.bf16.mxu0 %v6203_v0 }
 0x7a0   :  { %5568 = vmatprep.subr.bf16.mxu1 %v6331_v1 }
 0x7a2   :  { %5528 = vmatpush2.bf16.msra.mxu0 %v6202_v62 }
 0x7a3   :  { %5569 = vmatpush2.bf16.msra.mxu1 %v6330_v6  ;;  %5529 = vmatprep.subr.bf16.mxu0 %v6195_v50 }
 0x7a4   :  { %5570 = vmatprep.subr.bf16.mxu1 %v6323_v7  ;;  %v3961_v7 = vsub.s32 5, %v7376_v43 }
 0x7a6   :  { %5530 = vmatpush2.bf16.msra.mxu0 %v6194_v3  ;;  %v3962_v9 = vrot.slane %v3937_v39, %v3961_v7 }
 0x7a7   :  { %5571 = vmatpush2.bf16.msra.mxu1 %v6322_v12  ;;  %5531 = vmatprep.subr.bf16.mxu0 %v6187_v13 }
 0x7a8   :  { %5572 = vmatprep.subr.bf16.mxu1 %v6315_v14 }
 0x7aa   :  { %5532 = vmatpush2.bf16.msra.mxu0 %v6186_v21 }
 0x7ab   :  { %5573 = vmatpush2.bf16.msra.mxu1 %v6314_v22  ;;  %5533 = vmatprep.subr.bf16.mxu0 %v6179_v23 }
 0x7ac   :  { %5574 = vmatprep.subr.bf16.mxu1 %v6307_v24  ;;  %v3965_v24 = vsub.s32 6, %v7376_v43 }
 0x7ae   :  { %5534 = vmatpush2.bf16.msra.mxu0 %v6178_v29  ;;  %v3966_v26 = vrot.slane %v3937_v39, %v3965_v24 }
 0x7af   :  { %5575 = vmatpush2.bf16.msra.mxu1 %v6306_v30  ;;  %5535 = vmatprep.subr.bf16.mxu0 %v6171_v31 }
 0x7b0   :  { %5576 = vmatprep.subr.bf16.mxu1 %v6299_v34 }
 0x7b2   :  { %5536 = vmatpush2.bf16.msra.mxu0 %v6170_v35 }
 0x7b3   :  { %5577 = vmatpush2.bf16.msra.mxu1 %v6298_v36 }
 0x7b5   :  { %5538 = vmatmul.mubr.bf16.vlgmr.msra.gmra.mxu0 %v7561_v58  ;;  %v5293_v42 = vpop.f32.mrf.mxu0  ;;  %v5334_v44 = vpop.f32.mrf.mxu1 }
 0x7b6   :  { %5579 = vmatmul.mubr.bf16.vlgmr.msra.gmra.mxu1 %v7563_v59  ;;  %v5294_v51 = vadd.f32 %v5293_v42, %v3942_v40 }
 0x7b7   :  { %v5295_v52 = vpop.f32.mrf.mxu0  ;;  %v5336_v16 = vpop.f32.mrf.mxu1 }
 0x7b8   :  { %v5335_v54 = vadd.f32 %v5334_v44, %v5294_v51  ;;  %v5296_v17 = vadd.f32 %v5295_v52, %v3946_v41 }
 0x7b9   :  { %v5297_v32 = vpop.f32.mrf.mxu0  ;;  %v5338_v60 = vpop.f32.mrf.mxu1 }
 0x7ba   :  { %v5337_v33 = vadd.f32 %v5336_v16, %v5296_v17 }
 0x7bb   :  { %v5298_v55 = vpop.f32.mrf.mxu0  ;;  %v5339_v53 = vpop.f32.mrf.mxu1 }
 0x7bc   :  { %v5595_v45 = vcombine.low %v5335_v54, %v5337_v33 }
 0x7be   :  { %v5603_v6 = vrot.slane %v5595_v45, %v7379_v49 }
 0x7f5   :  { %v5375_v58 = vpop.f32.mrf.mxu0  ;;  %v5416_v61 = vpop.f32.mrf.mxu1 }
 0x7f6   :  { %v5376_v63 = vadd.f32 %v5375_v58, %v3950_v57 }
 0x7f7   :  { %v5377_v56 = vpop.f32.mrf.mxu0  ;;  %v5418_v59 = vpop.f32.mrf.mxu1 }
 0x7f8   :  { %v5378_v46 = vadd.f32 %v5377_v56, %v3954_v47  ;;  %v5417_v2 = vadd.f32 %v5416_v61, %v5376_v63 }
 0x7f9   :  { %v5379_v0 = vpop.f32.mrf.mxu0  ;;  %v5420_v1 = vpop.f32.mrf.mxu1 }
 0x7fa   :  { %v5419_v4 = vadd.f32 %v5418_v59, %v5378_v46 }
 0x7fb   :  { %v5380_v48 = vpop.f32.mrf.mxu0  ;;  %v5421_v5 = vpop.f32.mrf.mxu1 }
 0x7fc   :  { %v5596_v62 = vcombine.low %v5417_v2, %v5419_v4 }
 0x7fe   :  { %v5610_v50 = vrot.slane %v5596_v62, %v7379_v49 }
 0x800   :  { %v5611_v37 = vcombine.low %v5603_v6, %v5610_v50 }
 0x802   :  { %5631 = vst [vmem:[%s7620_s18] sm:$0xff] %v5611_v37 }
 0x835   :  { %v5457_v10 = vpop.f32.mrf.mxu0 }
 0x836   :  { %v5458_v11 = vadd.f32 %v5457_v10, %v3958_v8  ;;  %v5498_v3 = vpop.f32.mrf.mxu1 }
 0x837   :  { %v5459_v12 = vpop.f32.mrf.mxu0 }
 0x838   :  { %v5499_v13 = vadd.f32 %v5498_v3, %v5458_v11  ;;  %v5460_v14 = vadd.f32 %v5459_v12, %v3962_v9  ;;  %v5500_v15 = vpop.f32.mrf.mxu1 }
 0x839   :  { %v5461_v18 = vpop.f32.mrf.mxu0 }
 0x83a   :  { %v5501_v19 = vadd.f32 %v5500_v15, %v5460_v14  ;;  %v5502_v20 = vpop.f32.mrf.mxu1 }
 0x83b   :  { %v5462_v21 = vpop.f32.mrf.mxu0 }
 0x83c   :  { %v5612_v22 = vcombine.low %v5499_v13, %v5501_v19  ;;  %v5503_v23 = vpop.f32.mrf.mxu1 }
 0x83e   :  { %v5620_v16 = vrot.slane %v5612_v22, %v7379_v49 }
 0x875   :  { %v5539_v28 = vpop.f32.mrf.mxu0 }
 0x876   :  { %v5540_v29 = vadd.f32 %v5539_v28, %v3966_v26  ;;  %v5580_v30 = vpop.f32.mrf.mxu1 }
 0x877   :  { %v5541_v31 = vpop.f32.mrf.mxu0 }
 0x878   :  { %v5542_v34 = vadd.f32 %v5541_v31, %v3970_v27  ;;  %v5582_v35 = vpop.f32.mrf.mxu1  ;;  %v5581_v40 = vadd.f32 %v5580_v30, %v5540_v29 }
 0x879   :  { %v5543_v36 = vpop.f32.mrf.mxu0 }
 0x87a   :  { %v5583_v41 = vadd.f32 %v5582_v35, %v5542_v34  ;;  %v5584_v42 = vpop.f32.mrf.mxu1 }
 0x87b   :  { %v5544_v44 = vpop.f32.mrf.mxu0 }
 0x87c   :  { %v5613_v51 = vcombine.low %v5581_v40, %v5583_v41  ;;  %v5585_v52 = vpop.f32.mrf.mxu1 }
 0x87e   :  { %v5627_v54 = vrot.slane %v5613_v51, %v7379_v49 }
 0x880   :  { %v5628_v43 = vcombine.low %v5620_v16, %v5627_v54 }
 0x882   :  { %5632 = vst [vmem:[%s7620_s18 + $0x8] sm:$0xff] %v5628_v43 }
 0x883   :  { %5654 = vsyncpa [#allocation3], 1 }
 0x884   :  { %5655 = vsyncpa [#allocation5], 1 }
 0x885   :  { %5656 = vsyncpa [#allocation8], 1 }
 0x886   :  { %5657 = vsyncpa [#allocation11], 1 }

</bundles_post_ra>
